<compile_context>
chip_gen: v5e
topology: v5e:2x2
jax: 0.10.0
libtpu: 0.0.40
codegen_flags: <defaults>
</compile_context>

<pallas_src>
import jax
import jax.numpy as jnp
from jax.experimental import pallas as pl
from jax.experimental.pallas import tpu as pltpu

BN_EPS = 1e-5
LRELU_SLOPE = 0.2

_CPARAMS = pltpu.CompilerParams(dimension_semantics=("arbitrary",))


def _full_spec(shape):
    nd = len(shape)
    return pl.BlockSpec(shape, lambda i, _nd=nd: (0,) * _nd)


def _bn_lrelu_list(ys, g, bt, slope):
    """Train-mode BatchNorm1d (stats over all rows of all list entries, biased variance),
    then LeakyReLU.  slope=None or slope==1.0 (nn.LeakyReLU(True)) skips the activation."""
    count = float(sum(y.shape[0] for y in ys))
    s = ys[0].sum(axis=0, keepdims=True)
    for y in ys[1:]:
        s = s + y.sum(axis=0, keepdims=True)
    mean = s / count
    sq = jnp.square(ys[0] - mean).sum(axis=0, keepdims=True)
    for y in ys[1:]:
        sq = sq + jnp.square(y - mean).sum(axis=0, keepdims=True)
    inv = jax.lax.rsqrt(sq / count + BN_EPS)
    ys = [(y - mean) * inv * g + bt for y in ys]
    if slope is not None and slope != 1.0:
        ys = [jnp.where(y >= 0, y, slope * y) for y in ys]
    return ys


def _conv_stack_kernel(x_ref,
                       w1_ref, b1_ref, g1_ref, t1_ref,
                       w2_ref, b2_ref, g2_ref, t2_ref,
                       w3_ref, b3_ref, g3_ref, t3_ref,
                       w4_ref, b4_ref,
                       o_ref,
                       y2_scr):
    """Fused self.net: Conv(d,32,3)+BN+LReLU, Conv(32,64,3)+BN+LReLU,
    Conv(64,64,4,s=2)+BN+LReLU, Conv(64,32,3).  Channels-last, per-batch-element unrolled
    (N is tiny & static); each stride-1 conv is k shifted MXU matmuls with bias added once."""
    n, l_in, _ = x_ref.shape
    l1 = l_in - 2            # conv1: k=3, s=1
    l2 = l1 - 2              # conv2: k=3, s=1
    l3 = (l2 - 4) // 2 + 1   # conv3: k=4, s=2
    l4 = l3 - 2              # conv4: k=3, s=1

    def conv_s1(xs, w_ref, b, k, l_out):
        outs = []
        for x in xs:
            acc = jnp.dot(x[0:l_out, :], w_ref[0], preferred_element_type=jnp.float32)
            for kk in range(1, k):
                acc = acc + jnp.dot(x[kk:kk + l_out, :], w_ref[kk],
                                    preferred_element_type=jnp.float32)
            outs.append(acc + b)
        return outs

    xs = [x_ref[i] for i in range(n)]

    # conv1 (dim -> 32) + BN + LeakyReLU(0.2)
    ys = conv_s1(xs, w1_ref, b1_ref[...], 3, l1)
    ys = _bn_lrelu_list(ys, g1_ref[...], t1_ref[...], LRELU_SLOPE)

    # conv2 (32 -> 64) + BN + LeakyReLU(0.2)
    ys = conv_s1(ys, w2_ref, b2_ref[...], 3, l2)
    ys = _bn_lrelu_list(ys, g2_ref[...], t2_ref[...], LRELU_SLOPE)

    # Stage conv2 output in VMEM scratch so the stride-2 taps become strided ref loads.
    for i in range(n):
        y2_scr[pl.ds(i * l2, l2), :] = ys[i]

    # conv3 (64 -> 64, k=4, stride=2) + BN + LeakyReLU(0.2)
    half = l2 // 2
    b3 = b3_ref[...]
    ys = []
    for i in range(n):
        ev = y2_scr[pl.ds(i * l2, half, 2), :]       # positions 0, 2, 4, ...
        od = y2_scr[pl.ds(i * l2 + 1, half, 2), :]   # positions 1, 3, 5, ...
        taps = (ev[0:l3, :], od[0:l3, :], ev[1:1 + l3, :], od[1:1 + l3, :])
        acc = jnp.dot(taps[0], w3_ref[0], preferred_element_type=jnp.float32)
        for kk in range(1, 4):
            acc = acc + jnp.dot(taps[kk], w3_ref[kk], preferred_element_type=jnp.float32)
        ys.append(acc + b3)
    ys = _bn_lrelu_list(ys, g3_ref[...], t3_ref[...], LRELU_SLOPE)

    # conv4 (64 -> 32), no BN / no activation
    ys = conv_s1(ys, w4_ref, b4_ref[...], 3, l4)
    for i in range(n):
        o_ref[i] = ys[i]


def _mlp_kernel(x_ref,
                w1_ref, b1_ref, g1_ref, t1_ref,
                w2_ref, b2_ref, g2_ref, t2_ref,
                w3_ref, b3_ref,
                wm_ref, bm_ref,
                mu_ref, lv_ref):
    """Fused self.out_net + fc_mu/fc_logvar.  Weights are bf16; matmuls accumulate f32.
    nn.LeakyReLU(True) has negative_slope == 1.0 (identity) -> faithfully skipped."""
    def bdot(a, w_ref):
        return jnp.dot(a.astype(jnp.bfloat16), w_ref[...],
                       preferred_element_type=jnp.float32)

    h = bdot(x_ref[...], w1_ref) + b1_ref[...]
    (h,) = _bn_lrelu_list([h], g1_ref[...], t1_ref[...], None)
    h = bdot(h, w2_ref) + b2_ref[...]
    (h,) = _bn_lrelu_list([h], g2_ref[...], t2_ref[...], None)
    h = bdot(h, w3_ref) + b3_ref[...]
    y = bdot(h, wm_ref) + bm_ref[...]          # fused fc_mu | fc_logvar, (N, 256)
    d = mu_ref.shape[1]
    mu_ref[...] = y[:, :d]
    lv_ref[...] = y[:, d:]


def init_params(key, dim):
    """Same parameter structure/convention as the original module (conv weights stored
    (k, C_in, C_out); linear weights (in, out) with rows in PyTorch flatten(1) order)."""
    keys = iter(jax.random.split(key, 32))

    def nrm(shape, scale=0.1):
        return (scale * jax.random.normal(next(keys), shape)).astype(jnp.float32)

    p = {}
    p["c1_w"], p["c1_b"] = nrm((3, dim, 32)), nrm((32,))
    p["c1_g"], p["c1_beta"] = jnp.ones((32,), jnp.float32), jnp.zeros((32,), jnp.float32)
    p["c2_w"], p["c2_b"] = nrm((3, 32, 64)), nrm((64,))
    p["c2_g"], p["c2_beta"] = jnp.ones((64,), jnp.float32), jnp.zeros((64,), jnp.float32)
    p["c3_w"], p["c3_b"] = nrm((4, 64, 64)), nrm((64,))
    p["c3_g"], p["c3_beta"] = jnp.ones((64,), jnp.float32), jnp.zeros((64,), jnp.float32)
    p["c4_w"], p["c4_b"] = nrm((3, 64, 32)), nrm((32,))
    p["l1_w"], p["l1_b"] = nrm((1280, 512), 0.03), nrm((512,))
    p["l1_g"], p["l1_beta"] = jnp.ones((512,), jnp.float32), jnp.zeros((512,), jnp.float32)
    p["l2_w"], p["l2_b"] = nrm((512, 256), 0.05), nrm((256,))
    p["l2_g"], p["l2_beta"] = jnp.ones((256,), jnp.float32), jnp.zeros((256,), jnp.float32)
    p["l3_w"], p["l3_b"] = nrm((256, 128), 0.05), nrm((128,))
    p["mu_w"], p["mu_b"] = nrm((128, 128), 0.05), nrm((128,))
    p["lv_w"], p["lv_b"] = nrm((128, 128), 0.05), nrm((128,))
    return p


def prepare_params(p, length):
    """One-time, host-side weight repacking for the fused kernels."""
    t_out = ((length - 4) - 4) // 2 + 1 - 2      # conv stack output length (40 for length=90)
    c4_out = p["c4_w"].shape[2]                  # 32
    q = {}
    for name in ("c1", "c2", "c3", "c4"):
        q[name + "_w"] = p[name + "_w"]
        q[name + "_b"] = p[name + "_b"].reshape(1, -1)
    for name in ("c1", "c2", "c3"):
        q[name + "_g"] = p[name + "_g"].reshape(1, -1)
        q[name + "_bt"] = p[name + "_beta"].reshape(1, -1)
    # Fold PyTorch's channel-major flatten(1) into the l1 weight: new row order is time-major
    # (t*C + c) so the kernel-side flatten is a free row-major reshape.
    l1_w = p["l1_w"].reshape(c4_out, t_out, -1).transpose(1, 0, 2).reshape(t_out * c4_out, -1)
    q["l1_w"] = l1_w.astype(jnp.bfloat16)
    q["l1_b"] = p["l1_b"].reshape(1, -1)
    q["l1_g"], q["l1_bt"] = p["l1_g"].reshape(1, -1), p["l1_beta"].reshape(1, -1)
    q["l2_w"] = p["l2_w"].astype(jnp.bfloat16)
    q["l2_b"] = p["l2_b"].reshape(1, -1)
    q["l2_g"], q["l2_bt"] = p["l2_g"].reshape(1, -1), p["l2_beta"].reshape(1, -1)
    q["l3_w"] = p["l3_w"].astype(jnp.bfloat16)
    q["l3_b"] = p["l3_b"].reshape(1, -1)
    # Fuse fc_mu / fc_logvar into one (128, 256) matmul.
    q["mulv_w"] = jnp.concatenate([p["mu_w"], p["lv_w"]], axis=1).astype(jnp.bfloat16)
    q["mulv_b"] = jnp.concatenate([p["mu_b"], p["lv_b"]], axis=0).reshape(1, -1)
    return q


def pose_encoder_conv_forward(poses, q, variational_encoding=False, eps_key=None):
    x = poses.astype(jnp.float32)                 # (N, L, D) channels-last
    n, length, _ = x.shape
    l2 = length - 4
    t_out = (l2 - 4) // 2 + 1 - 2
    c_out = q["c4_w"].shape[2]

    conv_inputs = [x,
                   q["c1_w"], q["c1_b"], q["c1_g"], q["c1_bt"],
                   q["c2_w"], q["c2_b"], q["c2_g"], q["c2_bt"],
                   q["c3_w"], q["c3_b"], q["c3_g"], q["c3_bt"],
                   q["c4_w"], q["c4_b"]]
    conv_out = pl.pallas_call(
        _conv_stack_kernel,
        out_shape=jax.ShapeDtypeStruct((n, t_out, c_out), jnp.float32),
        grid=(1,),
        in_specs=[_full_spec(a.shape) for a in conv_inputs],
        out_specs=_full_spec((n, t_out, c_out)),
        scratch_shapes=[pltpu.VMEM((n * l2, q["c2_w"].shape[2]), jnp.float32)],
        compiler_params=_CPARAMS,
    )(*conv_inputs)

    # Free row-major reshape; PyTorch's (N, C, T) channel-major flatten order is already
    # absorbed into the permuted l1 weight rows.
    flat = conv_out.reshape(n, t_out * c_out)     # (N, 1280)

    mlp_inputs = [flat,
                  q["l1_w"], q["l1_b"], q["l1_g"], q["l1_bt"],
                  q["l2_w"], q["l2_b"], q["l2_g"], q["l2_bt"],
                  q["l3_w"], q["l3_b"],
                  q["mulv_w"], q["mulv_b"]]
    z_dim = q["mulv_w"].shape[1] // 2
    mu, logvar = pl.pallas_call(
        _mlp_kernel,
        out_shape=(jax.ShapeDtypeStruct((n, z_dim), jnp.float32),
                   jax.ShapeDtypeStruct((n, z_dim), jnp.float32)),
        grid=(1,),
        in_specs=[_full_spec(a.shape) for a in mlp_inputs],
        out_specs=(_full_spec((n, z_dim)), _full_spec((n, z_dim))),
        compiler_params=_CPARAMS,
    )(*mlp_inputs)

    if variational_encoding:
        std = jnp.exp(0.5 * logvar)
        eps = jax.random.normal(eps_key, std.shape, std.dtype)
        z = mu + eps * std
    else:
        z = mu
    return z, mu, logvar


if __name__ == "__main__":
    # length must satisfy 32 * conv_out_len == 1280 (Linear(1280, ...)): length = 90.
    N, LENGTH, DIM = 2, 90, 10
    key = jax.random.PRNGKey(0)
    kp, kx = jax.random.split(key)
    params = init_params(kp, DIM)
    kparams = prepare_params(params, LENGTH)
    poses = jax.random.normal(kx, (N, LENGTH, DIM), jnp.float32)

    z, mu, logvar = pose_encoder_conv_forward(poses, kparams, variational_encoding=False)
    jax.block_until_ready((z, mu, logvar))
    assert z.shape == (N, 128) and mu.shape == (N, 128) and logvar.shape == (N, 128)
    assert bool(jnp.all(jnp.isfinite(z))) and bool(jnp.all(jnp.isfinite(logvar)))
    print("KERNEL_OK")
</pallas_src>

<mosaic_0001>
module attributes {stable_mosaic.version = 11 : i64} {
  func.func @_conv_stack_kernel(%arg0: i32, %arg1: memref<2x90x10xf32, #tpu.memory_space<vmem>>, %arg2: memref<3x10x32xf32, #tpu.memory_space<vmem>>, %arg3: memref<1x32xf32, #tpu.memory_space<vmem>>, %arg4: memref<1x32xf32, #tpu.memory_space<vmem>>, %arg5: memref<1x32xf32, #tpu.memory_space<vmem>>, %arg6: memref<3x32x64xf32, #tpu.memory_space<vmem>>, %arg7: memref<1x64xf32, #tpu.memory_space<vmem>>, %arg8: memref<1x64xf32, #tpu.memory_space<vmem>>, %arg9: memref<1x64xf32, #tpu.memory_space<vmem>>, %arg10: memref<4x64x64xf32, #tpu.memory_space<vmem>>, %arg11: memref<1x64xf32, #tpu.memory_space<vmem>>, %arg12: memref<1x64xf32, #tpu.memory_space<vmem>>, %arg13: memref<1x64xf32, #tpu.memory_space<vmem>>, %arg14: memref<3x64x32xf32, #tpu.memory_space<vmem>>, %arg15: memref<1x32xf32, #tpu.memory_space<vmem>>, %arg16: memref<2x40x32xf32, #tpu.memory_space<vmem>>, %arg17: memref<172x64xf32, #tpu.memory_space<vmem>>) attributes {dimension_semantics = [#tpu.dimension_semantics<arbitrary>], iteration_bounds = array<i64: 1>, scalar_prefetch = 0 : i64, scratch_operands = 1 : i64, tpu.core_type = #tpu.core_type<tc>, window_params = [{pipeline_mode = #tpu.pipeline_mode<synchronous>, transform_indices = @transform_0, window_bounds = array<i64: 2, 90, 10>}, {pipeline_mode = #tpu.pipeline_mode<synchronous>, transform_indices = @transform_1, window_bounds = array<i64: 3, 10, 32>}, {pipeline_mode = #tpu.pipeline_mode<synchronous>, transform_indices = @transform_2, window_bounds = array<i64: 1, 32>}, {pipeline_mode = #tpu.pipeline_mode<synchronous>, transform_indices = @transform_3, window_bounds = array<i64: 1, 32>}, {pipeline_mode = #tpu.pipeline_mode<synchronous>, transform_indices = @transform_4, window_bounds = array<i64: 1, 32>}, {pipeline_mode = #tpu.pipeline_mode<synchronous>, transform_indices = @transform_5, window_bounds = array<i64: 3, 32, 64>}, {pipeline_mode = #tpu.pipeline_mode<synchronous>, transform_indices = @transform_6, window_bounds = array<i64: 1, 64>}, {pipeline_mode = #tpu.pipeline_mode<synchronous>, transform_indices = @transform_7, window_bounds = array<i64: 1, 64>}, {pipeline_mode = #tpu.pipeline_mode<synchronous>, transform_indices = @transform_8, window_bounds = array<i64: 1, 64>}, {pipeline_mode = #tpu.pipeline_mode<synchronous>, transform_indices = @transform_9, window_bounds = array<i64: 4, 64, 64>}, {pipeline_mode = #tpu.pipeline_mode<synchronous>, transform_indices = @transform_10, window_bounds = array<i64: 1, 64>}, {pipeline_mode = #tpu.pipeline_mode<synchronous>, transform_indices = @transform_11, window_bounds = array<i64: 1, 64>}, {pipeline_mode = #tpu.pipeline_mode<synchronous>, transform_indices = @transform_12, window_bounds = array<i64: 1, 64>}, {pipeline_mode = #tpu.pipeline_mode<synchronous>, transform_indices = @transform_13, window_bounds = array<i64: 3, 64, 32>}, {pipeline_mode = #tpu.pipeline_mode<synchronous>, transform_indices = @transform_14, window_bounds = array<i64: 1, 32>}, {pipeline_mode = #tpu.pipeline_mode<synchronous>, transform_indices = @transform_15, window_bounds = array<i64: 2, 40, 32>}]} {
    %c0 = arith.constant 0 : index
    %c0_0 = arith.constant 0 : index
    %c0_1 = arith.constant 0 : index
    %0 = vector.load %arg1[%c0, %c0_0, %c0_1] : memref<2x90x10xf32, #tpu.memory_space<vmem>>, vector<1x90x10xf32>
    %1 = vector.shape_cast %0 : vector<1x90x10xf32> to vector<90x10xf32>
    %c1 = arith.constant 1 : index
    %c0_2 = arith.constant 0 : index
    %c0_3 = arith.constant 0 : index
    %2 = vector.load %arg1[%c1, %c0_2, %c0_3] : memref<2x90x10xf32, #tpu.memory_space<vmem>>, vector<1x90x10xf32>
    %3 = vector.shape_cast %2 : vector<1x90x10xf32> to vector<90x10xf32>
    %c0_4 = arith.constant 0 : index
    %c0_5 = arith.constant 0 : index
    %4 = vector.load %arg3[%c0_4, %c0_5] : memref<1x32xf32, #tpu.memory_space<vmem>>, vector<1x32xf32>
    %5 = vector.extract_strided_slice %1 {offsets = [0, 0], sizes = [88, 10], strides = [1, 1]} : vector<90x10xf32> to vector<88x10xf32>
    %c0_6 = arith.constant 0 : index
    %c0_7 = arith.constant 0 : index
    %c0_8 = arith.constant 0 : index
    %6 = vector.load %arg2[%c0_6, %c0_7, %c0_8] : memref<3x10x32xf32, #tpu.memory_space<vmem>>, vector<1x10x32xf32>
    %7 = vector.shape_cast %6 : vector<1x10x32xf32> to vector<10x32xf32>
    %cst = arith.constant dense<0.000000e+00> : vector<88x32xf32>
    %8 = tpu.matmul %5, %7, %cst {dimension_numbers = #tpu.dot_dimension_numbers<[1], [0], [0], [1], [0, 0, 1, 1], [], []>} : vector<88x10xf32>, vector<10x32xf32>, vector<88x32xf32> -> vector<88x32xf32>
    %9 = vector.extract_strided_slice %1 {offsets = [1, 0], sizes = [88, 10], strides = [1, 1]} : vector<90x10xf32> to vector<88x10xf32>
    %c1_9 = arith.constant 1 : index
    %c0_10 = arith.constant 0 : index
    %c0_11 = arith.constant 0 : index
    %10 = vector.load %arg2[%c1_9, %c0_10, %c0_11] : memref<3x10x32xf32, #tpu.memory_space<vmem>>, vector<1x10x32xf32>
    %11 = vector.shape_cast %10 : vector<1x10x32xf32> to vector<10x32xf32>
    %cst_12 = arith.constant dense<0.000000e+00> : vector<88x32xf32>
    %12 = tpu.matmul %9, %11, %cst_12 {dimension_numbers = #tpu.dot_dimension_numbers<[1], [0], [0], [1], [0, 0, 1, 1], [], []>} : vector<88x10xf32>, vector<10x32xf32>, vector<88x32xf32> -> vector<88x32xf32>
    %13 = arith.addf %8, %12 : vector<88x32xf32>
    %14 = vector.extract_strided_slice %1 {offsets = [2, 0], sizes = [88, 10], strides = [1, 1]} : vector<90x10xf32> to vector<88x10xf32>
    %c2 = arith.constant 2 : index
    %c0_13 = arith.constant 0 : index
    %c0_14 = arith.constant 0 : index
    %15 = vector.load %arg2[%c2, %c0_13, %c0_14] : memref<3x10x32xf32, #tpu.memory_space<vmem>>, vector<1x10x32xf32>
    %16 = vector.shape_cast %15 : vector<1x10x32xf32> to vector<10x32xf32>
    %cst_15 = arith.constant dense<0.000000e+00> : vector<88x32xf32>
    %17 = tpu.matmul %14, %16, %cst_15 {dimension_numbers = #tpu.dot_dimension_numbers<[1], [0], [0], [1], [0, 0, 1, 1], [], []>} : vector<88x10xf32>, vector<10x32xf32>, vector<88x32xf32> -> vector<88x32xf32>
    %18 = arith.addf %13, %17 : vector<88x32xf32>
    %19 = vector.broadcast %4 : vector<1x32xf32> to vector<88x32xf32>
    %20 = arith.addf %18, %19 : vector<88x32xf32>
    %21 = vector.extract_strided_slice %3 {offsets = [0, 0], sizes = [88, 10], strides = [1, 1]} : vector<90x10xf32> to vector<88x10xf32>
    %c0_16 = arith.constant 0 : index
    %c0_17 = arith.constant 0 : index
    %c0_18 = arith.constant 0 : index
    %22 = vector.load %arg2[%c0_16, %c0_17, %c0_18] : memref<3x10x32xf32, #tpu.memory_space<vmem>>, vector<1x10x32xf32>
    %23 = vector.shape_cast %22 : vector<1x10x32xf32> to vector<10x32xf32>
    %cst_19 = arith.constant dense<0.000000e+00> : vector<88x32xf32>
    %24 = tpu.matmul %21, %23, %cst_19 {dimension_numbers = #tpu.dot_dimension_numbers<[1], [0], [0], [1], [0, 0, 1, 1], [], []>} : vector<88x10xf32>, vector<10x32xf32>, vector<88x32xf32> -> vector<88x32xf32>
    %25 = vector.extract_strided_slice %3 {offsets = [1, 0], sizes = [88, 10], strides = [1, 1]} : vector<90x10xf32> to vector<88x10xf32>
    %c1_20 = arith.constant 1 : index
    %c0_21 = arith.constant 0 : index
    %c0_22 = arith.constant 0 : index
    %26 = vector.load %arg2[%c1_20, %c0_21, %c0_22] : memref<3x10x32xf32, #tpu.memory_space<vmem>>, vector<1x10x32xf32>
    %27 = vector.shape_cast %26 : vector<1x10x32xf32> to vector<10x32xf32>
    %cst_23 = arith.constant dense<0.000000e+00> : vector<88x32xf32>
    %28 = tpu.matmul %25, %27, %cst_23 {dimension_numbers = #tpu.dot_dimension_numbers<[1], [0], [0], [1], [0, 0, 1, 1], [], []>} : vector<88x10xf32>, vector<10x32xf32>, vector<88x32xf32> -> vector<88x32xf32>
    %29 = arith.addf %24, %28 : vector<88x32xf32>
    %30 = vector.extract_strided_slice %3 {offsets = [2, 0], sizes = [88, 10], strides = [1, 1]} : vector<90x10xf32> to vector<88x10xf32>
    %c2_24 = arith.constant 2 : index
    %c0_25 = arith.constant 0 : index
    %c0_26 = arith.constant 0 : index
    %31 = vector.load %arg2[%c2_24, %c0_25, %c0_26] : memref<3x10x32xf32, #tpu.memory_space<vmem>>, vector<1x10x32xf32>
    %32 = vector.shape_cast %31 : vector<1x10x32xf32> to vector<10x32xf32>
    %cst_27 = arith.constant dense<0.000000e+00> : vector<88x32xf32>
    %33 = tpu.matmul %30, %32, %cst_27 {dimension_numbers = #tpu.dot_dimension_numbers<[1], [0], [0], [1], [0, 0, 1, 1], [], []>} : vector<88x10xf32>, vector<10x32xf32>, vector<88x32xf32> -> vector<88x32xf32>
    %34 = arith.addf %29, %33 : vector<88x32xf32>
    %35 = vector.broadcast %4 : vector<1x32xf32> to vector<88x32xf32>
    %36 = arith.addf %34, %35 : vector<88x32xf32>
    %c0_28 = arith.constant 0 : index
    %c0_29 = arith.constant 0 : index
    %37 = vector.load %arg4[%c0_28, %c0_29] : memref<1x32xf32, #tpu.memory_space<vmem>>, vector<1x32xf32>
    %c0_30 = arith.constant 0 : index
    %c0_31 = arith.constant 0 : index
    %38 = vector.load %arg5[%c0_30, %c0_31] : memref<1x32xf32, #tpu.memory_space<vmem>>, vector<1x32xf32>
    %cst_32 = arith.constant dense<0.000000e+00> : vector<32xf32>
    %39 = vector.multi_reduction <add>, %20, %cst_32 [0] : vector<88x32xf32> to vector<32xf32>
    %40 = vector.shape_cast %39 : vector<32xf32> to vector<1x32xf32>
    %cst_33 = arith.constant dense<0.000000e+00> : vector<32xf32>
    %41 = vector.multi_reduction <add>, %36, %cst_33 [0] : vector<88x32xf32> to vector<32xf32>
    %42 = vector.shape_cast %41 : vector<32xf32> to vector<1x32xf32>
    %43 = arith.addf %40, %42 : vector<1x32xf32>
    %cst_34 = arith.constant 1.760000e+02 : f32
    %44 = vector.broadcast %cst_34 : f32 to vector<1x32xf32>
    %45 = arith.divf %43, %44 : vector<1x32xf32>
    %46 = vector.broadcast %45 : vector<1x32xf32> to vector<88x32xf32>
    %47 = arith.subf %20, %46 : vector<88x32xf32>
    %48 = arith.mulf %47, %47 : vector<88x32xf32>
    %cst_35 = arith.constant dense<0.000000e+00> : vector<32xf32>
    %49 = vector.multi_reduction <add>, %48, %cst_35 [0] : vector<88x32xf32> to vector<32xf32>
    %50 = vector.shape_cast %49 : vector<32xf32> to vector<1x32xf32>
    %51 = vector.broadcast %45 : vector<1x32xf32> to vector<88x32xf32>
    %52 = arith.subf %36, %51 : vector<88x32xf32>
    %53 = arith.mulf %52, %52 : vector<88x32xf32>
    %cst_36 = arith.constant dense<0.000000e+00> : vector<32xf32>
    %54 = vector.multi_reduction <add>, %53, %cst_36 [0] : vector<88x32xf32> to vector<32xf32>
    %55 = vector.shape_cast %54 : vector<32xf32> to vector<1x32xf32>
    %56 = arith.addf %50, %55 : vector<1x32xf32>
    %cst_37 = arith.constant 1.760000e+02 : f32
    %57 = vector.broadcast %cst_37 : f32 to vector<1x32xf32>
    %58 = arith.divf %56, %57 : vector<1x32xf32>
    %cst_38 = arith.constant 9.99999974E-6 : f32
    %59 = vector.broadcast %cst_38 : f32 to vector<1x32xf32>
    %60 = arith.addf %58, %59 : vector<1x32xf32>
    %61 = math.rsqrt %60 : vector<1x32xf32>
    %62 = vector.broadcast %45 : vector<1x32xf32> to vector<88x32xf32>
    %63 = arith.subf %20, %62 : vector<88x32xf32>
    %64 = vector.broadcast %61 : vector<1x32xf32> to vector<88x32xf32>
    %65 = arith.mulf %63, %64 : vector<88x32xf32>
    %66 = vector.broadcast %37 : vector<1x32xf32> to vector<88x32xf32>
    %67 = arith.mulf %65, %66 : vector<88x32xf32>
    %68 = vector.broadcast %38 : vector<1x32xf32> to vector<88x32xf32>
    %69 = arith.addf %67, %68 : vector<88x32xf32>
    %70 = vector.broadcast %45 : vector<1x32xf32> to vector<88x32xf32>
    %71 = arith.subf %36, %70 : vector<88x32xf32>
    %72 = vector.broadcast %61 : vector<1x32xf32> to vector<88x32xf32>
    %73 = arith.mulf %71, %72 : vector<88x32xf32>
    %74 = vector.broadcast %37 : vector<1x32xf32> to vector<88x32xf32>
    %75 = arith.mulf %73, %74 : vector<88x32xf32>
    %76 = vector.broadcast %38 : vector<1x32xf32> to vector<88x32xf32>
    %77 = arith.addf %75, %76 : vector<88x32xf32>
    %cst_39 = arith.constant 0.000000e+00 : f32
    %78 = vector.broadcast %cst_39 : f32 to vector<88x32xf32>
    %79 = arith.cmpf oge, %69, %78 : vector<88x32xf32>
    %cst_40 = arith.constant 2.000000e-01 : f32
    %80 = vector.broadcast %cst_40 : f32 to vector<88x32xf32>
    %81 = arith.mulf %80, %69 : vector<88x32xf32>
    %82 = arith.select %79, %69, %81 : vector<88x32xi1>, vector<88x32xf32>
    %cst_41 = arith.constant 0.000000e+00 : f32
    %83 = vector.broadcast %cst_41 : f32 to vector<88x32xf32>
    %84 = arith.cmpf oge, %77, %83 : vector<88x32xf32>
    %cst_42 = arith.constant 2.000000e-01 : f32
    %85 = vector.broadcast %cst_42 : f32 to vector<88x32xf32>
    %86 = arith.mulf %85, %77 : vector<88x32xf32>
    %87 = arith.select %84, %77, %86 : vector<88x32xi1>, vector<88x32xf32>
    %c0_43 = arith.constant 0 : index
    %c0_44 = arith.constant 0 : index
    %88 = vector.load %arg7[%c0_43, %c0_44] : memref<1x64xf32, #tpu.memory_space<vmem>>, vector<1x64xf32>
    %89 = vector.extract_strided_slice %82 {offsets = [0, 0], sizes = [86, 32], strides = [1, 1]} : vector<88x32xf32> to vector<86x32xf32>
    %c0_45 = arith.constant 0 : index
    %c0_46 = arith.constant 0 : index
    %c0_47 = arith.constant 0 : index
    %90 = vector.load %arg6[%c0_45, %c0_46, %c0_47] : memref<3x32x64xf32, #tpu.memory_space<vmem>>, vector<1x32x64xf32>
    %91 = vector.shape_cast %90 : vector<1x32x64xf32> to vector<32x64xf32>
    %cst_48 = arith.constant dense<0.000000e+00> : vector<86x64xf32>
    %92 = tpu.matmul %89, %91, %cst_48 {dimension_numbers = #tpu.dot_dimension_numbers<[1], [0], [0], [1], [0, 0, 1, 1], [], []>} : vector<86x32xf32>, vector<32x64xf32>, vector<86x64xf32> -> vector<86x64xf32>
    %93 = vector.extract_strided_slice %82 {offsets = [1, 0], sizes = [86, 32], strides = [1, 1]} : vector<88x32xf32> to vector<86x32xf32>
    %c1_49 = arith.constant 1 : index
    %c0_50 = arith.constant 0 : index
    %c0_51 = arith.constant 0 : index
    %94 = vector.load %arg6[%c1_49, %c0_50, %c0_51] : memref<3x32x64xf32, #tpu.memory_space<vmem>>, vector<1x32x64xf32>
    %95 = vector.shape_cast %94 : vector<1x32x64xf32> to vector<32x64xf32>
    %cst_52 = arith.constant dense<0.000000e+00> : vector<86x64xf32>
    %96 = tpu.matmul %93, %95, %cst_52 {dimension_numbers = #tpu.dot_dimension_numbers<[1], [0], [0], [1], [0, 0, 1, 1], [], []>} : vector<86x32xf32>, vector<32x64xf32>, vector<86x64xf32> -> vector<86x64xf32>
    %97 = arith.addf %92, %96 : vector<86x64xf32>
    %98 = vector.extract_strided_slice %82 {offsets = [2, 0], sizes = [86, 32], strides = [1, 1]} : vector<88x32xf32> to vector<86x32xf32>
    %c2_53 = arith.constant 2 : index
    %c0_54 = arith.constant 0 : index
    %c0_55 = arith.constant 0 : index
    %99 = vector.load %arg6[%c2_53, %c0_54, %c0_55] : memref<3x32x64xf32, #tpu.memory_space<vmem>>, vector<1x32x64xf32>
    %100 = vector.shape_cast %99 : vector<1x32x64xf32> to vector<32x64xf32>
    %cst_56 = arith.constant dense<0.000000e+00> : vector<86x64xf32>
    %101 = tpu.matmul %98, %100, %cst_56 {dimension_numbers = #tpu.dot_dimension_numbers<[1], [0], [0], [1], [0, 0, 1, 1], [], []>} : vector<86x32xf32>, vector<32x64xf32>, vector<86x64xf32> -> vector<86x64xf32>
    %102 = arith.addf %97, %101 : vector<86x64xf32>
    %103 = vector.broadcast %88 : vector<1x64xf32> to vector<86x64xf32>
    %104 = arith.addf %102, %103 : vector<86x64xf32>
    %105 = vector.extract_strided_slice %87 {offsets = [0, 0], sizes = [86, 32], strides = [1, 1]} : vector<88x32xf32> to vector<86x32xf32>
    %c0_57 = arith.constant 0 : index
    %c0_58 = arith.constant 0 : index
    %c0_59 = arith.constant 0 : index
    %106 = vector.load %arg6[%c0_57, %c0_58, %c0_59] : memref<3x32x64xf32, #tpu.memory_space<vmem>>, vector<1x32x64xf32>
    %107 = vector.shape_cast %106 : vector<1x32x64xf32> to vector<32x64xf32>
    %cst_60 = arith.constant dense<0.000000e+00> : vector<86x64xf32>
    %108 = tpu.matmul %105, %107, %cst_60 {dimension_numbers = #tpu.dot_dimension_numbers<[1], [0], [0], [1], [0, 0, 1, 1], [], []>} : vector<86x32xf32>, vector<32x64xf32>, vector<86x64xf32> -> vector<86x64xf32>
    %109 = vector.extract_strided_slice %87 {offsets = [1, 0], sizes = [86, 32], strides = [1, 1]} : vector<88x32xf32> to vector<86x32xf32>
    %c1_61 = arith.constant 1 : index
    %c0_62 = arith.constant 0 : index
    %c0_63 = arith.constant 0 : index
    %110 = vector.load %arg6[%c1_61, %c0_62, %c0_63] : memref<3x32x64xf32, #tpu.memory_space<vmem>>, vector<1x32x64xf32>
    %111 = vector.shape_cast %110 : vector<1x32x64xf32> to vector<32x64xf32>
    %cst_64 = arith.constant dense<0.000000e+00> : vector<86x64xf32>
    %112 = tpu.matmul %109, %111, %cst_64 {dimension_numbers = #tpu.dot_dimension_numbers<[1], [0], [0], [1], [0, 0, 1, 1], [], []>} : vector<86x32xf32>, vector<32x64xf32>, vector<86x64xf32> -> vector<86x64xf32>
    %113 = arith.addf %108, %112 : vector<86x64xf32>
    %114 = vector.extract_strided_slice %87 {offsets = [2, 0], sizes = [86, 32], strides = [1, 1]} : vector<88x32xf32> to vector<86x32xf32>
    %c2_65 = arith.constant 2 : index
    %c0_66 = arith.constant 0 : index
    %c0_67 = arith.constant 0 : index
    %115 = vector.load %arg6[%c2_65, %c0_66, %c0_67] : memref<3x32x64xf32, #tpu.memory_space<vmem>>, vector<1x32x64xf32>
    %116 = vector.shape_cast %115 : vector<1x32x64xf32> to vector<32x64xf32>
    %cst_68 = arith.constant dense<0.000000e+00> : vector<86x64xf32>
    %117 = tpu.matmul %114, %116, %cst_68 {dimension_numbers = #tpu.dot_dimension_numbers<[1], [0], [0], [1], [0, 0, 1, 1], [], []>} : vector<86x32xf32>, vector<32x64xf32>, vector<86x64xf32> -> vector<86x64xf32>
    %118 = arith.addf %113, %117 : vector<86x64xf32>
    %119 = vector.broadcast %88 : vector<1x64xf32> to vector<86x64xf32>
    %120 = arith.addf %118, %119 : vector<86x64xf32>
    %c0_69 = arith.constant 0 : index
    %c0_70 = arith.constant 0 : index
    %121 = vector.load %arg8[%c0_69, %c0_70] : memref<1x64xf32, #tpu.memory_space<vmem>>, vector<1x64xf32>
    %c0_71 = arith.constant 0 : index
    %c0_72 = arith.constant 0 : index
    %122 = vector.load %arg9[%c0_71, %c0_72] : memref<1x64xf32, #tpu.memory_space<vmem>>, vector<1x64xf32>
    %cst_73 = arith.constant dense<0.000000e+00> : vector<64xf32>
    %123 = vector.multi_reduction <add>, %104, %cst_73 [0] : vector<86x64xf32> to vector<64xf32>
    %124 = vector.shape_cast %123 : vector<64xf32> to vector<1x64xf32>
    %cst_74 = arith.constant dense<0.000000e+00> : vector<64xf32>
    %125 = vector.multi_reduction <add>, %120, %cst_74 [0] : vector<86x64xf32> to vector<64xf32>
    %126 = vector.shape_cast %125 : vector<64xf32> to vector<1x64xf32>
    %127 = arith.addf %124, %126 : vector<1x64xf32>
    %cst_75 = arith.constant 1.720000e+02 : f32
    %128 = vector.broadcast %cst_75 : f32 to vector<1x64xf32>
    %129 = arith.divf %127, %128 : vector<1x64xf32>
    %130 = vector.broadcast %129 : vector<1x64xf32> to vector<86x64xf32>
    %131 = arith.subf %104, %130 : vector<86x64xf32>
    %132 = arith.mulf %131, %131 : vector<86x64xf32>
    %cst_76 = arith.constant dense<0.000000e+00> : vector<64xf32>
    %133 = vector.multi_reduction <add>, %132, %cst_76 [0] : vector<86x64xf32> to vector<64xf32>
    %134 = vector.shape_cast %133 : vector<64xf32> to vector<1x64xf32>
    %135 = vector.broadcast %129 : vector<1x64xf32> to vector<86x64xf32>
    %136 = arith.subf %120, %135 : vector<86x64xf32>
    %137 = arith.mulf %136, %136 : vector<86x64xf32>
    %cst_77 = arith.constant dense<0.000000e+00> : vector<64xf32>
    %138 = vector.multi_reduction <add>, %137, %cst_77 [0] : vector<86x64xf32> to vector<64xf32>
    %139 = vector.shape_cast %138 : vector<64xf32> to vector<1x64xf32>
    %140 = arith.addf %134, %139 : vector<1x64xf32>
    %cst_78 = arith.constant 1.720000e+02 : f32
    %141 = vector.broadcast %cst_78 : f32 to vector<1x64xf32>
    %142 = arith.divf %140, %141 : vector<1x64xf32>
    %cst_79 = arith.constant 9.99999974E-6 : f32
    %143 = vector.broadcast %cst_79 : f32 to vector<1x64xf32>
    %144 = arith.addf %142, %143 : vector<1x64xf32>
    %145 = math.rsqrt %144 : vector<1x64xf32>
    %146 = vector.broadcast %129 : vector<1x64xf32> to vector<86x64xf32>
    %147 = arith.subf %104, %146 : vector<86x64xf32>
    %148 = vector.broadcast %145 : vector<1x64xf32> to vector<86x64xf32>
    %149 = arith.mulf %147, %148 : vector<86x64xf32>
    %150 = vector.broadcast %121 : vector<1x64xf32> to vector<86x64xf32>
    %151 = arith.mulf %149, %150 : vector<86x64xf32>
    %152 = vector.broadcast %122 : vector<1x64xf32> to vector<86x64xf32>
    %153 = arith.addf %151, %152 : vector<86x64xf32>
    %154 = vector.broadcast %129 : vector<1x64xf32> to vector<86x64xf32>
    %155 = arith.subf %120, %154 : vector<86x64xf32>
    %156 = vector.broadcast %145 : vector<1x64xf32> to vector<86x64xf32>
    %157 = arith.mulf %155, %156 : vector<86x64xf32>
    %158 = vector.broadcast %121 : vector<1x64xf32> to vector<86x64xf32>
    %159 = arith.mulf %157, %158 : vector<86x64xf32>
    %160 = vector.broadcast %122 : vector<1x64xf32> to vector<86x64xf32>
    %161 = arith.addf %159, %160 : vector<86x64xf32>
    %cst_80 = arith.constant 0.000000e+00 : f32
    %162 = vector.broadcast %cst_80 : f32 to vector<86x64xf32>
    %163 = arith.cmpf oge, %153, %162 : vector<86x64xf32>
    %cst_81 = arith.constant 2.000000e-01 : f32
    %164 = vector.broadcast %cst_81 : f32 to vector<86x64xf32>
    %165 = arith.mulf %164, %153 : vector<86x64xf32>
    %166 = arith.select %163, %153, %165 : vector<86x64xi1>, vector<86x64xf32>
    %cst_82 = arith.constant 0.000000e+00 : f32
    %167 = vector.broadcast %cst_82 : f32 to vector<86x64xf32>
    %168 = arith.cmpf oge, %161, %167 : vector<86x64xf32>
    %cst_83 = arith.constant 2.000000e-01 : f32
    %169 = vector.broadcast %cst_83 : f32 to vector<86x64xf32>
    %170 = arith.mulf %169, %161 : vector<86x64xf32>
    %171 = arith.select %168, %161, %170 : vector<86x64xi1>, vector<86x64xf32>
    %c0_84 = arith.constant 0 : index
    %c0_85 = arith.constant 0 : index
    %172 = vector.load %arg17[%c0_84, %c0_85] : memref<172x64xf32, #tpu.memory_space<vmem>>, vector<86x64xf32>
    tpu.vector_store %arg17[%c0_84, %c0_85], %166 {strides = array<i32>} : memref<172x64xf32, #tpu.memory_space<vmem>>, vector<86x64xf32>,
    %c86 = arith.constant 86 : index
    %c0_86 = arith.constant 0 : index
    %173 = vector.load %arg17[%c86, %c0_86] : memref<172x64xf32, #tpu.memory_space<vmem>>, vector<86x64xf32>
    tpu.vector_store %arg17[%c86, %c0_86], %171 {strides = array<i32>} : memref<172x64xf32, #tpu.memory_space<vmem>>, vector<86x64xf32>,
    %c0_87 = arith.constant 0 : index
    %c0_88 = arith.constant 0 : index
    %174 = vector.load %arg11[%c0_87, %c0_88] : memref<1x64xf32, #tpu.memory_space<vmem>>, vector<1x64xf32>
    %c0_89 = arith.constant 0 : index
    %c0_90 = arith.constant 0 : index
    %175 = tpu.strided_load %arg17[%c0_89, %c0_90] {strides = array<i32: 2, 1>} : memref<172x64xf32, #tpu.memory_space<vmem>>, vector<43x64xf32>
    %c1_91 = arith.constant 1 : index
    %c0_92 = arith.constant 0 : index
    %176 = tpu.strided_load %arg17[%c1_91, %c0_92] {strides = array<i32: 2, 1>} : memref<172x64xf32, #tpu.memory_space<vmem>>, vector<43x64xf32>
    %177 = vector.extract_strided_slice %175 {offsets = [0, 0], sizes = [42, 64], strides = [1, 1]} : vector<43x64xf32> to vector<42x64xf32>
    %178 = vector.extract_strided_slice %176 {offsets = [0, 0], sizes = [42, 64], strides = [1, 1]} : vector<43x64xf32> to vector<42x64xf32>
    %179 = vector.extract_strided_slice %175 {offsets = [1, 0], sizes = [42, 64], strides = [1, 1]} : vector<43x64xf32> to vector<42x64xf32>
    %180 = vector.extract_strided_slice %176 {offsets = [1, 0], sizes = [42, 64], strides = [1, 1]} : vector<43x64xf32> to vector<42x64xf32>
    %c0_93 = arith.constant 0 : index
    %c0_94 = arith.constant 0 : index
    %c0_95 = arith.constant 0 : index
    %181 = vector.load %arg10[%c0_93, %c0_94, %c0_95] : memref<4x64x64xf32, #tpu.memory_space<vmem>>, vector<1x64x64xf32>
    %182 = vector.shape_cast %181 : vector<1x64x64xf32> to vector<64x64xf32>
    %cst_96 = arith.constant dense<0.000000e+00> : vector<42x64xf32>
    %183 = tpu.matmul %177, %182, %cst_96 {dimension_numbers = #tpu.dot_dimension_numbers<[1], [0], [0], [1], [0, 0, 1, 1], [], []>} : vector<42x64xf32>, vector<64x64xf32>, vector<42x64xf32> -> vector<42x64xf32>
    %c1_97 = arith.constant 1 : index
    %c0_98 = arith.constant 0 : index
    %c0_99 = arith.constant 0 : index
    %184 = vector.load %arg10[%c1_97, %c0_98, %c0_99] : memref<4x64x64xf32, #tpu.memory_space<vmem>>, vector<1x64x64xf32>
    %185 = vector.shape_cast %184 : vector<1x64x64xf32> to vector<64x64xf32>
    %cst_100 = arith.constant dense<0.000000e+00> : vector<42x64xf32>
    %186 = tpu.matmul %178, %185, %cst_100 {dimension_numbers = #tpu.dot_dimension_numbers<[1], [0], [0], [1], [0, 0, 1, 1], [], []>} : vector<42x64xf32>, vector<64x64xf32>, vector<42x64xf32> -> vector<42x64xf32>
    %187 = arith.addf %183, %186 : vector<42x64xf32>
    %c2_101 = arith.constant 2 : index
    %c0_102 = arith.constant 0 : index
    %c0_103 = arith.constant 0 : index
    %188 = vector.load %arg10[%c2_101, %c0_102, %c0_103] : memref<4x64x64xf32, #tpu.memory_space<vmem>>, vector<1x64x64xf32>
    %189 = vector.shape_cast %188 : vector<1x64x64xf32> to vector<64x64xf32>
    %cst_104 = arith.constant dense<0.000000e+00> : vector<42x64xf32>
    %190 = tpu.matmul %179, %189, %cst_104 {dimension_numbers = #tpu.dot_dimension_numbers<[1], [0], [0], [1], [0, 0, 1, 1], [], []>} : vector<42x64xf32>, vector<64x64xf32>, vector<42x64xf32> -> vector<42x64xf32>
    %191 = arith.addf %187, %190 : vector<42x64xf32>
    %c3 = arith.constant 3 : index
    %c0_105 = arith.constant 0 : index
    %c0_106 = arith.constant 0 : index
    %192 = vector.load %arg10[%c3, %c0_105, %c0_106] : memref<4x64x64xf32, #tpu.memory_space<vmem>>, vector<1x64x64xf32>
    %193 = vector.shape_cast %192 : vector<1x64x64xf32> to vector<64x64xf32>
    %cst_107 = arith.constant dense<0.000000e+00> : vector<42x64xf32>
    %194 = tpu.matmul %180, %193, %cst_107 {dimension_numbers = #tpu.dot_dimension_numbers<[1], [0], [0], [1], [0, 0, 1, 1], [], []>} : vector<42x64xf32>, vector<64x64xf32>, vector<42x64xf32> -> vector<42x64xf32>
    %195 = arith.addf %191, %194 : vector<42x64xf32>
    %196 = vector.broadcast %174 : vector<1x64xf32> to vector<42x64xf32>
    %197 = arith.addf %195, %196 : vector<42x64xf32>
    %c86_108 = arith.constant 86 : index
    %c0_109 = arith.constant 0 : index
    %198 = tpu.strided_load %arg17[%c86_108, %c0_109] {strides = array<i32: 2, 1>} : memref<172x64xf32, #tpu.memory_space<vmem>>, vector<43x64xf32>
    %c87 = arith.constant 87 : index
    %c0_110 = arith.constant 0 : index
    %199 = tpu.strided_load %arg17[%c87, %c0_110] {strides = array<i32: 2, 1>} : memref<172x64xf32, #tpu.memory_space<vmem>>, vector<43x64xf32>
    %200 = vector.extract_strided_slice %198 {offsets = [0, 0], sizes = [42, 64], strides = [1, 1]} : vector<43x64xf32> to vector<42x64xf32>
    %201 = vector.extract_strided_slice %199 {offsets = [0, 0], sizes = [42, 64], strides = [1, 1]} : vector<43x64xf32> to vector<42x64xf32>
    %202 = vector.extract_strided_slice %198 {offsets = [1, 0], sizes = [42, 64], strides = [1, 1]} : vector<43x64xf32> to vector<42x64xf32>
    %203 = vector.extract_strided_slice %199 {offsets = [1, 0], sizes = [42, 64], strides = [1, 1]} : vector<43x64xf32> to vector<42x64xf32>
    %c0_111 = arith.constant 0 : index
    %c0_112 = arith.constant 0 : index
    %c0_113 = arith.constant 0 : index
    %204 = vector.load %arg10[%c0_111, %c0_112, %c0_113] : memref<4x64x64xf32, #tpu.memory_space<vmem>>, vector<1x64x64xf32>
    %205 = vector.shape_cast %204 : vector<1x64x64xf32> to vector<64x64xf32>
    %cst_114 = arith.constant dense<0.000000e+00> : vector<42x64xf32>
    %206 = tpu.matmul %200, %205, %cst_114 {dimension_numbers = #tpu.dot_dimension_numbers<[1], [0], [0], [1], [0, 0, 1, 1], [], []>} : vector<42x64xf32>, vector<64x64xf32>, vector<42x64xf32> -> vector<42x64xf32>
    %c1_115 = arith.constant 1 : index
    %c0_116 = arith.constant 0 : index
    %c0_117 = arith.constant 0 : index
    %207 = vector.load %arg10[%c1_115, %c0_116, %c0_117] : memref<4x64x64xf32, #tpu.memory_space<vmem>>, vector<1x64x64xf32>
    %208 = vector.shape_cast %207 : vector<1x64x64xf32> to vector<64x64xf32>
    %cst_118 = arith.constant dense<0.000000e+00> : vector<42x64xf32>
    %209 = tpu.matmul %201, %208, %cst_118 {dimension_numbers = #tpu.dot_dimension_numbers<[1], [0], [0], [1], [0, 0, 1, 1], [], []>} : vector<42x64xf32>, vector<64x64xf32>, vector<42x64xf32> -> vector<42x64xf32>
    %210 = arith.addf %206, %209 : vector<42x64xf32>
    %c2_119 = arith.constant 2 : index
    %c0_120 = arith.constant 0 : index
    %c0_121 = arith.constant 0 : index
    %211 = vector.load %arg10[%c2_119, %c0_120, %c0_121] : memref<4x64x64xf32, #tpu.memory_space<vmem>>, vector<1x64x64xf32>
    %212 = vector.shape_cast %211 : vector<1x64x64xf32> to vector<64x64xf32>
    %cst_122 = arith.constant dense<0.000000e+00> : vector<42x64xf32>
    %213 = tpu.matmul %202, %212, %cst_122 {dimension_numbers = #tpu.dot_dimension_numbers<[1], [0], [0], [1], [0, 0, 1, 1], [], []>} : vector<42x64xf32>, vector<64x64xf32>, vector<42x64xf32> -> vector<42x64xf32>
    %214 = arith.addf %210, %213 : vector<42x64xf32>
    %c3_123 = arith.constant 3 : index
    %c0_124 = arith.constant 0 : index
    %c0_125 = arith.constant 0 : index
    %215 = vector.load %arg10[%c3_123, %c0_124, %c0_125] : memref<4x64x64xf32, #tpu.memory_space<vmem>>, vector<1x64x64xf32>
    %216 = vector.shape_cast %215 : vector<1x64x64xf32> to vector<64x64xf32>
    %cst_126 = arith.constant dense<0.000000e+00> : vector<42x64xf32>
    %217 = tpu.matmul %203, %216, %cst_126 {dimension_numbers = #tpu.dot_dimension_numbers<[1], [0], [0], [1], [0, 0, 1, 1], [], []>} : vector<42x64xf32>, vector<64x64xf32>, vector<42x64xf32> -> vector<42x64xf32>
    %218 = arith.addf %214, %217 : vector<42x64xf32>
    %219 = vector.broadcast %174 : vector<1x64xf32> to vector<42x64xf32>
    %220 = arith.addf %218, %219 : vector<42x64xf32>
    %c0_127 = arith.constant 0 : index
    %c0_128 = arith.constant 0 : index
    %221 = vector.load %arg12[%c0_127, %c0_128] : memref<1x64xf32, #tpu.memory_space<vmem>>, vector<1x64xf32>
    %c0_129 = arith.constant 0 : index
    %c0_130 = arith.constant 0 : index
    %222 = vector.load %arg13[%c0_129, %c0_130] : memref<1x64xf32, #tpu.memory_space<vmem>>, vector<1x64xf32>
    %cst_131 = arith.constant dense<0.000000e+00> : vector<64xf32>
    %223 = vector.multi_reduction <add>, %197, %cst_131 [0] : vector<42x64xf32> to vector<64xf32>
    %224 = vector.shape_cast %223 : vector<64xf32> to vector<1x64xf32>
    %cst_132 = arith.constant dense<0.000000e+00> : vector<64xf32>
    %225 = vector.multi_reduction <add>, %220, %cst_132 [0] : vector<42x64xf32> to vector<64xf32>
    %226 = vector.shape_cast %225 : vector<64xf32> to vector<1x64xf32>
    %227 = arith.addf %224, %226 : vector<1x64xf32>
    %cst_133 = arith.constant 8.400000e+01 : f32
    %228 = vector.broadcast %cst_133 : f32 to vector<1x64xf32>
    %229 = arith.divf %227, %228 : vector<1x64xf32>
    %230 = vector.broadcast %229 : vector<1x64xf32> to vector<42x64xf32>
    %231 = arith.subf %197, %230 : vector<42x64xf32>
    %232 = arith.mulf %231, %231 : vector<42x64xf32>
    %cst_134 = arith.constant dense<0.000000e+00> : vector<64xf32>
    %233 = vector.multi_reduction <add>, %232, %cst_134 [0] : vector<42x64xf32> to vector<64xf32>
    %234 = vector.shape_cast %233 : vector<64xf32> to vector<1x64xf32>
    %235 = vector.broadcast %229 : vector<1x64xf32> to vector<42x64xf32>
    %236 = arith.subf %220, %235 : vector<42x64xf32>
    %237 = arith.mulf %236, %236 : vector<42x64xf32>
    %cst_135 = arith.constant dense<0.000000e+00> : vector<64xf32>
    %238 = vector.multi_reduction <add>, %237, %cst_135 [0] : vector<42x64xf32> to vector<64xf32>
    %239 = vector.shape_cast %238 : vector<64xf32> to vector<1x64xf32>
    %240 = arith.addf %234, %239 : vector<1x64xf32>
    %cst_136 = arith.constant 8.400000e+01 : f32
    %241 = vector.broadcast %cst_136 : f32 to vector<1x64xf32>
    %242 = arith.divf %240, %241 : vector<1x64xf32>
    %cst_137 = arith.constant 9.99999974E-6 : f32
    %243 = vector.broadcast %cst_137 : f32 to vector<1x64xf32>
    %244 = arith.addf %242, %243 : vector<1x64xf32>
    %245 = math.rsqrt %244 : vector<1x64xf32>
    %246 = vector.broadcast %229 : vector<1x64xf32> to vector<42x64xf32>
    %247 = arith.subf %197, %246 : vector<42x64xf32>
    %248 = vector.broadcast %245 : vector<1x64xf32> to vector<42x64xf32>
    %249 = arith.mulf %247, %248 : vector<42x64xf32>
    %250 = vector.broadcast %221 : vector<1x64xf32> to vector<42x64xf32>
    %251 = arith.mulf %249, %250 : vector<42x64xf32>
    %252 = vector.broadcast %222 : vector<1x64xf32> to vector<42x64xf32>
    %253 = arith.addf %251, %252 : vector<42x64xf32>
    %254 = vector.broadcast %229 : vector<1x64xf32> to vector<42x64xf32>
    %255 = arith.subf %220, %254 : vector<42x64xf32>
    %256 = vector.broadcast %245 : vector<1x64xf32> to vector<42x64xf32>
    %257 = arith.mulf %255, %256 : vector<42x64xf32>
    %258 = vector.broadcast %221 : vector<1x64xf32> to vector<42x64xf32>
    %259 = arith.mulf %257, %258 : vector<42x64xf32>
    %260 = vector.broadcast %222 : vector<1x64xf32> to vector<42x64xf32>
    %261 = arith.addf %259, %260 : vector<42x64xf32>
    %cst_138 = arith.constant 0.000000e+00 : f32
    %262 = vector.broadcast %cst_138 : f32 to vector<42x64xf32>
    %263 = arith.cmpf oge, %253, %262 : vector<42x64xf32>
    %cst_139 = arith.constant 2.000000e-01 : f32
    %264 = vector.broadcast %cst_139 : f32 to vector<42x64xf32>
    %265 = arith.mulf %264, %253 : vector<42x64xf32>
    %266 = arith.select %263, %253, %265 : vector<42x64xi1>, vector<42x64xf32>
    %cst_140 = arith.constant 0.000000e+00 : f32
    %267 = vector.broadcast %cst_140 : f32 to vector<42x64xf32>
    %268 = arith.cmpf oge, %261, %267 : vector<42x64xf32>
    %cst_141 = arith.constant 2.000000e-01 : f32
    %269 = vector.broadcast %cst_141 : f32 to vector<42x64xf32>
    %270 = arith.mulf %269, %261 : vector<42x64xf32>
    %271 = arith.select %268, %261, %270 : vector<42x64xi1>, vector<42x64xf32>
    %c0_142 = arith.constant 0 : index
    %c0_143 = arith.constant 0 : index
    %272 = vector.load %arg15[%c0_142, %c0_143] : memref<1x32xf32, #tpu.memory_space<vmem>>, vector<1x32xf32>
    %273 = vector.extract_strided_slice %266 {offsets = [0, 0], sizes = [40, 64], strides = [1, 1]} : vector<42x64xf32> to vector<40x64xf32>
    %c0_144 = arith.constant 0 : index
    %c0_145 = arith.constant 0 : index
    %c0_146 = arith.constant 0 : index
    %274 = vector.load %arg14[%c0_144, %c0_145, %c0_146] : memref<3x64x32xf32, #tpu.memory_space<vmem>>, vector<1x64x32xf32>
    %275 = vector.shape_cast %274 : vector<1x64x32xf32> to vector<64x32xf32>
    %cst_147 = arith.constant dense<0.000000e+00> : vector<40x32xf32>
    %276 = tpu.matmul %273, %275, %cst_147 {dimension_numbers = #tpu.dot_dimension_numbers<[1], [0], [0], [1], [0, 0, 1, 1], [], []>} : vector<40x64xf32>, vector<64x32xf32>, vector<40x32xf32> -> vector<40x32xf32>
    %277 = vector.extract_strided_slice %266 {offsets = [1, 0], sizes = [40, 64], strides = [1, 1]} : vector<42x64xf32> to vector<40x64xf32>
    %c1_148 = arith.constant 1 : index
    %c0_149 = arith.constant 0 : index
    %c0_150 = arith.constant 0 : index
    %278 = vector.load %arg14[%c1_148, %c0_149, %c0_150] : memref<3x64x32xf32, #tpu.memory_space<vmem>>, vector<1x64x32xf32>
    %279 = vector.shape_cast %278 : vector<1x64x32xf32> to vector<64x32xf32>
    %cst_151 = arith.constant dense<0.000000e+00> : vector<40x32xf32>
    %280 = tpu.matmul %277, %279, %cst_151 {dimension_numbers = #tpu.dot_dimension_numbers<[1], [0], [0], [1], [0, 0, 1, 1], [], []>} : vector<40x64xf32>, vector<64x32xf32>, vector<40x32xf32> -> vector<40x32xf32>
    %281 = arith.addf %276, %280 : vector<40x32xf32>
    %282 = vector.extract_strided_slice %266 {offsets = [2, 0], sizes = [40, 64], strides = [1, 1]} : vector<42x64xf32> to vector<40x64xf32>
    %c2_152 = arith.constant 2 : index
    %c0_153 = arith.constant 0 : index
    %c0_154 = arith.constant 0 : index
    %283 = vector.load %arg14[%c2_152, %c0_153, %c0_154] : memref<3x64x32xf32, #tpu.memory_space<vmem>>, vector<1x64x32xf32>
    %284 = vector.shape_cast %283 : vector<1x64x32xf32> to vector<64x32xf32>
    %cst_155 = arith.constant dense<0.000000e+00> : vector<40x32xf32>
    %285 = tpu.matmul %282, %284, %cst_155 {dimension_numbers = #tpu.dot_dimension_numbers<[1], [0], [0], [1], [0, 0, 1, 1], [], []>} : vector<40x64xf32>, vector<64x32xf32>, vector<40x32xf32> -> vector<40x32xf32>
    %286 = arith.addf %281, %285 : vector<40x32xf32>
    %287 = vector.broadcast %272 : vector<1x32xf32> to vector<40x32xf32>
    %288 = arith.addf %286, %287 : vector<40x32xf32>
    %289 = vector.extract_strided_slice %271 {offsets = [0, 0], sizes = [40, 64], strides = [1, 1]} : vector<42x64xf32> to vector<40x64xf32>
    %c0_156 = arith.constant 0 : index
    %c0_157 = arith.constant 0 : index
    %c0_158 = arith.constant 0 : index
    %290 = vector.load %arg14[%c0_156, %c0_157, %c0_158] : memref<3x64x32xf32, #tpu.memory_space<vmem>>, vector<1x64x32xf32>
    %291 = vector.shape_cast %290 : vector<1x64x32xf32> to vector<64x32xf32>
    %cst_159 = arith.constant dense<0.000000e+00> : vector<40x32xf32>
    %292 = tpu.matmul %289, %291, %cst_159 {dimension_numbers = #tpu.dot_dimension_numbers<[1], [0], [0], [1], [0, 0, 1, 1], [], []>} : vector<40x64xf32>, vector<64x32xf32>, vector<40x32xf32> -> vector<40x32xf32>
    %293 = vector.extract_strided_slice %271 {offsets = [1, 0], sizes = [40, 64], strides = [1, 1]} : vector<42x64xf32> to vector<40x64xf32>
    %c1_160 = arith.constant 1 : index
    %c0_161 = arith.constant 0 : index
    %c0_162 = arith.constant 0 : index
    %294 = vector.load %arg14[%c1_160, %c0_161, %c0_162] : memref<3x64x32xf32, #tpu.memory_space<vmem>>, vector<1x64x32xf32>
    %295 = vector.shape_cast %294 : vector<1x64x32xf32> to vector<64x32xf32>
    %cst_163 = arith.constant dense<0.000000e+00> : vector<40x32xf32>
    %296 = tpu.matmul %293, %295, %cst_163 {dimension_numbers = #tpu.dot_dimension_numbers<[1], [0], [0], [1], [0, 0, 1, 1], [], []>} : vector<40x64xf32>, vector<64x32xf32>, vector<40x32xf32> -> vector<40x32xf32>
    %297 = arith.addf %292, %296 : vector<40x32xf32>
    %298 = vector.extract_strided_slice %271 {offsets = [2, 0], sizes = [40, 64], strides = [1, 1]} : vector<42x64xf32> to vector<40x64xf32>
    %c2_164 = arith.constant 2 : index
    %c0_165 = arith.constant 0 : index
    %c0_166 = arith.constant 0 : index
    %299 = vector.load %arg14[%c2_164, %c0_165, %c0_166] : memref<3x64x32xf32, #tpu.memory_space<vmem>>, vector<1x64x32xf32>
    %300 = vector.shape_cast %299 : vector<1x64x32xf32> to vector<64x32xf32>
    %cst_167 = arith.constant dense<0.000000e+00> : vector<40x32xf32>
    %301 = tpu.matmul %298, %300, %cst_167 {dimension_numbers = #tpu.dot_dimension_numbers<[1], [0], [0], [1], [0, 0, 1, 1], [], []>} : vector<40x64xf32>, vector<64x32xf32>, vector<40x32xf32> -> vector<40x32xf32>
    %302 = arith.addf %297, %301 : vector<40x32xf32>
    %303 = vector.broadcast %272 : vector<1x32xf32> to vector<40x32xf32>
    %304 = arith.addf %302, %303 : vector<40x32xf32>
    %c0_168 = arith.constant 0 : index
    %c0_169 = arith.constant 0 : index
    %c0_170 = arith.constant 0 : index
    %305 = vector.load %arg16[%c0_168, %c0_169, %c0_170] : memref<2x40x32xf32, #tpu.memory_space<vmem>>, vector<1x40x32xf32>
    %306 = vector.shape_cast %305 : vector<1x40x32xf32> to vector<40x32xf32>
    %307 = vector.shape_cast %288 : vector<40x32xf32> to vector<1x40x32xf32>
    tpu.vector_store %arg16[%c0_168, %c0_169, %c0_170], %307 {strides = array<i32>} : memref<2x40x32xf32, #tpu.memory_space<vmem>>, vector<1x40x32xf32>,
    %c1_171 = arith.constant 1 : index
    %c0_172 = arith.constant 0 : index
    %c0_173 = arith.constant 0 : index
    %308 = vector.load %arg16[%c1_171, %c0_172, %c0_173] : memref<2x40x32xf32, #tpu.memory_space<vmem>>, vector<1x40x32xf32>
    %309 = vector.shape_cast %308 : vector<1x40x32xf32> to vector<40x32xf32>
    %310 = vector.shape_cast %304 : vector<40x32xf32> to vector<1x40x32xf32>
    tpu.vector_store %arg16[%c1_171, %c0_172, %c0_173], %310 {strides = array<i32>} : memref<2x40x32xf32, #tpu.memory_space<vmem>>, vector<1x40x32xf32>,
    return
  }
  func.func @transform_0(%arg0: i32) -> (i32, i32, i32) {
    %c0_i32 = arith.constant 0 : i32
    %c0_i32_0 = arith.constant 0 : i32
    %c0_i32_1 = arith.constant 0 : i32
    %c0_i32_2 = arith.constant 0 : i32
    return %c0_i32, %c0_i32_0, %c0_i32_1 : i32, i32, i32
  }
  func.func @transform_1(%arg0: i32) -> (i32, i32, i32) {
    %c0_i32 = arith.constant 0 : i32
    %c0_i32_0 = arith.constant 0 : i32
    %c0_i32_1 = arith.constant 0 : i32
    %c0_i32_2 = arith.constant 0 : i32
    return %c0_i32, %c0_i32_0, %c0_i32_1 : i32, i32, i32
  }
  func.func @transform_2(%arg0: i32) -> (i32, i32) {
    %c0_i32 = arith.constant 0 : i32
    %c0_i32_0 = arith.constant 0 : i32
    %c0_i32_1 = arith.constant 0 : i32
    return %c0_i32, %c0_i32_0 : i32, i32
  }
  func.func @transform_3(%arg0: i32) -> (i32, i32) {
    %c0_i32 = arith.constant 0 : i32
    %c0_i32_0 = arith.constant 0 : i32
    %c0_i32_1 = arith.constant 0 : i32
    return %c0_i32, %c0_i32_0 : i32, i32
  }
  func.func @transform_4(%arg0: i32) -> (i32, i32) {
    %c0_i32 = arith.constant 0 : i32
    %c0_i32_0 = arith.constant 0 : i32
    %c0_i32_1 = arith.constant 0 : i32
    return %c0_i32, %c0_i32_0 : i32, i32
  }
  func.func @transform_5(%arg0: i32) -> (i32, i32, i32) {
    %c0_i32 = arith.constant 0 : i32
    %c0_i32_0 = arith.constant 0 : i32
    %c0_i32_1 = arith.constant 0 : i32
    %c0_i32_2 = arith.constant 0 : i32
    return %c0_i32, %c0_i32_0, %c0_i32_1 : i32, i32, i32
  }
  func.func @transform_6(%arg0: i32) -> (i32, i32) {
    %c0_i32 = arith.constant 0 : i32
    %c0_i32_0 = arith.constant 0 : i32
    %c0_i32_1 = arith.constant 0 : i32
    return %c0_i32, %c0_i32_0 : i32, i32
  }
  func.func @transform_7(%arg0: i32) -> (i32, i32) {
    %c0_i32 = arith.constant 0 : i32
    %c0_i32_0 = arith.constant 0 : i32
    %c0_i32_1 = arith.constant 0 : i32
    return %c0_i32, %c0_i32_0 : i32, i32
  }
  func.func @transform_8(%arg0: i32) -> (i32, i32) {
    %c0_i32 = arith.constant 0 : i32
    %c0_i32_0 = arith.constant 0 : i32
    %c0_i32_1 = arith.constant 0 : i32
    return %c0_i32, %c0_i32_0 : i32, i32
  }
  func.func @transform_9(%arg0: i32) -> (i32, i32, i32) {
    %c0_i32 = arith.constant 0 : i32
    %c0_i32_0 = arith.constant 0 : i32
    %c0_i32_1 = arith.constant 0 : i32
    %c0_i32_2 = arith.constant 0 : i32
    return %c0_i32, %c0_i32_0, %c0_i32_1 : i32, i32, i32
  }
  func.func @transform_10(%arg0: i32) -> (i32, i32) {
    %c0_i32 = arith.constant 0 : i32
    %c0_i32_0 = arith.constant 0 : i32
    %c0_i32_1 = arith.constant 0 : i32
    return %c0_i32, %c0_i32_0 : i32, i32
  }
  func.func @transform_11(%arg0: i32) -> (i32, i32) {
    %c0_i32 = arith.constant 0 : i32
    %c0_i32_0 = arith.constant 0 : i32
    %c0_i32_1 = arith.constant 0 : i32
    return %c0_i32, %c0_i32_0 : i32, i32
  }
  func.func @transform_12(%arg0: i32) -> (i32, i32) {
    %c0_i32 = arith.constant 0 : i32
    %c0_i32_0 = arith.constant 0 : i32
    %c0_i32_1 = arith.constant 0 : i32
    return %c0_i32, %c0_i32_0 : i32, i32
  }
  func.func @transform_13(%arg0: i32) -> (i32, i32, i32) {
    %c0_i32 = arith.constant 0 : i32
    %c0_i32_0 = arith.constant 0 : i32
    %c0_i32_1 = arith.constant 0 : i32
    %c0_i32_2 = arith.constant 0 : i32
    return %c0_i32, %c0_i32_0, %c0_i32_1 : i32, i32, i32
  }
  func.func @transform_14(%arg0: i32) -> (i32, i32) {
    %c0_i32 = arith.constant 0 : i32
    %c0_i32_0 = arith.constant 0 : i32
    %c0_i32_1 = arith.constant 0 : i32
    return %c0_i32, %c0_i32_0 : i32, i32
  }
  func.func @transform_15(%arg0: i32) -> (i32, i32, i32) {
    %c0_i32 = arith.constant 0 : i32
    %c0_i32_0 = arith.constant 0 : i32
    %c0_i32_1 = arith.constant 0 : i32
    %c0_i32_2 = arith.constant 0 : i32
    return %c0_i32, %c0_i32_0, %c0_i32_1 : i32, i32, i32
  }
}

</mosaic_0001>

<bundles_post_ra>
// kernel: tpu_custom_call.1
= control target key start
LH: loop header
LB: loop body
LE: loop exit
PB: predicated region body
PF: predicated region fallthrough
CT: control target
= control target key end

     0   :  { %vm140_vm0 = vcmask 1041408   ;;  %vm93_vm1 = vcmask 1046528   ;;  %vm117_vm2 = vcmask 80896   ;;  %vm272_vm3 = vcmask 1045504   ;;  %s5563_s1 = inlined_call_operand.vmem [shape: f32[3,10,32], index: 1, kind: input, shape index: {}]   ;;  %s5564_s0 = inlined_call_operand.vmem [shape: f32[2,90,10], index: 0, kind: input, shape index: {}]   ;;  %s5565_s2 = inlined_call_operand.vmem [shape: f32[1,32], index: 2, kind: input, shape index: {}]   ;;  %s5566_s3 = inlined_call_operand.vmem [shape: f32[1,32], index: 3, kind: input, shape index: {}]   ;;  %s5567_s4 = inlined_call_operand.vmem [shape: f32[1,32], index: 4, kind: input, shape index: {}]   ;;  %s5568_s5 = inlined_call_operand.vmem [shape: f32[3,32,64], index: 5, kind: input, shape index: {}]   ;;  %s5569_s6 = inlined_call_operand.vmem [shape: f32[1,64], index: 6, kind: input, shape index: {}]   ;;  %s5570_s7 = inlined_call_operand.vmem [shape: f32[1,64], index: 7, kind: input, shape index: {}]   ;;  %s5571_s8 = inlined_call_operand.vmem [shape: f32[1,64], index: 8, kind: input, shape index: {}]   ;;  %s5572_s9 = inlined_call_operand.vmem [shape: f32[4,64,64], index: 9, kind: input, shape index: {}]   ;;  %s5573_s10 = inlined_call_operand.vmem [shape: f32[1,64], index: 10, kind: input, shape index: {}]   ;;  %s5574_s11 = inlined_call_operand.vmem [shape: f32[1,64], index: 11, kind: input, shape index: {}]   ;;  %s5575_s12 = inlined_call_operand.vmem [shape: f32[1,64], index: 12, kind: input, shape index: {}]   ;;  %s5576_s13 = inlined_call_operand.vmem [shape: f32[3,64,32], index: 13, kind: input, shape index: {}]   ;;  %s5577_s14 = inlined_call_operand.vmem [shape: f32[1,32], index: 14, kind: input, shape index: {}]   ;;  %s5578_s15 = inlined_call_operand.vmem [shape: f32[2,40,32], index: 15, kind: output, shape index: {}]  }
   0x1   :  { %v3092_v0 = vld [vmem:[%s5563_s1 + $0x18] sm:$0x3]  ;;  %v77_v1 = vld [vmem:[%s5563_s1 + $0x8] sm:$0x3]  ;;  %v3091_v2 = vld [vmem:[%s5563_s1 + $0x10] sm:$0xff]  ;;  %vm694_vm4 = vcmask 261120  }
   0x2   :  { %3093 = vmatpush.msk.msra.mxu0 %vm140_vm0, %v3092_v0  ;;  %3364 = vmatpush.msk.msra.mxu2 %vm140_vm0, %v3092_v0  ;;  %v76_v3 = vld [vmem:[%s5563_s1] sm:$0xff]  ;;  %v51_v5 = vld [vmem:[%s5564_s0 + $0x8] sm:$0xff]  ;;  %v3505_v9 = vld [vmem:[%s5564_s0 + $0x50] sm:$0xff] }
   0x3   :  { %v50_v4 = vld [vmem:[%s5564_s0] sm:$0xff]  ;;  %3105 = vmatpush.msk.msra.mxu1 %vm140_vm0, %v77_v1  ;;  %v95_v7 = vrot.slane %v51_v5, 1  ;;  %v3500_v8 = vld [vmem:[%s5564_s0 + $0x48] sm:$0xff]  ;;  %3366 = vmatpush.msk.msra.mxu3 %vm140_vm0, %v77_v1  ;;  %v113_v11 = vrot.slane %v3505_v9, 1  ;;  %v52_v12 = vld [vmem:[%s5564_s0 + $0x10] sm:$0xff]  ;;  %v274_v25 = vrot.slane %v51_v5, 2 }
   0x4   :  { %v94_v6 = vrot.slane %v50_v4, 1  ;;  %159 = vmatpush.msra.mxu0 %v3091_v2  ;;  %3365 = vmatpush.msra.mxu2 %v3091_v2  ;;  %v111_v10 = vrot.slane %v3500_v8, 1  ;;  %v3118_v14 = vld [vmem:[%s5563_s1 + $0x28] sm:$0x3]  ;;  %v3521_v15 = vld [vmem:[%s5564_s0 + $0x58] sm:$0x3] }
   0x5   :  { %234 = vmatpush.msra.mxu1 %v76_v3  ;;  %v97_v17 = vrot.slane %v52_v12, 1  ;;  %v3117_v18 = vld [vmem:[%s5563_s1 + $0x20] sm:$0xff]  ;;  %v115_v19 = vrot.slane %v3521_v15, 1  ;;  %3367 = vmatpush.msra.mxu3 %v76_v3  ;;  %v53_v22 = vld [vmem:[%s5564_s0 + $0x18] sm:$0xff]  ;;  %v273_v24 = vrot.slane %v50_v4, 2  ;;  %v276_v30 = vrot.slane %v52_v12, 2 }
   0x6   :  { %v96_v13 = vsel %vm93_vm1, %v94_v6, %v95_v7  ;;  %3143 = vmatpush.msk.msrb.mxu0 %vm140_vm0, %v77_v1  ;;  %v114_v16 = vsel %vm93_vm1, %v111_v10, %v113_v11  ;;  %3106 = vmatmul.msk.f32.vlgmr.msra.gmra.mxu1 %vm117_vm2, %v50_v4  ;;  %v99_v23 = vrot.slane %v53_v22, 1  ;;  %v54_v28 = vld [vmem:[%s5564_s0 + $0x20] sm:$0xff]  ;;  %v55_v33 = vld [vmem:[%s5564_s0 + $0x28] sm:$0xff]  ;;  %v278_v35 = vrot.slane %v53_v22, 2  ;;  %v56_v38 = vld [vmem:[%s5564_s0 + $0x30] sm:$0xff] }
   0x7   :  { %3094 = vmatmul.msk.f32.vlgmr.msra.gmra.mxu0 %vm117_vm2, %v96_v13  ;;  %3103 = vmatmul.msk.f32.vlgmr.msra.gmra.mxu2 %vm117_vm2, %v114_v16  ;;  %v98_v20 = vsel %vm93_vm1, %v95_v7, %v97_v17  ;;  %v116_v21 = vsel %vm93_vm1, %v113_v11, %v115_v19  ;;  %v275_v27 = vsel %vm272_vm3, %v273_v24, %v274_v25  ;;  %v101_v29 = vrot.slane %v54_v28, 1  ;;  %v3572_v39 = vld [vmem:[%s5564_s0 + $0x60] sm:$0xff]  ;;  %v3577_v40 = vld [vmem:[%s5564_s0 + $0x68] sm:$0xff]  ;;  %v57_v48 = vld [vmem:[%s5564_s0 + $0x38] sm:$0xff] }
   0x8   :  { %3155 = vmatpush.msk.msrb.mxu1 %vm140_vm0, %v3118_v14  ;;  %3119 = vmatpush.msk.msrb.mxu2 %vm140_vm0, %v3118_v14  ;;  %v100_v26 = vsel %vm93_vm1, %v97_v17, %v99_v23  ;;  %v277_v32 = vsel %vm272_vm3, %v274_v25, %v276_v30  ;;  %v103_v34 = vrot.slane %v55_v33, 1  ;;  %v279_v37 = vsel %vm272_vm3, %v276_v30, %v278_v35  ;;  %v3594_v49 = vld [vmem:[%s5564_s0 + $0x70] sm:$0xff]  ;;  %v58_v56 = vld [vmem:[%s5564_s0 + $0x40] sm:$0xff]  ;;  %v3610_v57 = vld [vmem:[%s5564_s0 + $0x78] sm:$0xff] }
   0x9   :  { %540 = vmatpush.msrb.mxu0 %v76_v3  ;;  %3115 = vmatmul.msk.f32.vlgmr.msra.gmra.mxu3 %vm117_vm2, %v3500_v8  ;;  %v102_v31 = vsel %vm93_vm1, %v99_v23, %v101_v29  ;;  %v408_v41 = vrot.slane %v3572_v39, 1  ;;  %v409_v42 = vrot.slane %v3577_v40, 1  ;;  %v105_v43 = vrot.slane %v56_v38, 1  ;;  %v3083_v3 = vld [vmem:[%s5564_s0 + $0x80] sm:$0xff]  ;;  %v3084_v13 = vld [vmem:[%s5564_s0 + $0x88] sm:$0xff]  ;;  %v3085_v19 = vld [vmem:[%s5564_s0 + $0x90] sm:$0xff] }
   0xa   :  { %635 = vmatpush.msrb.mxu1 %v3117_v18  ;;  %336 = vmatpush.msrb.mxu2 %v3117_v18  ;;  %v104_v36 = vsel %vm93_vm1, %v101_v29, %v103_v34  ;;  %v280_v44 = vrot.slane %v54_v28, 2  ;;  %v411_v50 = vrot.slane %v3594_v49, 1  ;;  %v107_v51 = vrot.slane %v57_v48, 1  ;;  %v3086_v25 = vld [vmem:[%s5564_s0 + $0x98] sm:$0xff]  ;;  %v3087_v30 = vld [vmem:[%s5564_s0 + $0xa0] sm:$0xff] }
   0xb   :  { %3131 = vmatpush.msk.msrb.mxu3 %vm140_vm0, %v3092_v0  ;;  %v410_v45 = vsel %vm93_vm1, %v408_v41, %v409_v42  ;;  %v106_v46 = vsel %vm93_vm1, %v103_v34, %v105_v43  ;;  %v282_v52 = vrot.slane %v55_v33, 2  ;;  %v413_v58 = vrot.slane %v3610_v57, 1 }
   0xc   :  { %v281_v47 = vsel %vm272_vm3, %v278_v35, %v280_v44  ;;  %v412_v53 = vsel %vm93_vm1, %v409_v42, %v411_v50  ;;  %v108_v54 = vsel %vm93_vm1, %v105_v43, %v107_v51  ;;  %v109_v59 = vrot.slane %v58_v56, 1  ;;  %v3088_v35 = vld [vmem:[%s5564_s0 + $0xa8] sm:$0xff] }
   0xd   :  { %468 = vmatpush.msrb.mxu3 %v3091_v2  ;;  %v283_v55 = vsel %vm272_vm3, %v280_v44, %v282_v52  ;;  %v290_v60 = vrot.slane %v3500_v8, 2  ;;  %v292_v61 = vrot.slane %v3505_v9, 2  ;;  %v284_v62 = vrot.slane %v56_v38, 2 }
   0xe   :  { %3107 = vmatmul.msk.f32.gmra.mxu1 %vm117_vm2, %v51_v5  ;;  %v414_v63 = vsel %vm93_vm1, %v411_v50, %v413_v58  ;;  %v110_v1 = vsel %vm93_vm1, %v107_v51, %v109_v59  ;;  %v415_v4 = vrot.slane %v3083_v3, 1  ;;  %v294_v5 = vrot.slane %v3521_v15, 2 }
   0xf   :  { %3095 = vmatmul.msk.f32.gmra.mxu0 %vm117_vm2, %v98_v20  ;;  %3104 = vmatmul.msk.f32.gmra.mxu2 %vm117_vm2, %v116_v21  ;;  %v293_v0 = vsel %vm272_vm3, %v290_v60, %v292_v61  ;;  %v285_v2 = vsel %vm272_vm3, %v282_v52, %v284_v62  ;;  %v286_v6 = vrot.slane %v57_v48, 2  ;;  %v112_v11 = vsel %vm93_vm1, %v109_v59, %v111_v10 }
  0x10   :  { %v416_v7 = vsel %vm93_vm1, %v413_v58, %v415_v4  ;;  %v417_v14 = vrot.slane %v3084_v13, 1  ;;  %v575_v15 = vrot.slane %v3572_v39, 2  ;;  %v576_v16 = vrot.slane %v3577_v40, 2 }
  0x11   :  { %3116 = vmatmul.msk.f32.gmra.mxu3 %vm117_vm2, %v3505_v9  ;;  %v295_v9 = vsel %vm272_vm3, %v292_v61, %v294_v5  ;;  %v288_v8 = vrot.slane %v58_v56, 2  ;;  %v419_v20 = vrot.slane %v3085_v19, 1  ;;  %v578_v21 = vrot.slane %v3594_v49, 2 }
  0x12   :  { %v418_v10 = vsel %vm93_vm1, %v415_v4, %v417_v14  ;;  %v577_v17 = vsel %vm272_vm3, %v575_v15, %v576_v16  ;;  %v586_v42 = vrot.slane %v3085_v19, 2  ;;  %v590_v50 = vrot.slane %v3087_v30, 2 }
  0x13   :  { %v289_v18 = vsel %vm272_vm3, %v286_v6, %v288_v8  ;;  %v579_v23 = vsel %vm272_vm3, %v576_v16, %v578_v21  ;;  %v291_v24 = vsel %vm272_vm3, %v288_v8, %v290_v60 }
  0x16   :  { %3108 = vmatmul.msk.f32.gmra.mxu1 %vm117_vm2, %v52_v12  ;;  %v287_v12 = vsel %vm272_vm3, %v284_v62, %v286_v6 }
  0x17   :  { %3096 = vmatmul.msk.f32.gmra.mxu0 %vm117_vm2, %v100_v26  ;;  %3120 = vmatmul.msk.f32.vlgmr.msrb.gmra.mxu2 %vm117_vm2, %v275_v27  ;;  %v421_v26 = vrot.slane %v3086_v25, 1  ;;  %v580_v27 = vrot.slane %v3610_v57, 2 }
  0x19   :  { %3132 = vmatmul.msk.f32.vlgmr.msrb.gmra.mxu3 %vm117_vm2, %v410_v45  ;;  %v581_v29 = vsel %vm272_vm3, %v578_v21, %v580_v27  ;;  %v3090_v45 = vld [vmem:[%s5564_s0 + $0xb8] sm:$0x3] }
  0x1e   :  { %3109 = vmatmul.msk.f32.gmra.mxu1 %vm117_vm2, %v53_v22  ;;  %v420_v22 = vsel %vm93_vm1, %v417_v14, %v419_v20 }
  0x1f   :  { %3097 = vmatmul.msk.f32.gmra.mxu0 %vm117_vm2, %v102_v31  ;;  %3121 = vmatmul.msk.f32.gmra.mxu2 %vm117_vm2, %v277_v32  ;;  %v423_v31 = vrot.slane %v3087_v30, 1  ;;  %v582_v32 = vrot.slane %v3083_v3, 2 }
  0x21   :  { %3133 = vmatmul.msk.f32.gmra.mxu3 %vm117_vm2, %v412_v53  ;;  %v583_v34 = vsel %vm272_vm3, %v580_v27, %v582_v32 }
  0x26   :  { %3110 = vmatmul.msk.f32.gmra.mxu1 %vm117_vm2, %v54_v28  ;;  %v422_v28 = vsel %vm93_vm1, %v419_v20, %v421_v26 }
  0x27   :  { %3098 = vmatmul.msk.f32.gmra.mxu0 %vm117_vm2, %v104_v36  ;;  %3122 = vmatmul.msk.f32.gmra.mxu2 %vm117_vm2, %v279_v37  ;;  %v425_v36 = vrot.slane %v3088_v35, 1  ;;  %v584_v37 = vrot.slane %v3084_v13, 2 }
  0x29   :  { %3134 = vmatmul.msk.f32.gmra.mxu3 %vm117_vm2, %v414_v63  ;;  %v587_v44 = vsel %vm272_vm3, %v584_v37, %v586_v42  ;;  %v596_v63 = vrot.slane %v3090_v45, 2 }
  0x2e   :  { %3111 = vmatmul.msk.f32.gmra.mxu1 %vm117_vm2, %v55_v33  ;;  %v424_v33 = vsel %vm93_vm1, %v421_v26, %v423_v31 }
  0x2f   :  { %3099 = vmatmul.msk.f32.gmra.mxu0 %vm117_vm2, %v106_v46  ;;  %3123 = vmatmul.msk.f32.gmra.mxu2 %vm117_vm2, %v281_v47  ;;  %v429_v46 = vrot.slane %v3090_v45, 1  ;;  %v588_v47 = vrot.slane %v3086_v25, 2 }
  0x31   :  { %3135 = vmatmul.msk.f32.gmra.mxu3 %vm117_vm2, %v416_v7  ;;  %v591_v53 = vsel %vm272_vm3, %v588_v47, %v590_v50 }
  0x36   :  { %3112 = vmatmul.msk.f32.gmra.mxu1 %vm117_vm2, %v56_v38  ;;  %v426_v38 = vsel %vm93_vm1, %v423_v31, %v425_v36 }
  0x37   :  { %3100 = vmatmul.msk.f32.gmra.mxu0 %vm117_vm2, %v108_v54  ;;  %3124 = vmatmul.msk.f32.gmra.mxu2 %vm117_vm2, %v283_v55  ;;  %v592_v54 = vrot.slane %v3088_v35, 2 }
  0x39   :  { %3136 = vmatmul.msk.f32.gmra.mxu3 %vm117_vm2, %v418_v10 }
  0x3e   :  { %3113 = vmatmul.msk.f32.gmra.mxu1 %vm117_vm2, %v57_v48 }
  0x3f   :  { %3101 = vmatmul.msk.f32.gmra.mxu0 %vm117_vm2, %v110_v1  ;;  %3125 = vmatmul.msk.f32.gmra.mxu2 %vm117_vm2, %v285_v2 }
  0x41   :  { %3137 = vmatmul.msk.f32.gmra.mxu3 %vm117_vm2, %v420_v22 }
  0x46   :  { %3114 = vmatmul.msk.f32.gmra.mxu1 %vm117_vm2, %v58_v56 }
  0x47   :  { %3102 = vmatmul.msk.f32.gmra.mxu0 %vm117_vm2, %v112_v11  ;;  %3126 = vmatmul.msk.f32.gmra.mxu2 %vm117_vm2, %v287_v12 }
  0x49   :  { %3138 = vmatmul.msk.f32.gmra.mxu3 %vm117_vm2, %v422_v28 }
  0x4e   :  { %3156 = vmatmul.msk.f32.vlgmr.msrb.gmra.mxu1 %vm117_vm2, %v577_v17 }
  0x4f   :  { %3144 = vmatmul.msk.f32.vlgmr.msrb.gmra.mxu0 %vm117_vm2, %v3572_v39  ;;  %3127 = vmatmul.msk.f32.gmra.mxu2 %vm117_vm2, %v289_v18  ;;  %v585_v39 = vsel %vm272_vm3, %v582_v32, %v584_v37 }
  0x51   :  { %3139 = vmatmul.msk.f32.gmra.mxu3 %vm117_vm2, %v424_v33 }
  0x56   :  { %3157 = vmatmul.msk.f32.gmra.mxu1 %vm117_vm2, %v579_v23 }
  0x57   :  { %3145 = vmatmul.msk.f32.gmra.mxu0 %vm117_vm2, %v3577_v40  ;;  %3128 = vmatmul.msk.f32.gmra.mxu2 %vm117_vm2, %v291_v24  ;;  %v3089_v40 = vld [vmem:[%s5564_s0 + $0xb0] sm:$0xff] }
  0x58   :  { %v427_v41 = vrot.slane %v3089_v40, 1  ;;  %v594_v58 = vrot.slane %v3089_v40, 2 }
  0x59   :  { %3140 = vmatmul.msk.f32.gmra.mxu3 %vm117_vm2, %v426_v38 }
  0x5a   :  { %v428_v43 = vsel %vm93_vm1, %v425_v36, %v427_v41  ;;  %v430_v48 = vsel %vm93_vm1, %v427_v41, %v429_v46  ;;  %v595_v62 = vsel %vm272_vm3, %v592_v54, %v594_v58 }
  0x5e   :  { %3158 = vmatmul.msk.f32.gmra.mxu1 %vm117_vm2, %v581_v29 }
  0x5f   :  { %3146 = vmatmul.msk.f32.gmra.mxu0 %vm117_vm2, %v3594_v49  ;;  %3129 = vmatmul.msk.f32.gmra.mxu2 %vm117_vm2, %v293_v0  ;;  %v589_v49 = vsel %vm272_vm3, %v586_v42, %v588_v47 }
  0x61   :  { %3141 = vmatmul.msk.f32.gmra.mxu3 %vm117_vm2, %v428_v43 }
  0x66   :  { %3159 = vmatmul.msk.f32.gmra.mxu1 %vm117_vm2, %v583_v34 }
  0x67   :  { %3147 = vmatmul.msk.f32.gmra.mxu0 %vm117_vm2, %v3610_v57  ;;  %3130 = vmatmul.msk.f32.gmra.mxu2 %vm117_vm2, %v295_v9  ;;  %v593_v57 = vsel %vm272_vm3, %v590_v50, %v592_v54  ;;  %v3757_v50 = vld [vmem:[%s5565_s2] ss:$0 sm:$0xff] }
  0x69   :  { %3142 = vmatmul.msk.f32.gmra.mxu3 %vm117_vm2, %v430_v48 }
  0x6e   :  { %3160 = vmatmul.msk.f32.gmra.mxu1 %vm117_vm2, %v585_v39 }
  0x6f   :  { %3148 = vmatmul.msk.f32.gmra.mxu0 %vm117_vm2, %v3083_v3  ;;  %v597_v3 = vsel %vm272_vm3, %v594_v58, %v596_v63 }
  0x76   :  { %3161 = vmatmul.msk.f32.gmra.mxu1 %vm117_vm2, %v587_v44 }
  0x77   :  { %3149 = vmatmul.msk.f32.gmra.mxu0 %vm117_vm2, %v3084_v13 }
  0x7e   :  { %3162 = vmatmul.msk.f32.gmra.mxu1 %vm117_vm2, %v589_v49 }
  0x7f   :  { %3150 = vmatmul.msk.f32.gmra.mxu0 %vm117_vm2, %v3085_v19 }
  0x83   :  { %v3712_v52 = vpop.f32.mrf.mxu1 }
  0x84   :  { %v3710_v51 = vpop.f32.mrf.mxu0 }
  0x85   :  { %v237_v45 = vadd.f32 %v3712_v52, %v3710_v51 }
  0x86   :  { %3163 = vmatmul.msk.f32.gmra.mxu1 %vm117_vm2, %v591_v53 }
  0x87   :  { %3151 = vmatmul.msk.f32.gmra.mxu0 %vm117_vm2, %v3086_v25 }
  0x8a   :  { %v3720_v59 = vpop.f32.mrf.mxu2 }
  0x8b   :  { %v239_v56 = vpop.f32.mrf.mxu1 }
  0x8c   :  { %v164_v55 = vpop.f32.mrf.mxu0  ;;  %v3730_v4 = vpop.f32.mrf.mxu3 }
  0x8d   :  { %v240_v44 = vadd.f32 %v239_v56, %v164_v55 }
  0x8e   :  { %3164 = vmatmul.msk.f32.gmra.mxu1 %vm117_vm2, %v593_v57 }
  0x8f   :  { %3152 = vmatmul.msk.f32.gmra.mxu0 %vm117_vm2, %v3087_v30 }
  0x92   :  { %v3725_v0 = vpop.f32.mrf.mxu2 }
  0x93   :  { %v242_v61 = vpop.f32.mrf.mxu1 }
  0x94   :  { %v167_v60 = vpop.f32.mrf.mxu0  ;;  %v3732_v9 = vpop.f32.mrf.mxu3 }
  0x95   :  { %v243_v46 = vadd.f32 %v242_v61, %v167_v60 }
  0x96   :  { %3165 = vmatmul.msk.f32.gmra.mxu1 %vm117_vm2, %v595_v62 }
  0x97   :  { %3153 = vmatmul.msk.f32.gmra.mxu0 %vm117_vm2, %v3088_v35 }
  0x9a   :  { %v338_v7 = vpop.f32.mrf.mxu2 }
  0x9b   :  { %v245_v2 = vpop.f32.mrf.mxu1  ;;  %v371_v49 = vadd.f32 %v338_v7, %v237_v45 }
  0x9c   :  { %v170_v1 = vpop.f32.mrf.mxu0  ;;  %v470_v16 = vpop.f32.mrf.mxu3 }
  0x9d   :  { %v246_v57 = vadd.f32 %v245_v2, %v170_v1  ;;  %v3765_v60 = vadd.f32 %v3757_v50, %v371_v49 }
  0x9e   :  { %3166 = vmatmul.msk.f32.gmra.mxu1 %vm117_vm2, %v597_v3 }
  0x9f   :  { %3154 = vmatmul.msk.f32.gmra.mxu0 %vm117_vm2, %v3089_v40 }
  0xa2   :  { %v341_v13 = vpop.f32.mrf.mxu2 }
  0xa3   :  { %v248_v6 = vpop.f32.mrf.mxu1  ;;  %v372_v47 = vadd.f32 %v341_v13, %v240_v44 }
  0xa4   :  { %v173_v5 = vpop.f32.mrf.mxu0  ;;  %v473_v18 = vpop.f32.mrf.mxu3 }
  0xa5   :  { %v3762_v55 = vadd.f32 %v3757_v50, %v372_v47  ;;  %v249_v56 = vadd.f32 %v248_v6, %v173_v5  ;;  %v695_v6 = vsel %vm694_vm4, %v3765_v60, 0.0 }
  0xa7   :  { %v696_v1 = vsel %vm694_vm4, %v3762_v55, 0.0 }
  0xaa   :  { %v344_v8 = vpop.f32.mrf.mxu2 }
  0xab   :  { %v251_v12 = vpop.f32.mrf.mxu1  ;;  %v373_v58 = vadd.f32 %v344_v8, %v243_v46 }
  0xac   :  { %v176_v11 = vpop.f32.mrf.mxu0  ;;  %v476_v22 = vpop.f32.mrf.mxu3 }
  0xad   :  { %v3768_v61 = vadd.f32 %v3757_v50, %v373_v58  ;;  %v252_v62 = vadd.f32 %v251_v12, %v176_v11 }
  0xaf   :  { %v698_v11 = vsel %vm694_vm4, %v3768_v61, 0.0 }
  0xb2   :  { %v347_v19 = vpop.f32.mrf.mxu2 }
  0xb3   :  { %v254_v15 = vpop.f32.mrf.mxu1  ;;  %v374_v51 = vadd.f32 %v347_v19, %v246_v57 }
  0xb4   :  { %v179_v14 = vpop.f32.mrf.mxu0  ;;  %v479_v26 = vpop.f32.mrf.mxu3 }
  0xb5   :  { %v3773_v2 = vadd.f32 %v3757_v50, %v374_v51  ;;  %v255_v7 = vadd.f32 %v254_v15, %v179_v14 }
  0xb7   :  { %v700_v15 = vsel %vm694_vm4, %v3773_v2, 0.0 }
  0xba   :  { %v350_v25 = vpop.f32.mrf.mxu2 }
  0xbb   :  { %v257_v17 = vpop.f32.mrf.mxu1  ;;  %v375_v63 = vadd.f32 %v350_v25, %v249_v56 }
  0xbc   :  { %v182_v10 = vpop.f32.mrf.mxu0  ;;  %v482_v32 = vpop.f32.mrf.mxu3 }
  0xbd   :  { %v258_v13 = vadd.f32 %v257_v17, %v182_v10  ;;  %v3780_v12 = vadd.f32 %v3757_v50, %v375_v63 }
  0xc2   :  { %v353_v29 = vpop.f32.mrf.mxu2 }
  0xc3   :  { %v3736_v21 = vpop.f32.mrf.mxu1  ;;  %v376_v5 = vadd.f32 %v353_v29, %v252_v62  ;;  %v264_v29 = vadd.f32 %v3730_v4, %v3720_v59 }
  0xc4   :  { %v3734_v20 = vpop.f32.mrf.mxu0  ;;  %v3742_v36 = vpop.f32.mrf.mxu3 }
  0xc5   :  { %v3785_v10 = vadd.f32 %v3757_v50, %v376_v5 }
  0xc7   :  { %v704_v4 = vsel %vm694_vm4, %v3785_v10, 0.0 }
  0xca   :  { %v356_v33 = vpop.f32.mrf.mxu2 }
  0xcb   :  { %v3738_v24 = vpop.f32.mrf.mxu1 }
  0xcc   :  { %v542_v23 = vpop.f32.mrf.mxu0  ;;  %v3746_v40 = vpop.f32.mrf.mxu3 }
  0xcd   :  { %v543_v8 = vadd.f32 %v542_v23, %v470_v16  ;;  %v261_v16 = vadd.f32 %v3736_v21, %v3734_v20  ;;  %v267_v20 = vadd.f32 %v3732_v9, %v3725_v0 }
  0xd2   :  { %v359_v37 = vpop.f32.mrf.mxu2 }
  0xd3   :  { %v640_v28 = vpop.f32.mrf.mxu1  ;;  %v378_v45 = vadd.f32 %v359_v37, %v258_v13 }
  0xd4   :  { %v545_v27 = vpop.f32.mrf.mxu0  ;;  %v3752_v48 = vpop.f32.mrf.mxu3 }
  0xd5   :  { %v546_v3 = vadd.f32 %v545_v27, %v473_v18  ;;  %v377_v18 = vadd.f32 %v356_v33, %v255_v7  ;;  %v697_v27 = vadd.f32 %v696_v1, %v695_v6  ;;  %v3800_v21 = vadd.f32 %v3757_v50, %v378_v45 }
  0xd7   :  { %v671_v46 = vadd.f32 %v640_v28, %v546_v3  ;;  %v699_v23 = vadd.f32 %v698_v11, %v697_v27  ;;  %v702_v28 = vsel %vm694_vm4, %v3780_v12, 0.0  ;;  %v3795_v33 = vadd.f32 %v3757_v50, %v377_v18 }
  0xd9   :  { %v701_v57 = vadd.f32 %v700_v15, %v699_v23  ;;  %v3803_v59 = vadd.f32 %v3757_v50, %v671_v46  ;;  %v706_v58 = vsel %vm694_vm4, %v3795_v33, 0.0 }
  0xda   :  { %v362_v43 = vpop.f32.mrf.mxu2 }
  0xdb   :  { %v643_v31 = vpop.f32.mrf.mxu1  ;;  %v379_v37 = vadd.f32 %v362_v43, %v261_v16 }
  0xdc   :  { %v548_v30 = vpop.f32.mrf.mxu0  ;;  %v494_v14 = vpop.f32.mrf.mxu3 }
  0xdd   :  { %v549_v25 = vadd.f32 %v548_v30, %v476_v22  ;;  %v670_v22 = vadd.f32 %v3738_v24, %v543_v8  ;;  %v3816_v56 = vadd.f32 %v3757_v50, %v379_v37 }
  0xdf   :  { %v672_v47 = vadd.f32 %v643_v31, %v549_v25  ;;  %v703_v31 = vadd.f32 %v702_v28, %v701_v57  ;;  %v710_v6 = vsel %vm694_vm4, %v3816_v56, 0.0  ;;  %v3393_v57 = vmov 176.0  }
  0xe0   :  { %3381 = vrcp.f32 %v3393_v57 }
  0xe1   :  { %v3819_v51 = vadd.f32 %v3757_v50, %v672_v47 }
  0xe2   :  { %v365_v52 = vpop.f32.mrf.mxu2 }
  0xe3   :  { %v3740_v35 = vpop.f32.mrf.mxu1  ;;  %v380_v24 = vadd.f32 %v365_v52, %v264_v29  ;;  %v725_v13 = vsel %vm694_vm4, %v3819_v51, 0.0 }
  0xe4   :  { %v551_v34 = vpop.f32.mrf.mxu0  ;;  %v497_v5 = vpop.f32.mrf.mxu3 }
  0xe5   :  { %v552_v17 = vadd.f32 %v551_v34, %v479_v26  ;;  %v3810_v34 = vadd.f32 %v3757_v50, %v670_v22  ;;  %v3827_v52 = vadd.f32 %v3757_v50, %v380_v24 }
  0xe7   :  { %v673_v26 = vadd.f32 %v3740_v35, %v552_v17  ;;  %v712_v11 = vsel %vm694_vm4, %v3827_v52, 0.0 }
  0xe9   :  { %v3830_v62 = vadd.f32 %v3757_v50, %v673_v26 }
  0xea   :  { %v368_v49 = vpop.f32.mrf.mxu2 }
  0xeb   :  { %v3744_v39 = vpop.f32.mrf.mxu1  ;;  %v727_v18 = vsel %vm694_vm4, %v3830_v62, 0.0 }
  0xec   :  { %v554_v38 = vpop.f32.mrf.mxu0  ;;  %v500_v26 = vpop.f32.mrf.mxu3 }
  0xed   :  { %v555_v30 = vadd.f32 %v554_v38, %v482_v32  ;;  %v381_v38 = vadd.f32 %v368_v49, %v267_v20 }
  0xef   :  { %v674_v0 = vadd.f32 %v3744_v39, %v555_v30  ;;  %v723_v39 = vsel %vm694_vm4, %v3803_v59, 0.0 }
  0xf1   :  { %v3840_v7 = vadd.f32 %v3757_v50, %v674_v0 }
  0xf3   :  { %v3748_v42 = vpop.f32.mrf.mxu1 }
  0xf4   :  { %v557_v41 = vpop.f32.mrf.mxu0 }
  0xf5   :  { %v558_v32 = vadd.f32 %v557_v41, %v3742_v36  ;;  %v705_v36 = vadd.f32 %v704_v4, %v703_v31  ;;  %v708_v41 = vsel %vm694_vm4, %v3800_v21, 0.0 }
  0xf7   :  { %v675_v63 = vadd.f32 %v3748_v42, %v558_v32  ;;  %v707_v1 = vadd.f32 %v706_v58, %v705_v36  ;;  %v3382_v36 = vpop.eup %3381 }
  0xf8   :  { %vm755_vm5 = vweird.f32 %v3382_v36 }
  0xf9   :  { %v709_v8 = vadd.f32 %v708_v41, %v707_v1  ;;  %v3852_v25 = vadd.f32 %v3757_v50, %v675_v63 }
  0xfb   :  { %v3759_v54 = vpop.f32.mrf.mxu1  ;;  %v711_v45 = vadd.f32 %v710_v6, %v709_v8 }
  0xfc   :  { %v560_v53 = vpop.f32.mrf.mxu0 }
  0xfd   :  { %v561_v35 = vadd.f32 %v560_v53, %v3746_v40  ;;  %v722_v40 = vsel %vm694_vm4, %v3810_v34, 0.0  ;;  %v3837_v53 = vadd.f32 %v3757_v50, %v381_v38  ;;  %v713_v22 = vadd.f32 %v712_v11, %v711_v45 }
  0xff   :  { %v676_v42 = vadd.f32 %v3759_v54, %v561_v35  ;;  %v714_v15 = vsel %vm694_vm4, %v3837_v53, 0.0  ;;  %v729_v54 = vsel %vm694_vm4, %v3840_v7, 0.0 }
 0x100   :  { %v715_v47 = vadd.f32 %v714_v15, %v713_v22 }
 0x101   :  { %v3859_v17 = vadd.f32 %v3757_v50, %v676_v42 }
 0x102   :  { %v716_v38 = vrot.slane %v715_v47, 4 }
 0x103   :  { %v658_v44 = vpop.f32.mrf.mxu1  ;;  %v733_v20 = vsel %vm694_vm4, %v3859_v17, 0.0 }
 0x104   :  { %v563_v19 = vpop.f32.mrf.mxu0 }
 0x105   :  { %v564_v3 = vadd.f32 %v563_v19, %v3752_v48  ;;  %v724_v19 = vadd.f32 %v723_v39, %v722_v40 }
 0x107   :  { %v677_v27 = vadd.f32 %v658_v44, %v564_v3  ;;  %v726_v46 = vadd.f32 %v725_v13, %v724_v19  ;;  %v731_v44 = vsel %vm694_vm4, %v3852_v25, 0.0  ;;  %v717_v3 = vadd.f32 %v716_v38, %v715_v47 }
 0x109   :  { %v728_v30 = vadd.f32 %v727_v18, %v726_v46  ;;  %v3864_v28 = vadd.f32 %v3757_v50, %v677_v27  ;;  %v718_v42 = vrot.slane %v717_v3, 2 }
 0x10b   :  { %v661_v43 = vpop.f32.mrf.mxu1  ;;  %v730_v49 = vadd.f32 %v729_v54, %v728_v30  ;;  %v735_v32 = vsel %vm694_vm4, %v3864_v28, 0.0  ;;  %v719_v11 = vadd.f32 %v718_v42, %v717_v3 }
 0x10c   :  { %v566_v9 = vpop.f32.mrf.mxu0 }
 0x10d   :  { %v567_v48 = vadd.f32 %v566_v9, %v494_v14  ;;  %v732_v24 = vadd.f32 %v731_v44, %v730_v49  ;;  %v720_v46 = vrot.slane %v719_v11, 1 }
 0x10f   :  { %v678_v23 = vadd.f32 %v661_v43, %v567_v48  ;;  %v734_v0 = vadd.f32 %v733_v20, %v732_v24 }
 0x111   :  { %v3869_v4 = vadd.f32 %v3757_v50, %v678_v23  ;;  %v736_v41 = vadd.f32 %v735_v32, %v734_v0 }
 0x113   :  { %v664_v16 = vpop.f32.mrf.mxu1  ;;  %v737_v58 = vsel %vm694_vm4, %v3869_v4, 0.0 }
 0x114   :  { %v569_v14 = vpop.f32.mrf.mxu0  ;;  %v738_v1 = vadd.f32 %v737_v58, %v736_v41 }
 0x115   :  { %v570_v29 = vadd.f32 %v569_v14, %v497_v5  ;;  %v751_v5 = vmul.f32 176.0, %v3382_v36 }
 0x117   :  { %v679_v37 = vadd.f32 %v664_v16, %v570_v29  ;;  %v752_v8 = vsub.f32 1.0, %v751_v5 }
 0x119   :  { %v3874_v31 = vadd.f32 %v3757_v50, %v679_v37  ;;  %v753_v27 = vmul.f32 %v3382_v36, %v752_v8 }
 0x11b   :  { %v667_v43 = vpop.f32.mrf.mxu1  ;;  %v739_v39 = vsel %vm694_vm4, %v3874_v31, 0.0  ;;  %v754_v54 = vadd.f32 %v3382_v36, %v753_v27 }
 0x11c   :  { %v572_v9 = vpop.f32.mrf.mxu0  ;;  %v740_v6 = vadd.f32 %v739_v39, %v738_v1 }
 0x11d   :  { %v573_v35 = vadd.f32 %v572_v9, %v500_v26  ;;  %v3885_v23 = vsel %vm755_vm5, %v3382_v36, %v754_v54 }
 0x11f   :  { %v680_v63 = vadd.f32 %v667_v43, %v573_v35 }
 0x121   :  { %v3881_v40 = vadd.f32 %v3757_v50, %v680_v63  ;;  %v721_v50 = vadd.f32 %v720_v46, %v719_v11 }
 0x123   :  { %v741_v13 = vsel %vm694_vm4, %v3881_v40, 0.0 }
 0x124   :  { %v742_v48 = vadd.f32 %v741_v13, %v740_v6 }
 0x126   :  { %v743_v19 = vrot.slane %v742_v48, 4 }
 0x128   :  { %v744_v18 = vadd.f32 %v743_v19, %v742_v48 }
 0x12a   :  { %v745_v45 = vrot.slane %v744_v18, 2 }
 0x12c   :  { %v746_v15 = vadd.f32 %v745_v45, %v744_v18 }
 0x12e   :  { %v747_v14 = vrot.slane %v746_v15, 1 }
 0x130   :  { %v748_v16 = vadd.f32 %v747_v14, %v746_v15 }
 0x132   :  { %v749_v29 = vadd.f32 %v748_v16, %v721_v50 }
 0x134   :  { %v3888_v22 = vmul.f32 %v3885_v23, %v749_v29 }
 0x136   :  { %v3892_v30 = vsub.f32 %v3765_v60, %v3888_v22  ;;  %v3896_v44 = vsub.f32 %v3762_v55, %v3888_v22  ;;  %v3900_v37 = vsub.f32 %v3768_v61, %v3888_v22  ;;  %v3904_v47 = vsub.f32 %v3773_v2, %v3888_v22 }
 0x137   :  { %v3910_v57 = vsub.f32 %v3780_v12, %v3888_v22  ;;  %v3918_v61 = vsub.f32 %v3785_v10, %v3888_v22  ;;  %v3926_v12 = vsub.f32 %v3795_v33, %v3888_v22  ;;  %v3933_v10 = vsub.f32 %v3800_v21, %v3888_v22 }
 0x138   :  { %v769_v49 = vmul.f32 %v3892_v30, %v3892_v30  ;;  %v770_v60 = vmul.f32 %v3896_v44, %v3896_v44  ;;  %v771_v55 = vmul.f32 %v3900_v37, %v3900_v37  ;;  %v772_v2 = vmul.f32 %v3904_v47, %v3904_v47 }
 0x139   :  { %v773_v32 = vmul.f32 %v3910_v57, %v3910_v57  ;;  %v3937_v9 = vsub.f32 %v3810_v34, %v3888_v22  ;;  %v774_v43 = vmul.f32 %v3918_v61, %v3918_v61  ;;  %v3944_v58 = vsub.f32 %v3803_v59, %v3888_v22 }
 0x13a   :  { %v780_v20 = vsel %vm694_vm4, %v769_v49, 0.0  ;;  %v781_v24 = vsel %vm694_vm4, %v770_v60, 0.0  ;;  %v783_v38 = vsel %vm694_vm4, %v771_v55, 0.0  ;;  %v785_v33 = vsel %vm694_vm4, %v772_v2, 0.0 }
 0x13b   :  { %v782_v26 = vadd.f32 %v781_v24, %v780_v20  ;;  %v3948_v35 = vsub.f32 %v3819_v51, %v3888_v22  ;;  %v3952_v21 = vsub.f32 %v3816_v56, %v3888_v22  ;;  %v775_v34 = vmul.f32 %v3926_v12, %v3926_v12 }
 0x13c   :  { %v787_v41 = vsel %vm694_vm4, %v773_v32, 0.0  ;;  %v3959_v39 = vsub.f32 %v3830_v62, %v3888_v22  ;;  %v818_v59 = vmul.f32 %v3937_v9, %v3937_v9  ;;  %v3965_v51 = vsub.f32 %v3827_v52, %v3888_v22 }
 0x13d   :  { %v784_v0 = vadd.f32 %v783_v38, %v782_v26  ;;  %v819_v56 = vmul.f32 %v3944_v58, %v3944_v58  ;;  %v776_v3 = vmul.f32 %v3933_v10, %v3933_v10  ;;  %v789_v1 = vsel %vm694_vm4, %v774_v43, 0.0 }
 0x13e   :  { %v3974_v62 = vsub.f32 %v3840_v7, %v3888_v22  ;;  %v820_v5 = vmul.f32 %v3948_v35, %v3948_v35  ;;  %v3980_v52 = vsub.f32 %v3837_v53, %v3888_v22  ;;  %v777_v6 = vmul.f32 %v3952_v21, %v3952_v21 }
 0x13f   :  { %v786_v36 = vadd.f32 %v785_v33, %v784_v0  ;;  %v791_v42 = vsel %vm694_vm4, %v775_v34, 0.0  ;;  %v3987_v48 = vsub.f32 %v3852_v25, %v3888_v22  ;;  %v821_v7 = vmul.f32 %v3959_v39, %v3959_v39 }
 0x140   :  { %v829_v8 = vsel %vm694_vm4, %v818_v59, 0.0  ;;  %v830_v19 = vsel %vm694_vm4, %v819_v56, 0.0  ;;  %v778_v53 = vmul.f32 %v3965_v51, %v3965_v51  ;;  %v793_v27 = vsel %vm694_vm4, %v776_v3, 0.0 }
 0x141   :  { %v788_v63 = vadd.f32 %v787_v41, %v786_v36  ;;  %v831_v18 = vadd.f32 %v830_v19, %v829_v8  ;;  %v3998_v45 = vsub.f32 %v3859_v17, %v3888_v22  ;;  %v822_v25 = vmul.f32 %v3974_v62, %v3974_v62 }
 0x142   :  { %v832_v46 = vsel %vm694_vm4, %v820_v5, 0.0  ;;  %v779_v15 = vmul.f32 %v3980_v52, %v3980_v52  ;;  %v795_v50 = vsel %vm694_vm4, %v777_v6, 0.0  ;;  %v4008_v16 = vsub.f32 %v3864_v28, %v3888_v22 }
 0x143   :  { %v790_v13 = vadd.f32 %v789_v1, %v788_v63  ;;  %v833_v14 = vadd.f32 %v832_v46, %v831_v18  ;;  %v823_v17 = vmul.f32 %v3987_v48, %v3987_v48  ;;  %v834_v29 = vsel %vm694_vm4, %v821_v7, 0.0 }
 0x144   :  { %v797_v55 = vsel %vm694_vm4, %v778_v53, 0.0  ;;  %v4016_v2 = vsub.f32 %v3869_v4, %v3888_v22  ;;  %v824_v20 = vmul.f32 %v3998_v45, %v3998_v45  ;;  %v836_v24 = vsel %vm694_vm4, %v822_v25, 0.0 }
 0x145   :  { %v792_v11 = vadd.f32 %v791_v42, %v790_v13  ;;  %v835_v60 = vadd.f32 %v834_v29, %v833_v14  ;;  %v799_v32 = vsel %vm694_vm4, %v779_v15, 0.0  ;;  %v4024_v38 = vsub.f32 %v3874_v31, %v3888_v22  ;;  %v1011_v14 = vld [vmem:[%s5568_s5 + $0x18] sm:$0xff] }
 0x146   :  { %v825_v0 = vmul.f32 %v4008_v16, %v4008_v16  ;;  %v838_v43 = vsel %vm694_vm4, %v823_v17, 0.0  ;;  %v4031_v34 = vsub.f32 %v3881_v40, %v3888_v22  ;;  %v826_v36 = vmul.f32 %v4016_v2, %v4016_v2  ;;  %1155 = vmatpush.msra.mxu3 %v1011_v14  ;;  %v1010_v17 = vld [vmem:[%s5568_s5 + $0x10] sm:$0xff] }
 0x147   :  { %v794_v54 = vadd.f32 %v793_v27, %v792_v11  ;;  %v837_v26 = vadd.f32 %v836_v24, %v835_v60  ;;  %v840_v41 = vsel %vm694_vm4, %v824_v20, 0.0  ;;  %v827_v31 = vmul.f32 %v4024_v38, %v4024_v38  ;;  %v1009_v60 = vld [vmem:[%s5568_s5 + $0x8] sm:$0xff]  ;;  %v3195_v20 = vld [vmem:[%s5568_s5 + $0x50] sm:$0xff] }
 0x148   :  { %v842_v56 = vsel %vm694_vm4, %v825_v0, 0.0  ;;  %v828_v5 = vmul.f32 %v4031_v34, %v4031_v34  ;;  %v844_v40 = vsel %vm694_vm4, %v826_v36, 0.0  ;;  %1156 = vmatpush.msra.mxu3 %v1010_v17 }
 0x149   :  { %v796_v49 = vadd.f32 %v795_v50, %v794_v54  ;;  %v839_v33 = vadd.f32 %v838_v43, %v837_v26  ;;  %v846_v6 = vsel %vm694_vm4, %v827_v31, 0.0  ;;  %v3170_v54 = vld [vmem:[%s5568_s5 + $0x38] sm:$0xff]  ;;  %v3169_v50 = vld [vmem:[%s5568_s5 + $0x30] sm:$0xff]  ;;  %v1008_v26 = vld [vmem:[%s5568_s5] sm:$0xff] }
 0x14a   :  { %v848_v7 = vsel %vm694_vm4, %v828_v5, 0.0  ;;  %1083 = vmatpush.msra.mxu2 %v3170_v54  ;;  %1382 = vmatpush.msra.mxu1 %v3170_v54  ;;  %v3193_v43 = vld [vmem:[%s5568_s5 + $0x40] sm:$0xff] }
 0x14b   :  { %v798_v28 = vadd.f32 %v797_v55, %v796_v49  ;;  %v841_v63 = vadd.f32 %v840_v41, %v839_v33  ;;  %v3168_v49 = vld [vmem:[%s5568_s5 + $0x28] sm:$0xff]  ;;  %v3196_v55 = vld [vmem:[%s5568_s5 + $0x58] sm:$0xff]  ;;  %1157 = vmatpush.msra.mxu3 %v1009_v60  ;;  %v4084_v31 = vld [vmem:[%s5566_s3] ss:$0 sm:$0xff] }
 0x14c   :  { %1084 = vmatpush.msra.mxu2 %v3169_v50  ;;  %1253 = vmatpush.msra.mxu0 %v3196_v55 }
 0x14d   :  { %v800_v4 = vadd.f32 %v799_v32, %v798_v28  ;;  %v843_v1 = vadd.f32 %v842_v56, %v841_v63  ;;  %v3167_v28 = vld [vmem:[%s5568_s5 + $0x20] sm:$0xff]  ;;  %1383 = vmatpush.msra.mxu1 %v3169_v50  ;;  %v3194_v32 = vld [vmem:[%s5568_s5 + $0x48] sm:$0xff]  ;;  %1158 = vmatpush.msra.mxu3 %v1008_v26 }
 0x14e   :  { %1085 = vmatpush.msra.mxu2 %v3168_v49  ;;  %1254 = vmatpush.msra.mxu0 %v3195_v20 }
 0x14f   :  { %v801_v59 = vrot.slane %v800_v4, 4  ;;  %v845_v22 = vadd.f32 %v844_v40, %v843_v1  ;;  %1384 = vmatpush.msra.mxu1 %v3168_v49  ;;  %1547 = vmatpush.msrb.mxu3 %v3196_v55 }
 0x150   :  { %1086 = vmatpush.msra.mxu2 %v3167_v28  ;;  %1255 = vmatpush.msra.mxu0 %v3194_v32 }
 0x151   :  { %v802_v3 = vadd.f32 %v801_v59, %v800_v4  ;;  %v847_v42 = vadd.f32 %v846_v6, %v845_v22  ;;  %1385 = vmatpush.msra.mxu1 %v3167_v28  ;;  %1548 = vmatpush.msrb.mxu3 %v3195_v20 }
 0x152   :  { %1454 = vmatpush.msrb.mxu2 %v1011_v14  ;;  %1256 = vmatpush.msra.mxu0 %v3193_v43 }
 0x153   :  { %v803_v13 = vrot.slane %v802_v3, 2  ;;  %v849_v8 = vadd.f32 %v848_v7, %v847_v42  ;;  %1549 = vmatpush.msrb.mxu3 %v3194_v32 }
 0x154   :  { %1455 = vmatpush.msrb.mxu2 %v1010_v17 }
 0x155   :  { %v804_v19 = vadd.f32 %v803_v13, %v802_v3  ;;  %v850_v53 = vrot.slane %v849_v8, 4  ;;  %1550 = vmatpush.msrb.mxu3 %v3193_v43  ;;  %v4091_v3 = vld [vmem:[%s5567_s4] ss:$0 sm:$0xff] }
 0x156   :  { %1456 = vmatpush.msrb.mxu2 %v1009_v60 }
 0x157   :  { %v851_v11 = vadd.f32 %v850_v53, %v849_v8  ;;  %v805_v18 = vrot.slane %v804_v19, 1 }
 0x158   :  { %1457 = vmatpush.msrb.mxu2 %v1008_v26 }
 0x159   :  { %v852_v27 = vrot.slane %v851_v11, 2  ;;  %v806_v46 = vadd.f32 %v805_v18, %v804_v19 }
 0x15b   :  { %v853_v25 = vadd.f32 %v852_v27, %v851_v11 }
 0x15d   :  { %v854_v15 = vrot.slane %v853_v25, 1 }
 0x15f   :  { %v855_v29 = vadd.f32 %v854_v15, %v853_v25 }
 0x161   :  { %v856_v24 = vadd.f32 %v855_v29, %v806_v46 }
 0x163   :  { %v857_v0 = vmul.f32 %v856_v24, %v3885_v23 }
 0x165   :  { %v858_v4 = vadd.f32 1e-05, %v857_v0 }
 0x167   :  { %3383 = vrsqrt.f32 %v858_v4  ;;  %vm865_vm7 = vweird.f32 %v858_v4 }
 0x16d   :  { %v3384_v23 = vpop.eup %3383 }
 0x16e   :  { %v860_v33 = vmul.f32 %v3384_v23, %v858_v4  ;;  %vm866_vm6 = vweird.f32 %v3384_v23 }
 0x16f   :  { %vm867_vm8 = vmor %vm865_vm7, %vm866_vm6 }
 0x170   :  { %v861_v36 = vmul.f32 %v3384_v23, %v860_v33 }
 0x172   :  { %v862_v41 = vmul.f32 0.5, %v861_v36 }
 0x174   :  { %v863_v59 = vsub.f32 1.5, %v862_v41 }
 0x176   :  { %v864_v63 = vmul.f32 %v3384_v23, %v863_v59 }
 0x178   :  { %v4086_v56 = vsel %vm867_vm8, %v3384_v23, %v864_v63 }
 0x179   :  { %v918_v1 = vmul.f32 %v4086_v56, %v4031_v34  ;;  %v869_v5 = vmul.f32 %v4086_v56, %v3892_v30  ;;  %v870_v40 = vmul.f32 %v4086_v56, %v3896_v44  ;;  %v908_v22 = vmul.f32 %v4086_v56, %v3937_v9 }
 0x17a   :  { %v909_v6 = vmul.f32 %v4086_v56, %v3944_v58  ;;  %v871_v13 = vmul.f32 %v4086_v56, %v3900_v37  ;;  %v910_v42 = vmul.f32 %v4086_v56, %v3948_v35  ;;  %v872_v34 = vmul.f32 %v4086_v56, %v3904_v47 }
 0x17b   :  { %v929_v30 = vmul.f32 %v4084_v31, %v918_v1  ;;  %v883_v7 = vmul.f32 %v4084_v31, %v869_v5  ;;  %v884_v44 = vmul.f32 %v4084_v31, %v870_v40  ;;  %v919_v9 = vmul.f32 %v4084_v31, %v908_v22 }
 0x17c   :  { %v920_v8 = vmul.f32 %v4084_v31, %v909_v6  ;;  %v885_v58 = vmul.f32 %v4084_v31, %v871_v13  ;;  %v921_v37 = vmul.f32 %v4084_v31, %v910_v42  ;;  %v886_v25 = vmul.f32 %v4084_v31, %v872_v34 }
 0x17d   :  { %v4117_v19 = vadd.f32 %v4091_v3, %v929_v30  ;;  %v897_v35 = vadd.f32 %v4091_v3, %v883_v7  ;;  %v898_v47 = vadd.f32 %v4091_v3, %v884_v44  ;;  %v930_v53 = vadd.f32 %v4091_v3, %v919_v9 }
 0x17e   :  { %v931_v11 = vadd.f32 %v4091_v3, %v920_v8  ;;  %v899_v18 = vadd.f32 %v4091_v3, %v885_v58  ;;  %v932_v27 = vadd.f32 %v4091_v3, %v921_v37  ;;  %v900_v33 = vadd.f32 %v4091_v3, %v886_v25 }
 0x17f   :  { %vm941_vm9 = vcmp.ge.f32.partialorder %v897_v35, 0.0  ;;  %v952_v46 = vmul.f32 0.2, %v897_v35  ;;  %vm942_vm10 = vcmp.ge.f32.partialorder %v898_v47, 0.0  ;;  %v953_v15 = vmul.f32 0.2, %v898_v47 }
 0x180   :  { %vm974_vm11 = vcmp.ge.f32.partialorder %v930_v53, 0.0  ;;  %vm975_vm12 = vcmp.ge.f32.partialorder %v931_v11, 0.0  ;;  %v985_v54 = vmul.f32 0.2, %v930_v53  ;;  %v986_v14 = vmul.f32 0.2, %v931_v11 }
 0x181   :  { %v963_v50 = vsel %vm941_vm9, %v897_v35, %v952_v46  ;;  %v964_v17 = vsel %vm942_vm10, %v898_v47, %v953_v15  ;;  %vm943_vm13 = vcmp.ge.f32.partialorder %v899_v18, 0.0  ;;  %v954_v29 = vmul.f32 0.2, %v899_v18 }
 0x182   :  { %v1028_v49 = vrot.slane %v963_v50, 1  ;;  %3182 = vmatmul.msk.f32.vlgmr.msra.gmra.mxu3 %vm694_vm4, %v963_v50  ;;  %v1198_v60 = vrot.slane %v963_v50, 2  ;;  %v1029_v55 = vrot.slane %v964_v17, 1  ;;  %v1199_v20 = vrot.slane %v964_v17, 2 }
 0x183   :  { %v4127_v24 = vsel %vm974_vm11, %v930_v53, %v985_v54  ;;  %v4129_v28 = vsel %vm975_vm12, %v931_v11, %v986_v14  ;;  %vm976_vm14 = vcmp.ge.f32.partialorder %v932_v27, 0.0  ;;  %v965_v4 = vsel %vm943_vm13, %v899_v18, %v954_v29 }
 0x184   :  { %v1030_v26 = vsel %vm93_vm1, %v1028_v49, %v1029_v55  ;;  %v1200_v32 = vsel %vm272_vm3, %v1198_v60, %v1199_v20  ;;  %v1327_v0 = vrot.slane %v4127_v24, 1  ;;  %v1328_v43 = vrot.slane %v4129_v28, 1 }
 0x185   :  { %3171 = vmatmul.msk.f32.vlgmr.msra.gmra.mxu2 %vm694_vm4, %v1030_v26  ;;  %3197 = vmatmul.msk.f32.vlgmr.msra.gmra.mxu0 %vm694_vm4, %v1200_v32  ;;  %v987_v23 = vmul.f32 0.2, %v932_v27  ;;  %v911_v41 = vmul.f32 %v4086_v56, %v3959_v39  ;;  %v873_v59 = vmul.f32 %v4086_v56, %v3910_v57  ;;  %v912_v1 = vmul.f32 %v4086_v56, %v3974_v62 }
 0x186   :  { %v1329_v36 = vsel %vm93_vm1, %v1327_v0, %v1328_v43  ;;  %v1031_v5 = vrot.slane %v965_v4, 1  ;;  %v1201_v40 = vrot.slane %v965_v4, 2  ;;  %v955_v6 = vmul.f32 0.2, %v900_v33 }
 0x187   :  { %3208 = vmatmul.msk.f32.vlgmr.msra.gmra.mxu1 %vm694_vm4, %v1329_v36  ;;  %v4145_v63 = vsel %vm976_vm14, %v932_v27, %v987_v23  ;;  %v922_v22 = vmul.f32 %v4084_v31, %v911_v41  ;;  %v887_v13 = vmul.f32 %v4084_v31, %v873_v59  ;;  %vm944_vm15 = vcmp.ge.f32.partialorder %v900_v33, 0.0 }
 0x188   :  { %v1330_v39 = vrot.slane %v4145_v63, 1  ;;  %v923_v42 = vmul.f32 %v4084_v31, %v912_v1  ;;  %v1032_v34 = vsel %vm93_vm1, %v1029_v55, %v1031_v5  ;;  %v1202_v62 = vsel %vm272_vm3, %v1199_v20, %v1201_v40 }
 0x189   :  { %v933_v57 = vadd.f32 %v4091_v3, %v922_v22  ;;  %v966_v7 = vsel %vm944_vm15, %v900_v33, %v955_v6  ;;  %v901_v44 = vadd.f32 %v4091_v3, %v887_v13  ;;  %v874_v9 = vmul.f32 %v4086_v56, %v3918_v61 }
 0x18a   :  { %3183 = vmatmul.msk.f32.gmra.mxu3 %vm694_vm4, %v964_v17  ;;  %v1331_v8 = vsel %vm93_vm1, %v1328_v43, %v1330_v39  ;;  %v934_v37 = vadd.f32 %v4091_v3, %v923_v42  ;;  %v913_v35 = vmul.f32 %v4086_v56, %v3987_v48  ;;  %v1033_v47 = vrot.slane %v966_v7, 1 }
 0x18b   :  { %vm977_vm0 = vcmp.ge.f32.partialorder %v933_v57, 0.0  ;;  %v988_v30 = vmul.f32 0.2, %v933_v57  ;;  %v1203_v53 = vrot.slane %v966_v7, 2  ;;  %v956_v11 = vmul.f32 0.2, %v901_v44 }
 0x18c   :  { %v888_v18 = vmul.f32 %v4084_v31, %v874_v9  ;;  %vm945_vm2 = vcmp.ge.f32.partialorder %v901_v44, 0.0  ;;  %v989_v27 = vmul.f32 0.2, %v934_v37  ;;  %v924_v25 = vmul.f32 %v4084_v31, %v913_v35 }
 0x18d   :  { %3172 = vmatmul.msk.f32.gmra.mxu2 %vm694_vm4, %v1032_v34  ;;  %3198 = vmatmul.msk.f32.gmra.mxu0 %vm694_vm4, %v1202_v62  ;;  %v4164_v58 = vsel %vm977_vm0, %v933_v57, %v988_v30  ;;  %v1034_v46 = vsel %vm93_vm1, %v1031_v5, %v1033_v47  ;;  %v1204_v15 = vsel %vm272_vm3, %v1201_v40, %v1203_v53  ;;  %vm978_vm5 = vcmp.ge.f32.partialorder %v934_v37, 0.0 }
 0x18e   :  { %v1332_v61 = vrot.slane %v4164_v58, 1  ;;  %v967_v48 = vsel %vm945_vm2, %v901_v44, %v956_v11  ;;  %v902_v54 = vadd.f32 %v4091_v3, %v888_v18  ;;  %v875_v14 = vmul.f32 %v4086_v56, %v3926_v12 }
 0x18f   :  { %3209 = vmatmul.msk.f32.gmra.mxu1 %vm694_vm4, %v1331_v8  ;;  %v4182_v17 = vsel %vm978_vm5, %v934_v37, %v989_v27  ;;  %v935_v29 = vadd.f32 %v4091_v3, %v924_v25  ;;  %v914_v49 = vmul.f32 %v4086_v56, %v3998_v45  ;;  %v1035_v60 = vrot.slane %v967_v48, 1 }
 0x190   :  { %v1333_v50 = vsel %vm93_vm1, %v1330_v39, %v1332_v61  ;;  %v1205_v55 = vrot.slane %v967_v48, 2  ;;  %v957_v20 = vmul.f32 0.2, %v902_v54  ;;  %v889_v26 = vmul.f32 %v4084_v31, %v875_v14 }
 0x191   :  { %v1334_v12 = vrot.slane %v4182_v17, 1  ;;  %vm946_vm6 = vcmp.ge.f32.partialorder %v902_v54, 0.0  ;;  %v878_v32 = vmul.f32 %v4086_v56, %v3965_v51  ;;  %v990_v0 = vmul.f32 0.2, %v935_v29 }
 0x192   :  { %3184 = vmatmul.msk.f32.gmra.mxu3 %vm694_vm4, %v965_v4  ;;  %v925_v43 = vmul.f32 %v4084_v31, %v914_v49  ;;  %v1036_v4 = vsel %vm93_vm1, %v1033_v47, %v1035_v60  ;;  %v1206_v45 = vsel %vm272_vm3, %v1203_v53, %v1205_v55  ;;  %vm979_vm7 = vcmp.ge.f32.partialorder %v935_v29, 0.0 }
 0x193   :  { %v968_v23 = vsel %vm946_vm6, %v902_v54, %v957_v20  ;;  %v903_v33 = vadd.f32 %v4091_v3, %v889_v26  ;;  %v876_v36 = vmul.f32 %v4086_v56, %v3933_v10  ;;  %v1335_v51 = vsel %vm93_vm1, %v1332_v61, %v1334_v12 }
 0x194   :  { %v915_v41 = vmul.f32 %v4086_v56, %v4008_v16  ;;  %v892_v59 = vmul.f32 %v4084_v31, %v878_v32  ;;  %v917_v1 = vmul.f32 %v4086_v56, %v4024_v38  ;;  %v4207_v5 = vsel %vm979_vm7, %v935_v29, %v990_v0 }
 0x195   :  { %3173 = vmatmul.msk.f32.gmra.mxu2 %vm694_vm4, %v1034_v46  ;;  %3199 = vmatmul.msk.f32.gmra.mxu0 %vm694_vm4, %v1204_v15  ;;  %v936_v40 = vadd.f32 %v4091_v3, %v925_v43  ;;  %v1037_v22 = vrot.slane %v968_v23, 1  ;;  %v1207_v6 = vrot.slane %v968_v23, 2  ;;  %v877_v10 = vmul.f32 %v4086_v56, %v3952_v21 }
 0x196   :  { %v906_v13 = vadd.f32 %v4091_v3, %v892_v59  ;;  %v958_v39 = vmul.f32 0.2, %v903_v33  ;;  %v890_v16 = vmul.f32 %v4084_v31, %v876_v36  ;;  %v928_v57 = vmul.f32 %v4084_v31, %v917_v1 }
 0x197   :  { %3210 = vmatmul.msk.f32.gmra.mxu1 %vm694_vm4, %v1333_v50  ;;  %v879_v38 = vmul.f32 %v4086_v56, %v3980_v52  ;;  %v1336_v42 = vrot.slane %v4207_v5, 1  ;;  %vm947_vm8 = vcmp.ge.f32.partialorder %v903_v33, 0.0  ;;  %v926_v34 = vmul.f32 %v4084_v31, %v915_v41 }
 0x198   :  { %v961_v62 = vmul.f32 0.2, %v906_v13  ;;  %v991_v30 = vmul.f32 0.2, %v936_v40  ;;  %vm950_vm9 = vcmp.ge.f32.partialorder %v906_v13, 0.0  ;;  %v4221_v21 = vadd.f32 %v4091_v3, %v928_v57 }
 0x199   :  { %v1038_v44 = vsel %vm93_vm1, %v1035_v60, %v1037_v22  ;;  %v1208_v9 = vsel %vm272_vm3, %v1205_v55, %v1207_v6  ;;  %vm980_vm10 = vcmp.ge.f32.partialorder %v936_v40, 0.0  ;;  %v969_v52 = vsel %vm947_vm8, %v903_v33, %v958_v39 }
 0x19a   :  { %3185 = vmatmul.msk.f32.gmra.mxu3 %vm694_vm4, %v966_v7  ;;  %v893_v7 = vmul.f32 %v4084_v31, %v879_v38  ;;  %v904_v8 = vadd.f32 %v4091_v3, %v890_v16  ;;  %v1337_v37 = vsel %vm93_vm1, %v1334_v12, %v1336_v42  ;;  %v4230_v35 = vsel %vm950_vm9, %v906_v13, %v961_v62 }
 0x19b   :  { %v4234_v53 = vsel %vm980_vm10, %v936_v40, %v991_v30  ;;  %v937_v11 = vadd.f32 %v4091_v3, %v926_v34  ;;  %v891_v18 = vmul.f32 %v4084_v31, %v877_v10  ;;  %v916_v61 = vmul.f32 %v4086_v56, %v4016_v2 }
 0x19c   :  { %v907_v47 = vadd.f32 %v4091_v3, %v893_v7  ;;  %v1039_v27 = vrot.slane %v969_v52, 1  ;;  %v1209_v25 = vrot.slane %v969_v52, 2  ;;  %v959_v15 = vmul.f32 0.2, %v904_v8 }
 0x19d   :  { %3174 = vmatmul.msk.f32.gmra.mxu2 %vm694_vm4, %v1036_v4  ;;  %3200 = vmatmul.msk.f32.gmra.mxu0 %vm694_vm4, %v1206_v45  ;;  %v1215_v54 = vrot.slane %v4230_v35, 2  ;;  %v1338_v14 = vrot.slane %v4234_v53, 1  ;;  %vm948_vm12 = vcmp.ge.f32.partialorder %v904_v8, 0.0  ;;  %v992_v29 = vmul.f32 0.2, %v937_v11 }
 0x19e   :  { %vm951_vm11 = vcmp.ge.f32.partialorder %v907_v47, 0.0  ;;  %v962_v46 = vmul.f32 0.2, %v907_v47  ;;  %v927_v49 = vmul.f32 %v4084_v31, %v916_v61  ;;  %v1040_v60 = vsel %vm93_vm1, %v1037_v22, %v1039_v27 }
 0x19f   :  { %3211 = vmatmul.msk.f32.gmra.mxu1 %vm694_vm4, %v1335_v51  ;;  %v1210_v55 = vsel %vm272_vm3, %v1207_v6, %v1209_v25  ;;  %vm981_vm13 = vcmp.ge.f32.partialorder %v937_v11, 0.0  ;;  %v905_v20 = vadd.f32 %v4091_v3, %v891_v18  ;;  %v970_v26 = vsel %vm948_vm12, %v904_v8, %v959_v15 }
 0x1a0   :  { %v4244_v50 = vsel %vm951_vm11, %v907_v47, %v962_v46  ;;  %v1339_v32 = vsel %vm93_vm1, %v1336_v42, %v1338_v14  ;;  %v4258_v0 = vsel %vm981_vm13, %v937_v11, %v992_v29  ;;  %v938_v43 = vadd.f32 %v4091_v3, %v927_v49 }
 0x1a1   :  { %v1047_v2 = vrot.slane %v4244_v50, 1  ;;  %v1217_v56 = vrot.slane %v4244_v50, 2  ;;  %v1041_v4 = vrot.slane %v970_v26, 1  ;;  %v1211_v45 = vrot.slane %v970_v26, 2 }
 0x1a2   :  { %3186 = vmatmul.msk.f32.gmra.mxu3 %vm694_vm4, %v967_v48  ;;  %v1045_v48 = vrot.slane %v4230_v35, 1  ;;  %v1340_v33 = vrot.slane %v4258_v0, 1  ;;  %vm949_vm14 = vcmp.ge.f32.partialorder %v905_v20, 0.0  ;;  %v993_v36 = vmul.f32 0.2, %v938_v43 }
 0x1a3   :  { %v1218_v31 = vsel %vm272_vm3, %v1215_v54, %v1217_v56  ;;  %v1042_v51 = vsel %vm93_vm1, %v1039_v27, %v1041_v4  ;;  %v1212_v41 = vsel %vm272_vm3, %v1209_v25, %v1211_v45  ;;  %vm982_vm15 = vcmp.ge.f32.partialorder %v938_v43, 0.0 }
 0x1a4   :  { %v1048_v12 = vsel %vm93_vm1, %v1045_v48, %v1047_v2  ;;  %v1341_v3 = vsel %vm93_vm1, %v1338_v14, %v1340_v33  ;;  %v4269_v1 = vsel %vm982_vm15, %v938_v43, %v993_v36  ;;  %v994_v10 = vmul.f32 0.2, %v4221_v21 }
 0x1a5   :  { %3175 = vmatmul.msk.f32.gmra.mxu2 %vm694_vm4, %v1038_v44  ;;  %3201 = vmatmul.msk.f32.gmra.mxu0 %vm694_vm4, %v1208_v9  ;;  %v1342_v6 = vrot.slane %v4269_v1, 1  ;;  %vm983_vm0 = vcmp.ge.f32.partialorder %v4221_v21, 0.0  ;;  %v995_v42 = vmul.f32 0.2, %v4117_v19  ;;  %vm984_vm2 = vcmp.ge.f32.partialorder %v4117_v19, 0.0 }
 0x1a6   :  { %v4282_v57 = vsel %vm983_vm0, %v4221_v21, %v994_v10  ;;  %v1493_v9 = vrot.slane %v4129_v28, 2  ;;  %v1495_v8 = vrot.slane %v4145_v63, 2  ;;  %v1507_v15 = vrot.slane %v4269_v1, 2 }
 0x1a7   :  { %3212 = vmatmul.msk.f32.gmra.mxu1 %vm694_vm4, %v1337_v37  ;;  %v1343_v16 = vsel %vm93_vm1, %v1340_v33, %v1342_v6  ;;  %v1344_v38 = vrot.slane %v4282_v57, 1  ;;  %v4295_v21 = vsel %vm984_vm2, %v4117_v19, %v995_v42  ;;  %v1492_v19 = vrot.slane %v4127_v24, 2 }
 0x1a8   :  { %v1346_v7 = vrot.slane %v4295_v21, 1  ;;  %v1496_v37 = vsel %vm272_vm3, %v1493_v9, %v1495_v8  ;;  %v1509_v14 = vrot.slane %v4282_v57, 2  ;;  %vm1609_vm5 = vcmask 523264  }
 0x1a9   :  { %v1345_v30 = vsel %vm93_vm1, %v1342_v6, %v1344_v38  ;;  %vm1629_vm6 = vcmask 521216  }
 0x1aa   :  { %3187 = vmatmul.msk.f32.gmra.mxu3 %vm694_vm4, %v968_v23  ;;  %v960_v23 = vmul.f32 0.2, %v905_v20  ;;  %v1347_v44 = vsel %vm93_vm1, %v1344_v38, %v1346_v7  ;;  %v1510_v29 = vsel %vm272_vm3, %v1507_v15, %v1509_v14 }
 0x1ac   :  { %v971_v59 = vsel %vm949_vm14, %v905_v20, %v960_v23 }
 0x1ad   :  { %3176 = vmatmul.msk.f32.gmra.mxu2 %vm694_vm4, %v1040_v60  ;;  %3202 = vmatmul.msk.f32.gmra.mxu0 %vm694_vm4, %v1210_v55  ;;  %v1043_v40 = vrot.slane %v971_v59, 1  ;;  %v1213_v22 = vrot.slane %v971_v59, 2 }
 0x1af   :  { %3213 = vmatmul.msk.f32.gmra.mxu1 %vm694_vm4, %v1339_v32  ;;  %v1044_v13 = vsel %vm93_vm1, %v1041_v4, %v1043_v40  ;;  %v1214_v39 = vsel %vm272_vm3, %v1211_v45, %v1213_v22  ;;  %v1046_v34 = vsel %vm93_vm1, %v1043_v40, %v1045_v48  ;;  %v1216_v62 = vsel %vm272_vm3, %v1213_v22, %v1215_v54 }
 0x1b2   :  { %3188 = vmatmul.msk.f32.gmra.mxu3 %vm694_vm4, %v969_v52  ;;  %v1494_v52 = vsel %vm272_vm3, %v1492_v19, %v1493_v9 }
 0x1b5   :  { %3177 = vmatmul.msk.f32.gmra.mxu2 %vm694_vm4, %v1042_v51  ;;  %3203 = vmatmul.msk.f32.gmra.mxu0 %vm694_vm4, %v1212_v41 }
 0x1b7   :  { %3214 = vmatmul.msk.f32.gmra.mxu1 %vm694_vm4, %v1341_v3 }
 0x1ba   :  { %3189 = vmatmul.msk.f32.gmra.mxu3 %vm694_vm4, %v970_v26 }
 0x1bd   :  { %3178 = vmatmul.msk.f32.gmra.mxu2 %vm694_vm4, %v1044_v13  ;;  %3204 = vmatmul.msk.f32.gmra.mxu0 %vm694_vm4, %v1214_v39 }
 0x1bf   :  { %3215 = vmatmul.msk.f32.gmra.mxu1 %vm694_vm4, %v1343_v16 }
 0x1c2   :  { %3190 = vmatmul.msk.f32.gmra.mxu3 %vm694_vm4, %v971_v59 }
 0x1c5   :  { %3179 = vmatmul.msk.f32.gmra.mxu2 %vm694_vm4, %v1046_v34  ;;  %3205 = vmatmul.msk.f32.gmra.mxu0 %vm694_vm4, %v1216_v62 }
 0x1c7   :  { %3216 = vmatmul.msk.f32.gmra.mxu1 %vm694_vm4, %v1345_v30 }
 0x1ca   :  { %3191 = vmatmul.msk.f32.gmra.mxu3 %vm694_vm4, %v4230_v35  ;;  %v1497_v35 = vrot.slane %v4164_v58, 2 }
 0x1cc   :  { %v1498_v47 = vsel %vm272_vm3, %v1495_v8, %v1497_v35 }
 0x1cd   :  { %3180 = vmatmul.msk.f32.gmra.mxu2 %vm694_vm4, %v1048_v12  ;;  %3206 = vmatmul.msk.f32.gmra.mxu0 %vm694_vm4, %v1218_v31 }
 0x1cf   :  { %3217 = vmatmul.msk.f32.gmra.mxu1 %vm694_vm4, %v1347_v44 }
 0x1d2   :  { %3192 = vmatmul.msk.f32.gmra.mxu3 %vm694_vm4, %v4244_v50 }
 0x1d5   :  { %3181 = vmatmul.msk.f32.gmra.mxu2 %vm694_vm4, %v1047_v2  ;;  %3207 = vmatmul.msk.f32.gmra.mxu0 %vm694_vm4, %v1217_v56 }
 0x1d7   :  { %3218 = vmatmul.msk.f32.gmra.mxu1 %vm694_vm4, %v1346_v7 }
 0x1da   :  { %3230 = vmatmul.msk.f32.vlgmr.msrb.gmra.mxu3 %vm694_vm4, %v1494_v52 }
 0x1dd   :  { %3219 = vmatmul.msk.f32.vlgmr.msrb.gmra.mxu2 %vm694_vm4, %v4127_v24  ;;  %v1499_v24 = vrot.slane %v4182_v17, 2 }
 0x1df   :  { %v1500_v11 = vsel %vm272_vm3, %v1497_v35, %v1499_v24 }
 0x1e2   :  { %3231 = vmatmul.msk.f32.gmra.mxu3 %vm694_vm4, %v1496_v37 }
 0x1e5   :  { %3220 = vmatmul.msk.f32.gmra.mxu2 %vm694_vm4, %v4129_v28  ;;  %v1501_v28 = vrot.slane %v4207_v5, 2 }
 0x1e7   :  { %v1502_v18 = vsel %vm272_vm3, %v1499_v24, %v1501_v28 }
 0x1ea   :  { %3232 = vmatmul.msk.f32.gmra.mxu3 %vm694_vm4, %v1498_v47 }
 0x1ed   :  { %3221 = vmatmul.msk.f32.gmra.mxu2 %vm694_vm4, %v4145_v63  ;;  %v1503_v63 = vrot.slane %v4234_v53, 2 }
 0x1ef   :  { %v1504_v61 = vsel %vm272_vm3, %v1501_v28, %v1503_v63 }
 0x1f2   :  { %3233 = vmatmul.msk.f32.gmra.mxu3 %vm694_vm4, %v1500_v11 }
 0x1f5   :  { %3222 = vmatmul.msk.f32.gmra.mxu2 %vm694_vm4, %v4164_v58  ;;  %v1505_v58 = vrot.slane %v4258_v0, 2 }
 0x1f7   :  { %v1506_v46 = vsel %vm272_vm3, %v1503_v63, %v1505_v58  ;;  %v1508_v54 = vsel %vm272_vm3, %v1505_v58, %v1507_v15 }
 0x1fa   :  { %3234 = vmatmul.msk.f32.gmra.mxu3 %vm694_vm4, %v1502_v18 }
 0x1fd   :  { %3223 = vmatmul.msk.f32.gmra.mxu2 %vm694_vm4, %v4182_v17 }
 0x202   :  { %3235 = vmatmul.msk.f32.gmra.mxu3 %vm694_vm4, %v1504_v61  ;;  %v1258_v32 = vpop.f32.mrf.mxu0 }
 0x204   :  { %v4369_v33 = vpop.f32.mrf.mxu1 }
 0x205   :  { %v4338_v27 = vpop.f32.mrf.mxu3  ;;  %3224 = vmatmul.msk.f32.gmra.mxu2 %vm694_vm4, %v4207_v5 }
 0x208   :  { %v4343_v25 = vpop.f32.mrf.mxu2 }
 0x209   :  { %v1161_v11 = vadd.f32 %v4338_v27, %v4343_v25 }
 0x20a   :  { %3236 = vmatmul.msk.f32.gmra.mxu3 %vm694_vm4, %v1506_v46  ;;  %v1261_v4 = vpop.f32.mrf.mxu0  ;;  %v4401_v46 = vld [vmem:[%s5569_s6] ss:$0 sm:$0xff] }
 0x20b   :  { %v1291_v58 = vadd.f32 %v1258_v32, %v1161_v11 }
 0x20c   :  { %v1390_v3 = vpop.f32.mrf.mxu1 }
 0x20d   :  { %v4347_v17 = vpop.f32.mrf.mxu3  ;;  %3225 = vmatmul.msk.f32.gmra.mxu2 %vm694_vm4, %v4234_v53  ;;  %v1511_v53 = vrot.slane %v4295_v21, 2 }
 0x20f   :  { %v1512_v56 = vsel %vm272_vm3, %v1509_v14, %v1511_v53 }
 0x210   :  { %v1091_v48 = vpop.f32.mrf.mxu2 }
 0x211   :  { %v1164_v47 = vadd.f32 %v4347_v17, %v1091_v48  ;;  %v4409_v48 = vadd.f32 %v4401_v46, %v1291_v58 }
 0x212   :  { %3237 = vmatmul.msk.f32.gmra.mxu3 %vm694_vm4, %v1508_v54  ;;  %v1264_v51 = vpop.f32.mrf.mxu0 }
 0x213   :  { %v1292_v63 = vadd.f32 %v1261_v4, %v1164_v47  ;;  %v1610_v32 = vsel %vm1609_vm5, %v4409_v48, 0.0 }
 0x214   :  { %v1393_v6 = vpop.f32.mrf.mxu1 }
 0x215   :  { %v1166_v5 = vpop.f32.mrf.mxu3  ;;  %3226 = vmatmul.msk.f32.gmra.mxu2 %vm694_vm4, %v4258_v0  ;;  %v4406_v17 = vadd.f32 %v4401_v46, %v1292_v63 }
 0x218   :  { %v1094_v50 = vpop.f32.mrf.mxu2 }
 0x219   :  { %v1167_v28 = vadd.f32 %v1166_v5, %v1094_v50 }
 0x21a   :  { %3238 = vmatmul.msk.f32.gmra.mxu3 %vm694_vm4, %v1510_v29  ;;  %v1267_v40 = vpop.f32.mrf.mxu0 }
 0x21b   :  { %v1293_v15 = vadd.f32 %v1264_v51, %v1167_v28 }
 0x21d   :  { %v1169_v49 = vpop.f32.mrf.mxu3  ;;  %3227 = vmatmul.msk.f32.gmra.mxu2 %vm694_vm4, %v4269_v1  ;;  %v4412_v5 = vadd.f32 %v4401_v46, %v1293_v15 }
 0x21f   :  { %v1613_v4 = vsel %vm1609_vm5, %v4412_v5, 0.0 }
 0x220   :  { %v1097_v2 = vpop.f32.mrf.mxu2 }
 0x221   :  { %v1170_v61 = vadd.f32 %v1169_v49, %v1097_v2 }
 0x222   :  { %3239 = vmatmul.msk.f32.gmra.mxu3 %vm694_vm4, %v1512_v56  ;;  %v1270_v13 = vpop.f32.mrf.mxu0 }
 0x223   :  { %v1294_v27 = vadd.f32 %v1267_v40, %v1170_v61 }
 0x225   :  { %v1172_v60 = vpop.f32.mrf.mxu3  ;;  %3228 = vmatmul.msk.f32.gmra.mxu2 %vm694_vm4, %v4282_v57  ;;  %v1396_v57 = vpop.f32.mrf.mxu1 }
 0x228   :  { %v1100_v55 = vpop.f32.mrf.mxu2 }
 0x229   :  { %v1173_v14 = vadd.f32 %v1172_v60, %v1100_v55  ;;  %v1611_v60 = vsel %vm1609_vm5, %v4406_v17, 0.0  ;;  %v4419_v55 = vadd.f32 %v4401_v46, %v1294_v27 }
 0x22a   :  { %3240 = vmatmul.msk.f32.gmra.mxu3 %vm694_vm4, %v1511_v53  ;;  %v1273_v38 = vpop.f32.mrf.mxu0 }
 0x22b   :  { %v1295_v50 = vadd.f32 %v1270_v13, %v1173_v14  ;;  %v1612_v13 = vadd.f32 %v1611_v60, %v1610_v32 }
 0x22d   :  { %v1175_v20 = vpop.f32.mrf.mxu3  ;;  %3229 = vmatmul.msk.f32.gmra.mxu2 %vm694_vm4, %v4295_v21  ;;  %v1399_v62 = vpop.f32.mrf.mxu1  ;;  %v1614_v11 = vadd.f32 %v1613_v4, %v1612_v13 }
 0x230   :  { %v1103_v26 = vpop.f32.mrf.mxu2 }
 0x231   :  { %v1176_v25 = vadd.f32 %v1175_v20, %v1103_v26 }
 0x232   :  { %v1276_v21 = vpop.f32.mrf.mxu0 }
 0x233   :  { %v1296_v20 = vadd.f32 %v1273_v38, %v1176_v25 }
 0x235   :  { %v1178_v12 = vpop.f32.mrf.mxu3  ;;  %v4387_v19 = vpop.f32.mrf.mxu1  ;;  %v4434_v38 = vadd.f32 %v4401_v46, %v1296_v20 }
 0x238   :  { %v1106_v31 = vpop.f32.mrf.mxu2 }
 0x239   :  { %v1179_v49 = vadd.f32 %v1178_v12, %v1106_v31  ;;  %v4426_v31 = vadd.f32 %v4401_v46, %v1295_v50 }
 0x23a   :  { %v1279_v52 = vpop.f32.mrf.mxu0 }
 0x23d   :  { %v1181_v0 = vpop.f32.mrf.mxu3  ;;  %v4391_v37 = vpop.f32.mrf.mxu1 }
 0x240   :  { %v1109_v43 = vpop.f32.mrf.mxu2 }
 0x241   :  { %v1182_v56 = vadd.f32 %v1181_v0, %v1109_v43  ;;  %v1297_v0 = vadd.f32 %v1276_v21, %v1179_v49 }
 0x242   :  { %v1282_v24 = vpop.f32.mrf.mxu0 }
 0x243   :  { %v1298_v47 = vadd.f32 %v1279_v52, %v1182_v56 }
 0x245   :  { %v1184_v45 = vpop.f32.mrf.mxu3  ;;  %v4403_v29 = vpop.f32.mrf.mxu1 }
 0x248   :  { %v1112_v23 = vpop.f32.mrf.mxu2 }
 0x249   :  { %v1185_v51 = vadd.f32 %v1184_v45, %v1112_v23 }
 0x24a   :  { %v1285_v53 = vpop.f32.mrf.mxu0 }
 0x24b   :  { %v1299_v63 = vadd.f32 %v1282_v24, %v1185_v51 }
 0x24d   :  { %v4371_v36 = vpop.f32.mrf.mxu3  ;;  %v1411_v28 = vpop.f32.mrf.mxu1 }
 0x250   :  { %v4373_v41 = vpop.f32.mrf.mxu2 }
 0x255   :  { %v4375_v59 = vpop.f32.mrf.mxu3  ;;  %v1414_v4 = vpop.f32.mrf.mxu1 }
 0x258   :  { %v4377_v1 = vpop.f32.mrf.mxu2 }
 0x25d   :  { %v4379_v22 = vpop.f32.mrf.mxu3 }
 0x260   :  { %v1459_v10 = vpop.f32.mrf.mxu2 }
 0x261   :  { %v1460_v43 = vadd.f32 %v1459_v10, %v4369_v33  ;;  %v1191_v33 = vadd.f32 %v4375_v59, %v4377_v1  ;;  %v1617_v10 = vsel %vm1609_vm5, %v4426_v31, 0.0  ;;  %v1619_v59 = vsel %vm1609_vm5, %v4434_v38, 0.0  ;;  %v1288_v1 = vpop.f32.mrf.mxu0 }
 0x263   :  { %v1301_v24 = vadd.f32 %v1288_v1, %v1191_v33 }
 0x265   :  { %v1555_v39 = vpop.f32.mrf.mxu3 }
 0x268   :  { %v1462_v16 = vpop.f32.mrf.mxu2 }
 0x269   :  { %v1463_v26 = vadd.f32 %v1462_v16, %v1390_v3  ;;  %v1188_v3 = vadd.f32 %v4371_v36, %v4373_v41  ;;  %v1615_v16 = vsel %vm1609_vm5, %v4419_v55, 0.0  ;;  %v4441_v36 = vadd.f32 %v4401_v46, %v1297_v0 }
 0x26a   :  { %v1585_v41 = vadd.f32 %v4379_v22, %v1460_v43  ;;  %v1616_v21 = vadd.f32 %v1615_v16, %v1614_v11 }
 0x26b   :  { %v1586_v45 = vadd.f32 %v1555_v39, %v1463_v26  ;;  %v4446_v39 = vadd.f32 %v4401_v46, %v1298_v47  ;;  %v1621_v15 = vsel %vm1609_vm5, %v4441_v36, 0.0 }
 0x26c   :  { %v1618_v22 = vadd.f32 %v1617_v10, %v1616_v21  ;;  %v4462_v14 = vadd.f32 %v4401_v46, %v1585_v41  ;;  %v3394_v21 = vmov 172.0  }
 0x26d   :  { %v4381_v42 = vpop.f32.mrf.mxu3  ;;  %3385 = vrcp.f32 %v3394_v21 }
 0x26e   :  { %v1638_v20 = vsel %vm1609_vm5, %v4462_v14, 0.0 }
 0x270   :  { %v1465_v34 = vpop.f32.mrf.mxu2 }
 0x271   :  { %v1466_v40 = vadd.f32 %v1465_v34, %v1393_v6 }
 0x273   :  { %v1587_v34 = vadd.f32 %v4381_v42, %v1466_v40  ;;  %v4456_v42 = vadd.f32 %v4401_v46, %v1299_v63 }
 0x275   :  { %v4383_v30 = vpop.f32.mrf.mxu3  ;;  %v4465_v27 = vadd.f32 %v4401_v46, %v1587_v34 }
 0x277   :  { %v1641_v26 = vsel %vm1609_vm5, %v4465_v27, 0.0 }
 0x278   :  { %v1468_v7 = vpop.f32.mrf.mxu2 }
 0x279   :  { %v1469_v23 = vadd.f32 %v1468_v7, %v1396_v57  ;;  %v1300_v57 = vadd.f32 %v1285_v53, %v1188_v3 }
 0x27b   :  { %v4471_v25 = vadd.f32 %v4401_v46, %v1300_v57 }
 0x27d   :  { %v4385_v44 = vpop.f32.mrf.mxu3 }
 0x280   :  { %v1471_v9 = vpop.f32.mrf.mxu2 }
 0x281   :  { %v1472_v6 = vadd.f32 %v1471_v9, %v1399_v62  ;;  %v4451_v62 = vadd.f32 %v4401_v46, %v1586_v45  ;;  %v1588_v9 = vadd.f32 %v4383_v30, %v1469_v23 }
 0x283   :  { %v1589_v61 = vadd.f32 %v4385_v44, %v1472_v6  ;;  %v1639_v44 = vsel %vm1609_vm5, %v4451_v62, 0.0  ;;  %v4476_v50 = vadd.f32 %v4401_v46, %v1588_v9 }
 0x284   :  { %v1640_v51 = vadd.f32 %v1639_v44, %v1638_v20 }
 0x285   :  { %v4389_v8 = vpop.f32.mrf.mxu3  ;;  %v4486_v60 = vadd.f32 %v4401_v46, %v1589_v61  ;;  %v1643_v0 = vsel %vm1609_vm5, %v4476_v50, 0.0 }
 0x287   :  { %v1645_v3 = vsel %vm1609_vm5, %v4486_v60, 0.0 }
 0x288   :  { %v1474_v35 = vpop.f32.mrf.mxu2 }
 0x289   :  { %v1475_v52 = vadd.f32 %v1474_v35, %v4387_v19  ;;  %v1620_v19 = vadd.f32 %v1619_v59, %v1618_v22  ;;  %v1623_v35 = vsel %vm1609_vm5, %v4446_v39, 0.0 }
 0x28b   :  { %v1590_v49 = vadd.f32 %v4389_v8, %v1475_v52  ;;  %v1622_v56 = vadd.f32 %v1621_v15, %v1620_v19  ;;  %v1417_v52 = vpop.f32.mrf.mxu1 }
 0x28d   :  { %v4396_v18 = vpop.f32.mrf.mxu3  ;;  %v4498_v43 = vadd.f32 %v4401_v46, %v1590_v49 }
 0x290   :  { %v1477_v54 = vpop.f32.mrf.mxu2 }
 0x291   :  { %v1478_v30 = vadd.f32 %v1477_v54, %v4391_v37  ;;  %v1625_v37 = vsel %vm1609_vm5, %v4456_v42, 0.0  ;;  %v4483_v54 = vadd.f32 %v4401_v46, %v1301_v24 }
 0x293   :  { %v1591_v8 = vadd.f32 %v4396_v18, %v1478_v30  ;;  %v1630_v47 = vsel %vm1629_vm6, %v4483_v54, 0.0  ;;  %v1642_v18 = vadd.f32 %v1641_v26, %v1640_v51  ;;  %v3386_v30 = vpop.eup %3385 }
 0x294   :  { %v1667_v20 = vmul.f32 172.0, %v3386_v30  ;;  %vm1671_vm7 = vweird.f32 %v3386_v30 }
 0x295   :  { %v4414_v2 = vpop.f32.mrf.mxu3  ;;  %v4506_v23 = vadd.f32 %v4401_v46, %v1591_v8  ;;  %v1644_v33 = vadd.f32 %v1643_v0, %v1642_v18 }
 0x297   :  { %v1646_v34 = vadd.f32 %v1645_v3, %v1644_v33  ;;  %v1649_v57 = vsel %vm1609_vm5, %v4506_v23, 0.0 }
 0x298   :  { %v1480_v12 = vpop.f32.mrf.mxu2 }
 0x299   :  { %v1481_v53 = vadd.f32 %v1480_v12, %v4403_v29  ;;  %v1624_v29 = vadd.f32 %v1623_v35, %v1622_v56  ;;  %v1627_v12 = vsel %vm1609_vm5, %v4471_v25, 0.0 }
 0x29b   :  { %v1592_v40 = vadd.f32 %v4414_v2, %v1481_v53  ;;  %v1626_v13 = vadd.f32 %v1625_v37, %v1624_v29  ;;  %v1647_v2 = vsel %vm1609_vm5, %v4498_v43, 0.0 }
 0x29d   :  { %v1576_v7 = vpop.f32.mrf.mxu3  ;;  %v1628_v63 = vadd.f32 %v1627_v12, %v1626_v13  ;;  %v4511_v6 = vadd.f32 %v4401_v46, %v1592_v40 }
 0x29f   :  { %v1631_v41 = vadd.f32 %v1630_v47, %v1628_v63  ;;  %v1651_v1 = vsel %vm1609_vm5, %v4511_v6, 0.0 }
 0x2a0   :  { %v1483_v58 = vpop.f32.mrf.mxu2 }
 0x2a1   :  { %v1484_v32 = vadd.f32 %v1483_v58, %v1411_v28  ;;  %v1632_v22 = vrot.slane %v1631_v41, 4 }
 0x2a3   :  { %v1593_v11 = vadd.f32 %v1576_v7, %v1484_v32  ;;  %v1648_v7 = vadd.f32 %v1647_v2, %v1646_v34  ;;  %v1633_v53 = vadd.f32 %v1632_v22, %v1631_v41 }
 0x2a5   :  { %v1579_v16 = vpop.f32.mrf.mxu3  ;;  %v4516_v59 = vadd.f32 %v4401_v46, %v1593_v11  ;;  %v1650_v24 = vadd.f32 %v1649_v57, %v1648_v7  ;;  %v1634_v32 = vrot.slane %v1633_v53, 2 }
 0x2a7   :  { %v1653_v58 = vsel %vm1609_vm5, %v4516_v59, 0.0  ;;  %v1652_v19 = vadd.f32 %v1651_v1, %v1650_v24  ;;  %v1635_v12 = vadd.f32 %v1634_v32, %v1633_v53 }
 0x2a8   :  { %v1486_v45 = vpop.f32.mrf.mxu2 }
 0x2a9   :  { %v1487_v28 = vadd.f32 %v1486_v45, %v1414_v4  ;;  %v1654_v56 = vadd.f32 %v1653_v58, %v1652_v19  ;;  %v1668_v4 = vsub.f32 1.0, %v1667_v20  ;;  %v1636_v47 = vrot.slane %v1635_v12, 1 }
 0x2ab   :  { %v1594_v10 = vadd.f32 %v1579_v16, %v1487_v28  ;;  %v1669_v40 = vmul.f32 %v3386_v30, %v1668_v4 }
 0x2ad   :  { %v4521_v9 = vadd.f32 %v4401_v46, %v1594_v10  ;;  %v1582_v35 = vpop.f32.mrf.mxu3  ;;  %v1670_v3 = vadd.f32 %v3386_v30, %v1669_v40 }
 0x2af   :  { %v1655_v44 = vsel %vm1609_vm5, %v4521_v9, 0.0  ;;  %v4532_v11 = vsel %vm1671_vm7, %v3386_v30, %v1670_v3 }
 0x2b0   :  { %v1489_v61 = vpop.f32.mrf.mxu2  ;;  %v1656_v26 = vadd.f32 %v1655_v44, %v1654_v56 }
 0x2b1   :  { %v1490_v15 = vadd.f32 %v1489_v61, %v1417_v52 }
 0x2b3   :  { %v1595_v49 = vadd.f32 %v1582_v35, %v1490_v15 }
 0x2b5   :  { %v4528_v37 = vadd.f32 %v4401_v46, %v1595_v49  ;;  %v1637_v46 = vadd.f32 %v1636_v47, %v1635_v12 }
 0x2b7   :  { %v1657_v8 = vsel %vm1629_vm6, %v4528_v37, 0.0 }
 0x2b8   :  { %v1658_v29 = vadd.f32 %v1657_v8, %v1656_v26 }
 0x2ba   :  { %v1659_v51 = vrot.slane %v1658_v29, 4 }
 0x2bc   :  { %v1660_v0 = vadd.f32 %v1659_v51, %v1658_v29 }
 0x2be   :  { %v1661_v13 = vrot.slane %v1660_v0, 2 }
 0x2c0   :  { %v1662_v18 = vadd.f32 %v1661_v13, %v1660_v0 }
 0x2c2   :  { %v1663_v16 = vrot.slane %v1662_v18, 1 }
 0x2c4   :  { %v1664_v45 = vadd.f32 %v1663_v16, %v1662_v18 }
 0x2c6   :  { %v1665_v28 = vadd.f32 %v1664_v45, %v1637_v46 }
 0x2c8   :  { %v4535_v63 = vmul.f32 %v4532_v11, %v1665_v28 }
 0x2ca   :  { %v4539_v33 = vsub.f32 %v4409_v48, %v4535_v63  ;;  %v4543_v2 = vsub.f32 %v4406_v17, %v4535_v63  ;;  %v4547_v10 = vsub.f32 %v4412_v5, %v4535_v63  ;;  %v4551_v41 = vsub.f32 %v4419_v55, %v4535_v63 }
 0x2cb   :  { %v4557_v21 = vsub.f32 %v4426_v31, %v4535_v63  ;;  %v4565_v5 = vsub.f32 %v4434_v38, %v4535_v63  ;;  %v4573_v31 = vsub.f32 %v4441_v36, %v4535_v63  ;;  %v4580_v38 = vsub.f32 %v4446_v39, %v4535_v63 }
 0x2cc   :  { %v1685_v34 = vmul.f32 %v4539_v33, %v4539_v33  ;;  %v1686_v48 = vmul.f32 %v4543_v2, %v4543_v2  ;;  %v1687_v17 = vmul.f32 %v4547_v10, %v4547_v10  ;;  %v1688_v55 = vmul.f32 %v4551_v41, %v4551_v41 }
 0x2cd   :  { %v1689_v52 = vmul.f32 %v4557_v21, %v4557_v21  ;;  %v4584_v61 = vsub.f32 %v4462_v14, %v4535_v63  ;;  %v1690_v58 = vmul.f32 %v4565_v5, %v4565_v5  ;;  %v4591_v15 = vsub.f32 %v4451_v62, %v4535_v63 }
 0x2ce   :  { %v1696_v57 = vsel %vm1609_vm5, %v1685_v34, 0.0  ;;  %v1697_v7 = vsel %vm1609_vm5, %v1686_v48, 0.0  ;;  %v1699_v22 = vsel %vm1609_vm5, %v1687_v17, 0.0  ;;  %v1701_v36 = vsel %vm1609_vm5, %v1688_v55, 0.0 }
 0x2cf   :  { %v1698_v1 = vadd.f32 %v1697_v7, %v1696_v57  ;;  %v4595_v30 = vsub.f32 %v4465_v27, %v4535_v63  ;;  %v4599_v39 = vsub.f32 %v4456_v42, %v4535_v63  ;;  %v1691_v14 = vmul.f32 %v4573_v31, %v4573_v31 }
 0x2d0   :  { %v1703_v35 = vsel %vm1609_vm5, %v1689_v52, 0.0  ;;  %v4606_v44 = vsub.f32 %v4476_v50, %v4535_v63  ;;  %v1734_v62 = vmul.f32 %v4584_v61, %v4584_v61  ;;  %v4612_v27 = vsub.f32 %v4471_v25, %v4535_v63 }
 0x2d1   :  { %v1700_v24 = vadd.f32 %v1699_v22, %v1698_v1  ;;  %v1735_v42 = vmul.f32 %v4591_v15, %v4591_v15  ;;  %v1692_v53 = vmul.f32 %v4580_v38, %v4580_v38  ;;  %v1705_v56 = vsel %vm1609_vm5, %v1690_v58, 0.0 }
 0x2d2   :  { %v4621_v50 = vsub.f32 %v4486_v60, %v4535_v63  ;;  %v1736_v20 = vmul.f32 %v4595_v30, %v4595_v30  ;;  %v4627_v25 = vsub.f32 %v4483_v54, %v4535_v63  ;;  %v1693_v26 = vmul.f32 %v4599_v39, %v4599_v39 }
 0x2d3   :  { %v1702_v19 = vadd.f32 %v1701_v36, %v1700_v24  ;;  %v1707_v32 = vsel %vm1609_vm5, %v1691_v14, 0.0  ;;  %v4634_v29 = vsub.f32 %v4498_v43, %v4535_v63  ;;  %v1737_v60 = vmul.f32 %v4606_v44, %v4606_v44 }
 0x2d4   :  { %v1745_v4 = vsel %vm1609_vm5, %v1734_v62, 0.0  ;;  %v1746_v51 = vsel %vm1609_vm5, %v1735_v42, 0.0  ;;  %v1694_v54 = vmul.f32 %v4612_v27, %v4612_v27  ;;  %v1709_v40 = vsel %vm1609_vm5, %v1692_v53, 0.0 }
 0x2d5   :  { %v1704_v49 = vadd.f32 %v1703_v35, %v1702_v19  ;;  %v1747_v0 = vadd.f32 %v1746_v51, %v1745_v4  ;;  %v4645_v13 = vsub.f32 %v4506_v23, %v4535_v63  ;;  %v1738_v43 = vmul.f32 %v4621_v50, %v4621_v50 }
 0x2d6   :  { %v1748_v47 = vsel %vm1609_vm5, %v1736_v20, 0.0  ;;  %v1695_v18 = vmul.f32 %v4627_v25, %v4627_v25  ;;  %v1711_v46 = vsel %vm1609_vm5, %v1693_v26, 0.0  ;;  %v4655_v45 = vsub.f32 %v4511_v6, %v4535_v63 }
 0x2d7   :  { %v1706_v8 = vadd.f32 %v1705_v56, %v1704_v49  ;;  %v1749_v16 = vadd.f32 %v1748_v47, %v1747_v0  ;;  %v1739_v23 = vmul.f32 %v4634_v29, %v4634_v29  ;;  %v1750_v28 = vsel %vm1609_vm5, %v1737_v60, 0.0 }
 0x2d8   :  { %v1713_v17 = vsel %vm1609_vm5, %v1694_v54, 0.0  ;;  %v4663_v55 = vsub.f32 %v4516_v59, %v4535_v63  ;;  %v1740_v57 = vmul.f32 %v4645_v13, %v4645_v13  ;;  %v1752_v7 = vsel %vm1609_vm5, %v1738_v43, 0.0 }
 0x2d9   :  { %v1708_v12 = vadd.f32 %v1707_v32, %v1706_v8  ;;  %v1751_v48 = vadd.f32 %v1750_v28, %v1749_v16  ;;  %v1715_v52 = vsel %vm1629_vm6, %v1695_v18, 0.0  ;;  %v4671_v22 = vsub.f32 %v4521_v9, %v4535_v63 }
 0x2da   :  { %v1741_v24 = vmul.f32 %v4655_v45, %v4655_v45  ;;  %v1754_v58 = vsel %vm1609_vm5, %v1739_v23, 0.0  ;;  %v4678_v14 = vsub.f32 %v4528_v37, %v4535_v63  ;;  %v1742_v19 = vmul.f32 %v4663_v55, %v4663_v55 }
 0x2db   :  { %v1710_v3 = vadd.f32 %v1709_v40, %v1708_v12  ;;  %v1753_v1 = vadd.f32 %v1752_v7, %v1751_v48  ;;  %v1756_v35 = vsel %vm1609_vm5, %v1740_v57, 0.0  ;;  %v1743_v9 = vmul.f32 %v4671_v22, %v4671_v22  ;;  %v4695_v7 = vld [vmem:[%s5572_s9 + $0xb8] sm:$0xff] }
 0x2dc   :  { %v1758_v42 = vsel %vm1609_vm5, %v1741_v24, 0.0  ;;  %v1744_v20 = vmul.f32 %v4678_v14, %v4678_v14  ;;  %v1760_v37 = vsel %vm1609_vm5, %v1742_v19, 0.0  ;;  %2132 = vmatpush.msra.mxu2 %v4695_v7  ;;  %v4717_v24 = vld [vmem:[%s5572_s9 + $0xb0] sm:$0xff] }
 0x2dd   :  { %v1712_v34 = vadd.f32 %v1711_v46, %v1710_v3  ;;  %v1755_v36 = vadd.f32 %v1754_v58, %v1753_v1  ;;  %v1762_v26 = vsel %vm1609_vm5, %v1743_v9, 0.0  ;;  %v4722_v58 = vld [vmem:[%s5572_s9 + $0xf0] sm:$0xff] }
 0x2de   :  { %v1764_v60 = vsel %vm1629_vm6, %v1744_v20, 0.0  ;;  %2133 = vmatpush.msra.mxu2 %v4717_v24 }
 0x2df   :  { %v1714_v6 = vadd.f32 %v1713_v17, %v1712_v34  ;;  %v1757_v49 = vadd.f32 %v1756_v35, %v1755_v36  ;;  %v4734_v36 = vld [vmem:[%s5572_s9 + $0x30] sm:$0xff]  ;;  %v4741_v35 = vld [vmem:[%s5570_s7] ss:$0 sm:$0xff] }
 0x2e1   :  { %v1716_v59 = vadd.f32 %v1715_v52, %v1714_v6  ;;  %v1759_v56 = vadd.f32 %v1758_v42, %v1757_v49  ;;  %v4700_v6 = vld [vmem:[%s5572_s9 + $0xf8] sm:$0xff] }
 0x2e2   :  { %2205 = vmatpush.msra.mxu3 %v4700_v6  ;;  %v4712_v52 = vld [vmem:[%s5572_s9 + $0x38] sm:$0xff] }
 0x2e3   :  { %v1717_v62 = vrot.slane %v1716_v59, 4  ;;  %v1761_v63 = vadd.f32 %v1760_v37, %v1759_v56  ;;  %2065 = vmatpush.msrb.mxu1 %v4712_v52 }
 0x2e4   :  { %2206 = vmatpush.msra.mxu3 %v4722_v58 }
 0x2e5   :  { %v1718_v53 = vadd.f32 %v1717_v62, %v1716_v59  ;;  %v1763_v32 = vadd.f32 %v1762_v26, %v1761_v63  ;;  %v4729_v59 = vld [vmem:[%s5572_s9 + $0x70] sm:$0xff]  ;;  %v4748_v62 = vld [vmem:[%s5572_s9 + $0xa8] sm:$0xff]  ;;  %2066 = vmatpush.msrb.mxu1 %v4734_v36 }
 0x2e6   :  { %2134 = vmatpush.msra.mxu2 %v4748_v62 }
 0x2e7   :  { %v1719_v8 = vrot.slane %v1718_v53, 2  ;;  %v1765_v4 = vadd.f32 %v1764_v60, %v1763_v32  ;;  %v4818_v60 = vld [vmem:[%s5572_s9 + $0xe0] sm:$0xff] }
 0x2e9   :  { %v1720_v51 = vadd.f32 %v1719_v8, %v1718_v53  ;;  %v1766_v54 = vrot.slane %v1765_v4, 4  ;;  %v4760_v53 = vld [vmem:[%s5572_s9 + $0xe8] sm:$0xff]  ;;  %v4810_v8 = vld [vmem:[%s5571_s8] ss:$0 sm:$0xff] }
 0x2ea   :  { %2207 = vmatpush.msra.mxu3 %v4760_v53 }
 0x2eb   :  { %v1767_v12 = vadd.f32 %v1766_v54, %v1765_v4  ;;  %v1721_v0 = vrot.slane %v1720_v51, 1 }
 0x2ec   :  { %2208 = vmatpush.msra.mxu3 %v4818_v60 }
 0x2ed   :  { %v1768_v40 = vrot.slane %v1767_v12, 2  ;;  %v1722_v47 = vadd.f32 %v1721_v0, %v1720_v51 }
 0x2ef   :  { %v1769_v43 = vadd.f32 %v1768_v40, %v1767_v12 }
 0x2f1   :  { %v1770_v18 = vrot.slane %v1769_v43, 1 }
 0x2f3   :  { %v1771_v3 = vadd.f32 %v1770_v18, %v1769_v43 }
 0x2f5   :  { %v1772_v16 = vadd.f32 %v1771_v3, %v1722_v47 }
 0x2f7   :  { %v1773_v46 = vmul.f32 %v1772_v16, %v4532_v11  ;;  %v4705_v11 = vld [vmem:[%s5572_s9 + $0x78] sm:$0xff] }
 0x2f8   :  { %2012 = vmatpush.msrb.mxu0 %v4705_v11 }
 0x2f9   :  { %v1774_v23 = vadd.f32 1e-05, %v1773_v46 }
 0x2fa   :  { %2013 = vmatpush.msrb.mxu0 %v4729_v59 }
 0x2fb   :  { %3387 = vrsqrt.f32 %v1774_v23  ;;  %vm1781_vm9 = vweird.f32 %v1774_v23 }
 0x301   :  { %v3388_v28 = vpop.eup %3387 }
 0x302   :  { %v1776_v34 = vmul.f32 %v3388_v28, %v1774_v23  ;;  %vm1782_vm8 = vweird.f32 %v3388_v28 }
 0x303   :  { %vm1783_vm10 = vmor %vm1781_vm9, %vm1782_vm8 }
 0x304   :  { %v1777_v48 = vmul.f32 %v3388_v28, %v1776_v34 }
 0x306   :  { %v1778_v17 = vmul.f32 0.5, %v1777_v48 }
 0x308   :  { %v1779_v57 = vsub.f32 1.5, %v1778_v17 }
 0x30a   :  { %v1780_v1 = vmul.f32 %v3388_v28, %v1779_v57 }
 0x30c   :  { %v4736_v19 = vsel %vm1783_vm10, %v3388_v28, %v1780_v1  ;;  %v4890_v1 = vld [vmem:[%s5572_s9 + $0x18] sm:$0xff] }
 0x30d   :  { %v1787_v49 = vmul.f32 %v4736_v19, %v4547_v10  ;;  %v1788_v9 = vmul.f32 %v4736_v19, %v4551_v41  ;;  %v1790_v42 = vmul.f32 %v4736_v19, %v4565_v5  ;;  %v1791_v56 = vmul.f32 %v4736_v19, %v4573_v31  ;;  %v4774_v5 = vld [vmem:[%s5572_s9 + $0x68] sm:$0xff] }
 0x30e   :  { %v1792_v20 = vmul.f32 %v4736_v19, %v4580_v38  ;;  %v1793_v10 = vmul.f32 %v4736_v19, %v4599_v39  ;;  %v1794_v41 = vmul.f32 %v4736_v19, %v4612_v27  ;;  %v1795_v37 = vmul.f32 %v4736_v19, %v4627_v25  ;;  %v4782_v31 = vld [vmem:[%s5572_s9 + $0x28] sm:$0xff]  ;;  %v4798_v25 = vld [vmem:[%s5572_s9 + $0xa0] sm:$0xff]  ;;  %2014 = vmatpush.msrb.mxu0 %v4774_v5 }
 0x30f   :  { %v4786_v38 = vmul.f32 %v4736_v19, %v4557_v21  ;;  %v4789_v39 = vmul.f32 %v4741_v35, %v1787_v49  ;;  %v4792_v27 = vmul.f32 %v4741_v35, %v1788_v9  ;;  %v4801_v63 = vmul.f32 %v4741_v35, %v1790_v42  ;;  %2067 = vmatpush.msrb.mxu1 %v4782_v31  ;;  %v4895_v49 = vld [vmem:[%s5572_s9 + $0x90] sm:$0xff] }
 0x310   :  { %v4804_v26 = vmul.f32 %v4741_v35, %v1791_v56  ;;  %v1806_v21 = vmul.f32 %v4741_v35, %v1792_v20  ;;  %v1826_v32 = vmul.f32 %v4736_v19, %v4595_v30  ;;  %v1807_v4 = vmul.f32 %v4741_v35, %v1793_v10  ;;  %v4829_v30 = vld [vmem:[%s5572_s9 + $0x60] sm:$0xff]  ;;  %2135 = vmatpush.msra.mxu2 %v4798_v25  ;;  %v4907_v10 = vld [vmem:[%s5572_s9 + $0xd0] sm:$0xff] }
 0x311   :  { %v1808_v51 = vmul.f32 %v4741_v35, %v1794_v41  ;;  %v1809_v54 = vmul.f32 %v4741_v35, %v1795_v37  ;;  %v1827_v12 = vmul.f32 %v4736_v19, %v4606_v44  ;;  %v1824_v0 = vmul.f32 %v4736_v19, %v4584_v61  ;;  %v4843_v44 = vld [vmem:[%s5572_s9 + $0x20] sm:$0xff]  ;;  %2015 = vmatpush.msrb.mxu0 %v4829_v30  ;;  %v4912_v41 = vld [vmem:[%s5572_s9 + $0x50] sm:$0xff] }
 0x312   :  { %v1828_v40 = vmul.f32 %v4736_v19, %v4621_v50  ;;  %v1829_v43 = vmul.f32 %v4736_v19, %v4634_v29  ;;  %v1830_v47 = vmul.f32 %v4736_v19, %v4645_v13  ;;  %v1831_v18 = vmul.f32 %v4736_v19, %v4655_v45  ;;  %v4857_v13 = vld [vmem:[%s5572_s9 + $0x98] sm:$0xff]  ;;  %2068 = vmatpush.msrb.mxu1 %v4843_v44 }
 0x313   :  { %v1832_v61 = vmul.f32 %v4736_v19, %v4663_v55  ;;  %v1833_v50 = vmul.f32 %v4736_v19, %v4671_v22  ;;  %v1834_v29 = vmul.f32 %v4736_v19, %v4678_v14  ;;  %v4860_v3 = vadd.f32 %v4810_v8, %v1806_v21  ;;  %v4870_v14 = vld [vmem:[%s5572_s9 + $0xd8] sm:$0xff]  ;;  %2136 = vmatpush.msra.mxu2 %v4857_v13 }
 0x314   :  { %v1825_v45 = vmul.f32 %v4736_v19, %v4591_v15  ;;  %v1837_v55 = vmul.f32 %v4741_v35, %v1826_v32  ;;  %v1838_v22 = vmul.f32 %v4741_v35, %v1827_v12  ;;  %v1839_v16 = vmul.f32 %v4741_v35, %v1828_v40  ;;  %v4880_v15 = vld [vmem:[%s5572_s9 + $0x58] sm:$0xff]  ;;  %2209 = vmatpush.msra.mxu3 %v4870_v14  ;;  %v4922_v12 = vld [vmem:[%s5572_s9 + $0x10] sm:$0xff] }
 0x315   :  { %v1840_v46 = vmul.f32 %v4741_v35, %v1829_v43  ;;  %v1841_v23 = vmul.f32 %v4741_v35, %v1830_v47  ;;  %v1842_v28 = vmul.f32 %v4741_v35, %v1831_v18  ;;  %v1835_v34 = vmul.f32 %v4741_v35, %v1824_v0  ;;  %2016 = vmatpush.msrb.mxu0 %v4880_v15  ;;  %v4927_v0 = vld [vmem:[%s5572_s9 + $0x88] sm:$0xff] }
 0x316   :  { %v1843_v48 = vmul.f32 %v4741_v35, %v1832_v61  ;;  %v1844_v17 = vmul.f32 %v4741_v35, %v1833_v50  ;;  %v1845_v57 = vmul.f32 %v4741_v35, %v1834_v29  ;;  %v4898_v9 = vadd.f32 %v4810_v8, %v1807_v4  ;;  %5587 = vst [vmem:[#allocation3_spill] sm:$0xff] %v4922_v12  ;;  %v4941_v18 = vld [vmem:[%s5572_s9 + $0xc8] sm:$0xff] }
 0x317   :  { %v1848_v42 = vadd.f32 %v4810_v8, %v1837_v55  ;;  %v1849_v56 = vadd.f32 %v4810_v8, %v1838_v22  ;;  %v1850_v20 = vadd.f32 %v4810_v8, %v1839_v16  ;;  %v1851_v37 = vadd.f32 %v4810_v8, %v1840_v46  ;;  %5588 = vst [vmem:[#allocation4_spill] sm:$0xff] %v4927_v0  ;;  %v4946_v61 = vld [vmem:[%s5572_s9 + $0x48] sm:$0xff]  ;;  %v4965_v55 = vld [vmem:[%s5572_s9 + $0x80] sm:$0xff] }
 0x318   :  { %v1852_v21 = vadd.f32 %v4810_v8, %v1841_v23  ;;  %v1853_v32 = vadd.f32 %v4810_v8, %v1842_v28  ;;  %v1854_v4 = vadd.f32 %v4810_v8, %v1843_v48  ;;  %v4930_v40 = vadd.f32 %v4810_v8, %v1808_v51  ;;  %2069 = vmatpush.msrb.mxu1 %v4890_v1  ;;  %v4960_v29 = vld [vmem:[%s5572_s9 + $0x8] sm:$0xff]  ;;  %v4977_v22 = vld [vmem:[%s5572_s9 + $0x40] sm:$0xff] }
 0x319   :  { %v4933_v43 = vadd.f32 %v4810_v8, %v1809_v54  ;;  %v1855_v47 = vadd.f32 %v4810_v8, %v1844_v17  ;;  %2137 = vmatpush.msra.mxu2 %v4895_v49  ;;  %5589 = vst [vmem:[#allocation5_spill] sm:$0xff] %v4941_v18  ;;  %v4949_v51 = vmul.f32 %v4741_v35, %v1825_v45  ;;  %vm1892_vm11 = vcmp.ge.f32.partialorder %v1848_v42, 0.0  ;;  %v4972_v45 = vld [vmem:[%s5572_s9 + $0xc0] sm:$0xff] }
 0x31a   :  { %5590 = vst [vmem:[#allocation6_spill] sm:$0xff] %v4946_v61  ;;  %v4952_v54 = vadd.f32 %v4810_v8, %v1835_v34  ;;  %v1856_v50 = vadd.f32 %v4810_v8, %v1845_v57  ;;  %2210 = vmatpush.msra.mxu3 %v4907_v10  ;;  %2017 = vmatpush.msrb.mxu0 %v4912_v41  ;;  %vm1893_vm12 = vcmp.ge.f32.partialorder %v1849_v56, 0.0  ;;  %vm1894_vm13 = vcmp.ge.f32.partialorder %v1850_v20, 0.0  ;;  %v4984_v16 = vld [vmem:[%s5572_s9] sm:$0xff] }
 0x31b   :  { %5591 = vst [vmem:[#allocation7_spill] sm:$0xff] %v4960_v29  ;;  %vm1895_vm14 = vcmp.ge.f32.partialorder %v1851_v37, 0.0  ;;  %2070 = vmatpush.msrb.mxu1 %v4922_v12  ;;  %2138 = vmatpush.msra.mxu2 %v4927_v0  ;;  %vm1896_vm15 = vcmp.ge.f32.partialorder %v1852_v21, 0.0  ;;  %vm1897_vm0 = vcmp.ge.f32.partialorder %v1853_v32, 0.0  ;;  %vm1898_vm2 = vcmp.ge.f32.partialorder %v1854_v4, 0.0 }
 0x31c   :  { %5592 = vst [vmem:[#allocation8_spill] sm:$0xff] %v4965_v55  ;;  %vm1899_vm7 = vcmp.ge.f32.partialorder %v1855_v47, 0.0  ;;  %2211 = vmatpush.msra.mxu3 %v4941_v18  ;;  %2018 = vmatpush.msrb.mxu0 %v4946_v61  ;;  %v1903_v46 = vmul.f32 0.2, %v1848_v42  ;;  %v1904_v23 = vmul.f32 0.2, %v1849_v56  ;;  %v1785_v34 = vmul.f32 %v4736_v19, %v4539_v33 }
 0x31d   :  { %5593 = vst [vmem:[#allocation9_spill] sm:$0xff] %v4972_v45  ;;  %v1905_v28 = vmul.f32 0.2, %v1850_v20  ;;  %2071 = vmatpush.msrb.mxu1 %v4960_v29  ;;  %2139 = vmatpush.msra.mxu2 %v4965_v55  ;;  %v1906_v48 = vmul.f32 0.2, %v1851_v37  ;;  %v1786_v61 = vmul.f32 %v4736_v19, %v4543_v2  ;;  %vm1900_vm8 = vcmp.ge.f32.partialorder %v1856_v50, 0.0 }
 0x31e   :  { %5594 = vst [vmem:[#allocation10_spill] sm:$0xff] %v4977_v22  ;;  %v1907_v17 = vmul.f32 0.2, %v1852_v21  ;;  %v1908_v57 = vmul.f32 0.2, %v1853_v32  ;;  %2212 = vmatpush.msra.mxu3 %v4972_v45  ;;  %2019 = vmatpush.msrb.mxu0 %v4977_v22  ;;  %v1914_v29 = vsel %vm1892_vm11, %v1848_v42, %v1903_v46  ;;  %v1915_v55 = vsel %vm1893_vm12, %v1849_v56, %v1904_v23 }
 0x31f   :  { %v1909_v18 = vmul.f32 0.2, %v1854_v4  ;;  %v1910_v0 = vmul.f32 0.2, %v1855_v47  ;;  %2072 = vmatpush.msrb.mxu1 %v4984_v16  ;;  %2408 = vmatpush.msrb.mxu2 %v4695_v7  ;;  %v1911_v33 = vmul.f32 0.2, %v1856_v50  ;;  %v1916_v12 = vsel %vm1894_vm13, %v1850_v20, %v1905_v28 }
 0x320   :  { %v1917_v45 = vsel %vm1895_vm14, %v1851_v37, %v1906_v48  ;;  %1936 = vst.msk [vmem:[#allocation2 + $0x66] sm:$0xff] %vm1609_vm5, %v1914_v29  ;;  %v1918_v2 = vsel %vm1896_vm15, %v1852_v21, %v1907_v17  ;;  %v1919_v19 = vsel %vm1897_vm0, %v1853_v32, %v1908_v57  ;;  %v1799_v7 = vmul.f32 %v4741_v35, %v1785_v34 }
 0x321   :  { %v1920_v22 = vsel %vm1898_vm2, %v1854_v4, %v1909_v18  ;;  %v1921_v42 = vsel %vm1899_vm7, %v1855_v47, %v1910_v0  ;;  %1937 = vst.msk [vmem:[#allocation2 + $0x6e] sm:$0xff] %vm1609_vm5, %v1915_v55  ;;  %v1800_v56 = vmul.f32 %v4741_v35, %v1786_v61  ;;  %v1815_v20 = vadd.f32 %v4810_v8, %v4789_v39 }
 0x322   :  { %1938 = vst.msk [vmem:[#allocation2 + $0x76] sm:$0xff] %vm1609_vm5, %v1916_v12  ;;  %v1816_v37 = vadd.f32 %v4810_v8, %v4792_v27  ;;  %2472 = vmatpush.msrb.mxu3 %v4700_v6  ;;  %2297 = vmatpush.msra.mxu0 %v4705_v11  ;;  %v1803_v21 = vmul.f32 %v4741_v35, %v4786_v38  ;;  %vm1864_vm0 = vcmp.ge.f32.partialorder %v4860_v3, 0.0  ;;  %vm1865_vm2 = vcmp.ge.f32.partialorder %v4898_v9, 0.0  ;;  %v5599_v47 = vld [vmem:[#allocation7_spill] sm:$0xff] }
 0x323   :  { %1939 = vst.msk [vmem:[#allocation2 + $0x7e] sm:$0xff] %vm1609_vm5, %v1917_v45  ;;  %v1818_v32 = vadd.f32 %v4810_v8, %v4801_v63  ;;  %v1819_v4 = vadd.f32 %v4810_v8, %v4804_v26  ;;  %v1922_v39 = vsel %vm1900_vm8, %v1856_v50, %v1911_v33  ;;  %v1813_v27 = vadd.f32 %v4810_v8, %v1799_v7 }
 0x324   :  { %1940 = vst.msk [vmem:[#allocation2 + $0x86] sm:$0xff] %vm1609_vm5, %v1918_v2  ;;  %v1814_v12 = vadd.f32 %v4810_v8, %v1800_v56  ;;  %2350 = vmatpush.msra.mxu1 %v4712_v52  ;;  %2409 = vmatpush.msrb.mxu2 %v4717_v24  ;;  %vm1859_vm9 = vcmp.ge.f32.partialorder %v1815_v20, 0.0  ;;  %v1870_v6 = vmul.f32 0.2, %v1815_v20  ;;  %v1871_v11 = vmul.f32 0.2, %v1816_v37 }
 0x325   :  { %1941 = vst.msk [vmem:[#allocation2 + $0x8e] sm:$0xff] %vm1609_vm5, %v1919_v19  ;;  %v1817_v35 = vadd.f32 %v4810_v8, %v1803_v21  ;;  %2473 = vmatpush.msrb.mxu3 %v4722_v58  ;;  %2298 = vmatpush.msra.mxu0 %v4729_v59  ;;  %vm1857_vm10 = vcmp.ge.f32.partialorder %v1813_v27, 0.0  ;;  %v1868_v38 = vmul.f32 0.2, %v1813_v27  ;;  %vm1860_vm12 = vcmp.ge.f32.partialorder %v1816_v37, 0.0  ;;  %v5602_v46 = vld [vmem:[#allocation10_spill] sm:$0xff] }
 0x326   :  { %1942 = vst.msk [vmem:[#allocation2 + $0x96] sm:$0xff] %vm1609_vm5, %v1920_v22  ;;  %vm1858_vm11 = vcmp.ge.f32.partialorder %v1814_v12, 0.0  ;;  %2351 = vmatpush.msra.mxu1 %v4734_v36  ;;  %2410 = vmatpush.msrb.mxu2 %v4748_v62  ;;  %v1869_v52 = vmul.f32 0.2, %v1814_v12  ;;  %vm1862_vm14 = vcmp.ge.f32.partialorder %v1818_v32, 0.0  ;;  %vm1863_vm15 = vcmp.ge.f32.partialorder %v1819_v4, 0.0 }
 0x327   :  { %1943 = vst.msk [vmem:[#allocation2 + $0x9e] sm:$0xff] %vm1609_vm5, %v1921_v42  ;;  %vm1861_vm13 = vcmp.ge.f32.partialorder %v1817_v35, 0.0  ;;  %2474 = vmatpush.msrb.mxu3 %v4760_v53  ;;  %2299 = vmatpush.msra.mxu0 %v4774_v5  ;;  %v1879_v24 = vsel %vm1857_vm10, %v1813_v27, %v1868_v38  ;;  %v1881_v58 = vsel %vm1859_vm9, %v1815_v20, %v1870_v6  ;;  %v1872_v59 = vmul.f32 0.2, %v1817_v35 }
 0x328   :  { %1944 = vst.msk [vmem:[#allocation2 + $0xa6] sm:$0x3f] %vm1629_vm6, %v1922_v39  ;;  %v1873_v63 = vmul.f32 0.2, %v1818_v32  ;;  %2352 = vmatpush.msra.mxu1 %v4782_v31  ;;  %2411 = vmatpush.msrb.mxu2 %v4798_v25  ;;  %v1880_v36 = vsel %vm1858_vm11, %v1814_v12, %v1869_v52  ;;  %v1882_v62 = vsel %vm1860_vm12, %v1816_v37, %v1871_v11  ;;  %v1874_v53 = vmul.f32 0.2, %v1819_v4 }
 0x329   :  { %1923 = vst.msk [vmem:[#allocation2] sm:$0xff] %vm1609_vm5, %v1879_v24  ;;  %v1875_v5 = vmul.f32 0.2, %v4860_v3  ;;  %2475 = vmatpush.msrb.mxu3 %v4818_v60  ;;  %2300 = vmatpush.msra.mxu0 %v4829_v30  ;;  %v1847_v26 = vadd.f32 %v4810_v8, %v4949_v51  ;;  %v1883_v31 = vsel %vm1861_vm13, %v1817_v35, %v1872_v59  ;;  %v1877_v25 = vmul.f32 0.2, %v4930_v40  ;;  %v5601_v51 = vld [vmem:[#allocation9_spill] sm:$0xff] }
 0x32a   :  { %1924 = vst.msk [vmem:[#allocation2 + $0x8] sm:$0xff] %vm1609_vm5, %v1880_v36  ;;  %2353 = vmatpush.msra.mxu1 %v4843_v44  ;;  %2412 = vmatpush.msrb.mxu2 %v4857_v13  ;;  %v1884_v60 = vsel %vm1862_vm14, %v1818_v32, %v1873_v63  ;;  %v1876_v8 = vmul.f32 0.2, %v4898_v9  ;;  %v1878_v30 = vmul.f32 0.2, %v4933_v43  ;;  %v1885_v44 = vsel %vm1863_vm15, %v1819_v4, %v1874_v53 }
 0x32b   :  { %1925 = vst.msk [vmem:[#allocation2 + $0x10] sm:$0xff] %vm1609_vm5, %v1881_v58  ;;  %2476 = vmatpush.msrb.mxu3 %v4870_v14  ;;  %vm1866_vm7 = vcmp.ge.f32.partialorder %v4930_v40, 0.0  ;;  %2301 = vmatpush.msra.mxu0 %v4880_v15  ;;  %vm1867_vm8 = vcmp.ge.f32.partialorder %v4933_v43, 0.0  ;;  %v1901_v13 = vmul.f32 0.2, %v4952_v54  ;;  %v1886_v14 = vsel %vm1864_vm0, %v4860_v3, %v1875_v5 }
 0x32c   :  { %1926 = vst.msk [vmem:[#allocation2 + $0x18] sm:$0xff] %vm1609_vm5, %v1882_v62  ;;  %2354 = vmatpush.msra.mxu1 %v4890_v1  ;;  %2413 = vmatpush.msrb.mxu2 %v4895_v49  ;;  %v1902_v0 = vmul.f32 0.2, %v1847_v26  ;;  %v1887_v15 = vsel %vm1865_vm2, %v4898_v9, %v1876_v8  ;;  %v5595_v1 = vld [vmem:[#allocation3_spill] sm:$0xff]  ;;  %vm1890_vm9 = vcmp.ge.f32.partialorder %v4952_v54, 0.0  ;;  %v1888_v3 = vsel %vm1866_vm7, %v4930_v40, %v1877_v25  ;;  %v5596_v49 = vld [vmem:[#allocation4_spill] sm:$0xff] }
 0x32d   :  { %1927 = vst.msk [vmem:[#allocation2 + $0x20] sm:$0xff] %vm1609_vm5, %v1883_v31  ;;  %2477 = vmatpush.msrb.mxu3 %v4907_v10  ;;  %2302 = vmatpush.msra.mxu0 %v4912_v41  ;;  %v5597_v10 = vld [vmem:[#allocation5_spill] sm:$0xff]  ;;  %vm1891_vm10 = vcmp.ge.f32.partialorder %v1847_v26, 0.0  ;;  %v1889_v9 = vsel %vm1867_vm8, %v4933_v43, %v1878_v30  ;;  %v5598_v41 = vld [vmem:[#allocation6_spill] sm:$0xff]  ;;  %v5600_v40 = vld [vmem:[#allocation8_spill] sm:$0xff]  ;;  %v1912_v50 = vsel %vm1890_vm9, %v4952_v54, %v1901_v13 }
 0x32e   :  { %1928 = vst.msk [vmem:[#allocation2 + $0x28] sm:$0xff] %vm1609_vm5, %v1884_v60  ;;  %2355 = vmatpush.msra.mxu1 %v5595_v1  ;;  %2414 = vmatpush.msrb.mxu2 %v5596_v49  ;;  %v1913_v55 = vsel %vm1891_vm10, %v1847_v26, %v1902_v0  ;;  %v2250_v58 = vld [vmem:[#allocation2 + $0x66] ss:$2 sm:$0xff]  ;;  %v2262_v36 = vld [vmem:[#allocation2 + $0x67] ss:$2 sm:$0xff] }
 0x32f   :  { %1929 = vst.msk [vmem:[#allocation2 + $0x30] sm:$0xff] %vm1609_vm5, %v1885_v44  ;;  %2478 = vmatpush.msrb.mxu3 %v5597_v10  ;;  %2303 = vmatpush.msra.mxu0 %v5598_v41  ;;  %v2378_v5 = vrot.slane %v2250_v58, 1  ;;  %v2442_v26 = vrot.slane %v2262_v36, 1  ;;  %v2252_v60 = vld [vmem:[#allocation2 + $0x76] ss:$2 sm:$0xff] }
 0x330   :  { %1930 = vst.msk [vmem:[#allocation2 + $0x38] sm:$0xff] %vm1609_vm5, %v1886_v14  ;;  %2356 = vmatpush.msra.mxu1 %v5599_v47  ;;  %2415 = vmatpush.msrb.mxu2 %v5600_v40  ;;  %v2264_v8 = vld [vmem:[#allocation2 + $0x77] ss:$2 sm:$0xff]  ;;  %v2380_v30 = vrot.slane %v2252_v60, 1  ;;  %v2254_v0 = vld [vmem:[#allocation2 + $0x86] ss:$2 sm:$0xff] }
 0x331   :  { %v1958_v18 = vld [vmem:[#allocation2 + $0x1] ss:$2 sm:$0xff]  ;;  %v1946_v61 = vld [vmem:[#allocation2] ss:$2 sm:$0xff]  ;;  %1931 = vst.msk [vmem:[#allocation2 + $0x40] sm:$0xff] %vm1609_vm5, %v1887_v15  ;;  %2479 = vmatpush.msrb.mxu3 %v5601_v51  ;;  %2304 = vmatpush.msra.mxu0 %v5602_v46  ;;  %v2444_v44 = vrot.slane %v2264_v8, 1 }
 0x332   :  { %3249 = vmatmul.msk.f32.vlgmr.msrb.gmra.mxu0 %vm1609_vm5, %v1958_v18  ;;  %v2174_v29 = vrot.slane %v1958_v18, 1  ;;  %3255 = vmatmul.msk.f32.vlgmr.msrb.gmra.mxu1 %vm1609_vm5, %v1946_v61  ;;  %v2101_v43 = vrot.slane %v1946_v61, 1  ;;  %1932 = vst.msk [vmem:[#allocation2 + $0x48] sm:$0xff] %vm1609_vm5, %v1888_v3  ;;  %v2381_v13 = vsel %vm93_vm1, %v2378_v5, %v2380_v30  ;;  %v2266_v15 = vld [vmem:[#allocation2 + $0x87] ss:$2 sm:$0xff]  ;;  %v2382_v1 = vrot.slane %v2254_v0, 1 }
 0x333   :  { %v1948_v45 = vld [vmem:[#allocation2 + $0x10] ss:$2 sm:$0xff]  ;;  %v1960_v22 = vld [vmem:[#allocation2 + $0x11] ss:$2 sm:$0xff]  ;;  %1933 = vst.msk [vmem:[#allocation2 + $0x50] sm:$0x3f] %vm1629_vm6, %v1889_v9  ;;  %2357 = vmatpush.msra.mxu1 %v4984_v16  ;;  %v2445_v14 = vsel %vm93_vm1, %v2442_v26, %v2444_v44 }
 0x334   :  { %v2102_v23 = vrot.slane %v1948_v45, 1  ;;  %v2175_v54 = vrot.slane %v1960_v22, 1  ;;  %1934 = vst.msk [vmem:[#allocation2 + $0x56] sm:$0xff] %vm1609_vm5, %v1912_v50  ;;  %v2446_v3 = vrot.slane %v2266_v15, 1  ;;  %v2383_v49 = vsel %vm93_vm1, %v2380_v30, %v2382_v1  ;;  %v2256_v9 = vld [vmem:[#allocation2 + $0x96] ss:$2 sm:$0xff] }
 0x335   :  { %1935 = vst.msk [vmem:[#allocation2 + $0x5e] sm:$0xff] %vm1609_vm5, %v1913_v55  ;;  %v1950_v48 = vld [vmem:[#allocation2 + $0x20] ss:$2 sm:$0xff]  ;;  %v1962_v17 = vld [vmem:[#allocation2 + $0x21] ss:$2 sm:$0xff]  ;;  %v2384_v47 = vrot.slane %v2256_v9, 1 }
 0x336   :  { %v2103_v28 = vsel %vm93_vm1, %v2101_v43, %v2102_v23  ;;  %v2176_v34 = vsel %vm93_vm1, %v2174_v29, %v2175_v54  ;;  %v2104_v16 = vrot.slane %v1950_v48, 1  ;;  %v2177_v57 = vrot.slane %v1962_v17, 1  ;;  %v2268_v41 = vld [vmem:[#allocation2 + $0x97] ss:$2 sm:$0xff] }
 0x337   :  { %3269 = vmatmul.msk.f32.vlgmr.msra.gmra.mxu2 %vm1609_vm5, %v2103_v28  ;;  %3283 = vmatmul.msk.f32.vlgmr.msra.gmra.mxu3 %vm1609_vm5, %v2176_v34  ;;  %v1952_v19 = vld [vmem:[#allocation2 + $0x30] ss:$2 sm:$0xff]  ;;  %v1964_v42 = vld [vmem:[#allocation2 + $0x31] ss:$2 sm:$0xff]  ;;  %v2447_v10 = vsel %vm93_vm1, %v2444_v44, %v2446_v3  ;;  %v2448_v18 = vrot.slane %v2268_v41, 1  ;;  %v2385_v61 = vsel %vm93_vm1, %v2382_v1, %v2384_v47  ;;  %vm2522_vm6 = vcmask 517120  }
 0x338   :  { %v2105_v33 = vsel %vm93_vm1, %v2102_v23, %v2104_v16  ;;  %v2178_v2 = vsel %vm93_vm1, %v2175_v54, %v2177_v57  ;;  %v2106_v7 = vrot.slane %v1952_v19, 1  ;;  %v2179_v56 = vrot.slane %v1964_v42, 1  ;;  %v2258_v51 = vld [vmem:[#allocation2 + $0xa6] ss:$2 sm:$0x7] }
 0x339   :  { %v1954_v21 = vld [vmem:[#allocation2 + $0x40] ss:$2 sm:$0xff]  ;;  %v1966_v32 = vld [vmem:[#allocation2 + $0x41] ss:$2 sm:$0xff]  ;;  %v2449_v40 = vsel %vm93_vm1, %v2446_v3, %v2448_v18  ;;  %v2386_v29 = vrot.slane %v2258_v51, 1 }
 0x33a   :  { %3250 = vmatmul.msk.f32.gmra.mxu0 %vm1609_vm5, %v1960_v22  ;;  %3256 = vmatmul.msk.f32.gmra.mxu1 %vm1609_vm5, %v1948_v45  ;;  %v2107_v20 = vsel %vm93_vm1, %v2104_v16, %v2106_v7  ;;  %v2180_v37 = vsel %vm93_vm1, %v2177_v57, %v2179_v56  ;;  %v2108_v4 = vrot.slane %v1954_v21, 1  ;;  %v2181_v39 = vrot.slane %v1966_v32, 1  ;;  %v1956_v6 = vld [vmem:[#allocation2 + $0x50] ss:$2 sm:$0x7] }
 0x33b   :  { %v1968_v11 = vld [vmem:[#allocation2 + $0x51] ss:$2 sm:$0x7]  ;;  %v2110_v35 = vrot.slane %v1956_v6, 1  ;;  %v2387_v55 = vsel %vm93_vm1, %v2384_v47, %v2386_v29 }
 0x33c   :  { %v2109_v27 = vsel %vm93_vm1, %v2106_v7, %v2108_v4  ;;  %v2182_v12 = vsel %vm93_vm1, %v2179_v56, %v2181_v39  ;;  %v2183_v38 = vrot.slane %v1968_v11, 1  ;;  %v2260_v59 = vld [vmem:[#allocation2 + $0x57] ss:$2 sm:$0xff]  ;;  %v2248_v63 = vld [vmem:[#allocation2 + $0x56] ss:$2 sm:$0xff] }
 0x33d   :  { %v2111_v52 = vsel %vm93_vm1, %v2108_v4, %v2110_v35  ;;  %v2441_v62 = vrot.slane %v2260_v59, 1  ;;  %v2377_v53 = vrot.slane %v2248_v63, 1  ;;  %v2270_v50 = vld [vmem:[#allocation2 + $0xa7] ss:$2 sm:$0x7] }
 0x33e   :  { %v2184_v24 = vsel %vm93_vm1, %v2181_v39, %v2183_v38  ;;  %v2450_v43 = vrot.slane %v2270_v50, 1 }
 0x33f   :  { %3270 = vmatmul.msk.f32.gmra.mxu2 %vm1609_vm5, %v2105_v33  ;;  %3284 = vmatmul.msk.f32.gmra.mxu3 %vm1609_vm5, %v2178_v2  ;;  %v2379_v31 = vsel %vm93_vm1, %v2377_v53, %v2378_v5  ;;  %v2443_v25 = vsel %vm93_vm1, %v2441_v62, %v2442_v26 }
 0x340   :  { %v2451_v45 = vsel %vm93_vm1, %v2448_v18, %v2450_v43 }
 0x342   :  { %3251 = vmatmul.msk.f32.gmra.mxu0 %vm1609_vm5, %v1962_v17  ;;  %3257 = vmatmul.msk.f32.gmra.mxu1 %vm1609_vm5, %v1950_v48 }
 0x347   :  { %3271 = vmatmul.msk.f32.gmra.mxu2 %vm1609_vm5, %v2107_v20  ;;  %3285 = vmatmul.msk.f32.gmra.mxu3 %vm1609_vm5, %v2180_v37 }
 0x34a   :  { %3252 = vmatmul.msk.f32.gmra.mxu0 %vm1609_vm5, %v1964_v42  ;;  %3258 = vmatmul.msk.f32.gmra.mxu1 %vm1609_vm5, %v1952_v19  ;;  %v5176_v42 = vld [vmem:[%s5573_s10] ss:$0 sm:$0xff] }
 0x34f   :  { %3272 = vmatmul.msk.f32.gmra.mxu2 %vm1609_vm5, %v2109_v27  ;;  %3286 = vmatmul.msk.f32.gmra.mxu3 %vm1609_vm5, %v2182_v12 }
 0x352   :  { %3253 = vmatmul.msk.f32.gmra.mxu0 %vm1609_vm5, %v1966_v32  ;;  %3259 = vmatmul.msk.f32.gmra.mxu1 %vm1609_vm5, %v1954_v21 }
 0x357   :  { %3273 = vmatmul.msk.f32.gmra.mxu2 %vm1609_vm5, %v2111_v52  ;;  %3287 = vmatmul.msk.f32.gmra.mxu3 %vm1609_vm5, %v2184_v24 }
 0x35a   :  { %3254 = vmatmul.msk.f32.gmra.mxu0 %vm1609_vm5, %v1968_v11  ;;  %3260 = vmatmul.msk.f32.gmra.mxu1 %vm1609_vm5, %v1956_v6 }
 0x35f   :  { %3274 = vmatmul.msk.f32.gmra.mxu2 %vm1609_vm5, %v2110_v35  ;;  %3288 = vmatmul.msk.f32.gmra.mxu3 %vm1609_vm5, %v2183_v38 }
 0x362   :  { %3289 = vmatmul.msk.f32.vlgmr.msra.gmra.mxu0 %vm1609_vm5, %v2260_v59  ;;  %3295 = vmatmul.msk.f32.vlgmr.msra.gmra.mxu1 %vm1609_vm5, %v2248_v63 }
 0x367   :  { %3301 = vmatmul.msk.f32.vlgmr.msrb.gmra.mxu2 %vm1609_vm5, %v2379_v31  ;;  %3307 = vmatmul.msk.f32.vlgmr.msrb.gmra.mxu3 %vm1609_vm5, %v2443_v25 }
 0x36a   :  { %3290 = vmatmul.msk.f32.gmra.mxu0 %vm1609_vm5, %v2262_v36  ;;  %3296 = vmatmul.msk.f32.gmra.mxu1 %vm1609_vm5, %v2250_v58 }
 0x36f   :  { %3302 = vmatmul.msk.f32.gmra.mxu2 %vm1609_vm5, %v2381_v13  ;;  %3308 = vmatmul.msk.f32.gmra.mxu3 %vm1609_vm5, %v2445_v14 }
 0x372   :  { %3291 = vmatmul.msk.f32.gmra.mxu0 %vm1609_vm5, %v2264_v8  ;;  %3297 = vmatmul.msk.f32.gmra.mxu1 %vm1609_vm5, %v2252_v60 }
 0x377   :  { %3303 = vmatmul.msk.f32.gmra.mxu2 %vm1609_vm5, %v2383_v49  ;;  %3309 = vmatmul.msk.f32.gmra.mxu3 %vm1609_vm5, %v2447_v10 }
 0x37a   :  { %3292 = vmatmul.msk.f32.gmra.mxu0 %vm1609_vm5, %v2266_v15  ;;  %3298 = vmatmul.msk.f32.gmra.mxu1 %vm1609_vm5, %v2254_v0 }
 0x37f   :  { %3304 = vmatmul.msk.f32.gmra.mxu2 %vm1609_vm5, %v2385_v61  ;;  %3310 = vmatmul.msk.f32.gmra.mxu3 %vm1609_vm5, %v2449_v40 }
 0x382   :  { %3293 = vmatmul.msk.f32.gmra.mxu0 %vm1609_vm5, %v2268_v41  ;;  %3299 = vmatmul.msk.f32.gmra.mxu1 %vm1609_vm5, %v2256_v9 }
 0x387   :  { %3305 = vmatmul.msk.f32.gmra.mxu2 %vm1609_vm5, %v2387_v55  ;;  %3311 = vmatmul.msk.f32.gmra.mxu3 %vm1609_vm5, %v2451_v45 }
 0x38a   :  { %3294 = vmatmul.msk.f32.gmra.mxu0 %vm1609_vm5, %v2270_v50  ;;  %3300 = vmatmul.msk.f32.gmra.mxu1 %vm1609_vm5, %v2258_v51 }
 0x38f   :  { %3306 = vmatmul.msk.f32.gmra.mxu2 %vm1609_vm5, %v2386_v29  ;;  %3312 = vmatmul.msk.f32.gmra.mxu3 %vm1609_vm5, %v2450_v43 }
 0x3af   :  { %v2021_v22 = vpop.f32.mrf.mxu0  ;;  %v2074_v46 = vpop.f32.mrf.mxu1 }
 0x3b0   :  { %v2075_v23 = vadd.f32 %v2074_v46, %v2021_v22 }
 0x3b7   :  { %v2024_v54 = vpop.f32.mrf.mxu0  ;;  %v2077_v28 = vpop.f32.mrf.mxu1 }
 0x3b8   :  { %v2078_v34 = vadd.f32 %v2077_v28, %v2024_v54 }
 0x3ba   :  { %v2141_v48 = vpop.f32.mrf.mxu2  ;;  %v2214_v17 = vpop.f32.mrf.mxu3 }
 0x3bb   :  { %v2159_v16 = vadd.f32 %v2141_v48, %v2075_v23 }
 0x3bd   :  { %v2232_v57 = vadd.f32 %v2214_v17, %v2159_v16 }
 0x3bf   :  { %v2027_v33 = vpop.f32.mrf.mxu0  ;;  %v2080_v2 = vpop.f32.mrf.mxu1  ;;  %v5179_v37 = vadd.f32 %v5176_v42, %v2232_v57 }
 0x3c0   :  { %v2081_v19 = vadd.f32 %v2080_v2, %v2027_v33 }
 0x3c1   :  { %v2513_v27 = vsel %vm1609_vm5, %v5179_v37, 0.0 }
 0x3c2   :  { %v2144_v7 = vpop.f32.mrf.mxu2  ;;  %v2217_v56 = vpop.f32.mrf.mxu3 }
 0x3c3   :  { %v2160_v20 = vadd.f32 %v2144_v7, %v2078_v34 }
 0x3c5   :  { %v2233_v21 = vadd.f32 %v2217_v56, %v2160_v20 }
 0x3c7   :  { %v5182_v32 = vadd.f32 %v5176_v42, %v2233_v21  ;;  %v2030_v4 = vpop.f32.mrf.mxu0  ;;  %v2083_v39 = vpop.f32.mrf.mxu1 }
 0x3c8   :  { %v2084_v9 = vadd.f32 %v2083_v39, %v2030_v4 }
 0x3c9   :  { %v2514_v12 = vsel %vm1609_vm5, %v5182_v32, 0.0 }
 0x3ca   :  { %v2515_v6 = vadd.f32 %v2514_v12, %v2513_v27  ;;  %v2147_v11 = vpop.f32.mrf.mxu2  ;;  %v2220_v35 = vpop.f32.mrf.mxu3 }
 0x3cb   :  { %v2161_v38 = vadd.f32 %v2147_v11, %v2081_v19 }
 0x3cd   :  { %v2234_v52 = vadd.f32 %v2220_v35, %v2161_v38 }
 0x3cf   :  { %v5189_v24 = vadd.f32 %v5176_v42, %v2234_v52  ;;  %v2033_v58 = vpop.f32.mrf.mxu0  ;;  %v2086_v59 = vpop.f32.mrf.mxu1 }
 0x3d0   :  { %v2087_v40 = vadd.f32 %v2086_v59, %v2033_v58 }
 0x3d1   :  { %v2516_v63 = vsel %vm1609_vm5, %v5189_v24, 0.0 }
 0x3d2   :  { %v2517_v36 = vadd.f32 %v2516_v63, %v2515_v6  ;;  %v2150_v62 = vpop.f32.mrf.mxu2  ;;  %v2223_v53 = vpop.f32.mrf.mxu3 }
 0x3d3   :  { %v2162_v51 = vadd.f32 %v2150_v62, %v2084_v9 }
 0x3d5   :  { %v2235_v55 = vadd.f32 %v2223_v53, %v2162_v51 }
 0x3d7   :  { %v2036_v5 = vpop.f32.mrf.mxu0  ;;  %v2089_v26 = vpop.f32.mrf.mxu1  ;;  %v5194_v28 = vadd.f32 %v5176_v42, %v2235_v55 }
 0x3d8   :  { %v2090_v50 = vadd.f32 %v2089_v26, %v2036_v5 }
 0x3d9   :  { %v2518_v20 = vsel %vm1609_vm5, %v5194_v28, 0.0 }
 0x3da   :  { %v2153_v31 = vpop.f32.mrf.mxu2  ;;  %v2226_v25 = vpop.f32.mrf.mxu3  ;;  %v2519_v11 = vadd.f32 %v2518_v20, %v2517_v36 }
 0x3db   :  { %v2163_v29 = vadd.f32 %v2153_v31, %v2087_v40 }
 0x3dd   :  { %v2236_v45 = vadd.f32 %v2226_v25, %v2163_v29 }
 0x3df   :  { %v2306_v60 = vpop.f32.mrf.mxu0  ;;  %v2359_v8 = vpop.f32.mrf.mxu1  ;;  %v5197_v33 = vadd.f32 %v5176_v42, %v2236_v45 }
 0x3e0   :  { %v2360_v34 = vadd.f32 %v2359_v8, %v2306_v60  ;;  %v3395_v8 = vmov 84.0  }
 0x3e1   :  { %v2520_v39 = vsel %vm1609_vm5, %v5197_v33, 0.0  ;;  %3389 = vrcp.f32 %v3395_v8 }
 0x3e2   :  { %v2156_v30 = vpop.f32.mrf.mxu2  ;;  %v2229_v44 = vpop.f32.mrf.mxu3  ;;  %v2521_v62 = vadd.f32 %v2520_v39, %v2519_v11 }
 0x3e3   :  { %v2164_v43 = vadd.f32 %v2156_v30, %v2090_v50 }
 0x3e5   :  { %v2237_v46 = vadd.f32 %v2229_v44, %v2164_v43 }
 0x3e7   :  { %v2309_v13 = vpop.f32.mrf.mxu0  ;;  %v2362_v14 = vpop.f32.mrf.mxu1  ;;  %v5200_v56 = vadd.f32 %v5176_v42, %v2237_v46 }
 0x3e8   :  { %v2363_v22 = vadd.f32 %v2362_v14, %v2309_v13  ;;  %v3390_v9 = vpop.eup %3389 }
 0x3e9   :  { %v2523_v35 = vsel %vm2522_vm6, %v5200_v56, 0.0  ;;  %v2550_v29 = vmul.f32 84.0, %v3390_v9  ;;  %vm2554_vm11 = vweird.f32 %v3390_v9 }
 0x3ea   :  { %v2417_v0 = vpop.f32.mrf.mxu2  ;;  %v2481_v15 = vpop.f32.mrf.mxu3  ;;  %v2524_v31 = vadd.f32 %v2523_v35, %v2521_v62 }
 0x3eb   :  { %v2435_v2 = vadd.f32 %v2417_v0, %v2360_v34  ;;  %v2551_v46 = vsub.f32 1.0, %v2550_v29 }
 0x3ed   :  { %v2499_v27 = vadd.f32 %v2481_v15, %v2435_v2  ;;  %v2525_v15 = vrot.slane %v2524_v31, 4 }
 0x3ef   :  { %v2312_v1 = vpop.f32.mrf.mxu0  ;;  %v2365_v3 = vpop.f32.mrf.mxu1  ;;  %v2505_v53 = vadd.f32 %v5176_v42, %v2499_v27  ;;  %v2526_v40 = vadd.f32 %v2525_v15, %v2524_v31 }
 0x3f0   :  { %v2366_v48 = vadd.f32 %v2365_v3, %v2312_v1 }
 0x3f1   :  { %v2531_v44 = vsel %vm1609_vm5, %v2505_v53, 0.0  ;;  %v2527_v45 = vrot.slane %v2526_v40, 2 }
 0x3f2   :  { %v2420_v49 = vpop.f32.mrf.mxu2  ;;  %v2484_v10 = vpop.f32.mrf.mxu3 }
 0x3f3   :  { %v2436_v17 = vadd.f32 %v2420_v49, %v2363_v22 }
 0x3f5   :  { %v2500_v21 = vadd.f32 %v2484_v10, %v2436_v17 }
 0x3f7   :  { %v2315_v41 = vpop.f32.mrf.mxu0  ;;  %v2368_v47 = vpop.f32.mrf.mxu1  ;;  %v2506_v58 = vadd.f32 %v5176_v42, %v2500_v21 }
 0x3f8   :  { %v2369_v19 = vadd.f32 %v2368_v47, %v2315_v41 }
 0x3f9   :  { %v2532_v36 = vsel %vm1609_vm5, %v2506_v58, 0.0 }
 0x3fa   :  { %v2423_v18 = vpop.f32.mrf.mxu2  ;;  %v2487_v61 = vpop.f32.mrf.mxu3  ;;  %v2533_v1 = vadd.f32 %v2532_v36, %v2531_v44 }
 0x3fb   :  { %v2437_v7 = vadd.f32 %v2423_v18, %v2366_v48  ;;  %v2552_v48 = vmul.f32 %v3390_v9, %v2551_v46 }
 0x3fd   :  { %v2501_v12 = vadd.f32 %v2487_v61, %v2437_v7  ;;  %v2553_v2 = vadd.f32 %v3390_v9, %v2552_v48 }
 0x3ff   :  { %v2318_v16 = vpop.f32.mrf.mxu0  ;;  %v2371_v57 = vpop.f32.mrf.mxu1  ;;  %v2507_v5 = vadd.f32 %v5176_v42, %v2501_v12 }
 0x400   :  { %v2372_v6 = vadd.f32 %v2371_v57, %v2318_v16 }
 0x401   :  { %v2534_v13 = vsel %vm1609_vm5, %v2507_v5, 0.0 }
 0x402   :  { %v2426_v23 = vpop.f32.mrf.mxu2  ;;  %v2490_v54 = vpop.f32.mrf.mxu3  ;;  %v2535_v41 = vadd.f32 %v2534_v13, %v2533_v1 }
 0x403   :  { %v2438_v4 = vadd.f32 %v2426_v23, %v2369_v19 }
 0x405   :  { %v2502_v59 = vadd.f32 %v2490_v54, %v2438_v4  ;;  %v2528_v54 = vadd.f32 %v2527_v45, %v2526_v40 }
 0x407   :  { %v2321_v25 = vpop.f32.mrf.mxu0  ;;  %v2374_v60 = vpop.f32.mrf.mxu1  ;;  %v2508_v30 = vadd.f32 %v5176_v42, %v2502_v59  ;;  %v2529_v16 = vrot.slane %v2528_v54, 1 }
 0x408   :  { %v2375_v14 = vadd.f32 %v2374_v60, %v2321_v25 }
 0x409   :  { %v2536_v49 = vsel %vm1609_vm5, %v2508_v30, 0.0  ;;  %v2530_v7 = vadd.f32 %v2529_v16, %v2528_v54  ;;  %v5298_v16 = vld [vmem:[%s5576_s13 + $0x30] sm:$0xff] }
 0x40a   :  { %v2429_v38 = vpop.f32.mrf.mxu2  ;;  %v2493_v52 = vpop.f32.mrf.mxu3  ;;  %v2537_v51 = vadd.f32 %v2536_v49, %v2535_v41 }
 0x40b   :  { %v2439_v63 = vadd.f32 %v2429_v38, %v2372_v6 }
 0x40d   :  { %v2503_v26 = vadd.f32 %v2493_v52, %v2439_v63 }
 0x40f   :  { %v2509_v0 = vadd.f32 %v5176_v42, %v2503_v26 }
 0x411   :  { %v2538_v18 = vsel %vm1609_vm5, %v2509_v0, 0.0 }
 0x412   :  { %v2432_v3 = vpop.f32.mrf.mxu2  ;;  %v2496_v47 = vpop.f32.mrf.mxu3  ;;  %v2539_v43 = vadd.f32 %v2538_v18, %v2537_v51 }
 0x413   :  { %v2440_v10 = vadd.f32 %v2432_v3, %v2375_v14 }
 0x415   :  { %v2504_v61 = vadd.f32 %v2496_v47, %v2440_v10 }
 0x417   :  { %v2510_v50 = vadd.f32 %v5176_v42, %v2504_v61  ;;  %v5220_v42 = vsel %vm2554_vm11, %v3390_v9, %v2553_v2  ;;  %v3320_v2 = vld [vmem:[%s5576_s13 + $0x78] sm:$0xff] }
 0x418   :  { %2759 = vmatpush.msrb.mxu0 %v3320_v2  ;;  %2935 = vmatpush.msra.mxu3 %v3320_v2 }
 0x419   :  { %v2540_v55 = vsel %vm2522_vm6, %v2510_v50, 0.0 }
 0x41a   :  { %v2541_v22 = vadd.f32 %v2540_v55, %v2539_v43 }
 0x41c   :  { %v2542_v23 = vrot.slane %v2541_v22, 4 }
 0x41e   :  { %v2543_v34 = vadd.f32 %v2542_v23, %v2541_v22 }
 0x420   :  { %v2544_v17 = vrot.slane %v2543_v34, 2 }
 0x422   :  { %v2545_v57 = vadd.f32 %v2544_v17, %v2543_v34  ;;  %v5292_v34 = vld [vmem:[%s5576_s13 + $0x38] sm:$0xff] }
 0x423   :  { %2801 = vmatpush.msrb.mxu1 %v5292_v34 }
 0x424   :  { %v2546_v19 = vrot.slane %v2545_v57, 1 }
 0x425   :  { %2802 = vmatpush.msrb.mxu1 %v5298_v16 }
 0x426   :  { %v2547_v20 = vadd.f32 %v2546_v19, %v2545_v57  ;;  %v3338_v19 = vld [vmem:[%s5576_s13 + $0xb8] sm:$0xff] }
 0x427   :  { %2863 = vmatpush.msra.mxu2 %v3338_v19 }
 0x428   :  { %v2548_v21 = vadd.f32 %v2547_v20, %v2530_v7  ;;  %v2712_v7 = vld [vmem:[%s5576_s13 + $0x28] sm:$0xff] }
 0x429   :  { %2803 = vmatpush.msrb.mxu1 %v2712_v7 }
 0x42a   :  { %v2556_v4 = vmul.f32 %v5220_v42, %v2548_v21 }
 0x42c   :  { %v5224_v39 = vsub.f32 %v5179_v37, %v2556_v4  ;;  %v5227_v27 = vsub.f32 %v5182_v32, %v2556_v4  ;;  %v5230_v12 = vsub.f32 %v5189_v24, %v2556_v4  ;;  %v5233_v6 = vsub.f32 %v5194_v28, %v2556_v4 }
 0x42d   :  { %v5236_v11 = vsub.f32 %v5197_v33, %v2556_v4  ;;  %v5238_v35 = vsub.f32 %v2505_v53, %v2556_v4  ;;  %v5246_v52 = vsub.f32 %v2506_v58, %v2556_v4  ;;  %v5249_v24 = vsub.f32 %v5200_v56, %v2556_v4 }
 0x42e   :  { %v2563_v38 = vmul.f32 %v5224_v39, %v5224_v39  ;;  %v2564_v37 = vmul.f32 %v5227_v27, %v5227_v27  ;;  %v2565_v32 = vmul.f32 %v5230_v12, %v5230_v12  ;;  %v2566_v28 = vmul.f32 %v5233_v6, %v5233_v6 }
 0x42f   :  { %v5253_v33 = vsub.f32 %v2507_v5, %v2556_v4  ;;  %v5257_v62 = vsub.f32 %v2508_v30, %v2556_v4  ;;  %v2567_v53 = vmul.f32 %v5236_v11, %v5236_v11  ;;  %v5262_v31 = vsub.f32 %v2509_v0, %v2556_v4 }
 0x430   :  { %v2569_v59 = vsel %vm1609_vm5, %v2563_v38, 0.0  ;;  %v2570_v63 = vsel %vm1609_vm5, %v2564_v37, 0.0  ;;  %v2572_v58 = vsel %vm1609_vm5, %v2565_v32, 0.0  ;;  %v2592_v56 = vmul.f32 %v5238_v35, %v5238_v35  ;;  %v3318_v38 = vld [vmem:[%s5576_s13 + $0x68] sm:$0xff]  ;;  %v2711_v37 = vld [vmem:[%s5576_s13 + $0x20] sm:$0xff]  ;;  %v2710_v32 = vld [vmem:[%s5576_s13 + $0x18] sm:$0xff] }
 0x431   :  { %v2571_v26 = vadd.f32 %v2570_v63, %v2569_v59  ;;  %v2593_v5 = vmul.f32 %v5246_v52, %v5246_v52  ;;  %v2594_v25 = vmul.f32 %v5253_v33, %v5253_v33  ;;  %v2568_v60 = vmul.f32 %v5249_v24, %v5249_v24  ;;  %v3317_v59 = vld [vmem:[%s5576_s13 + $0x60] sm:$0xff]  ;;  %2804 = vmatpush.msrb.mxu1 %v2711_v37  ;;  %v3337_v63 = vld [vmem:[%s5576_s13 + $0xb0] sm:$0xff] }
 0x432   :  { %v2574_v36 = vsel %vm1609_vm5, %v2566_v28, 0.0  ;;  %v5273_v30 = vsub.f32 %v2510_v50, %v2556_v4  ;;  %v2595_v44 = vmul.f32 %v5257_v62, %v5257_v62  ;;  %v2598_v13 = vsel %vm1609_vm5, %v2592_v56, 0.0  ;;  %v3319_v4 = vld [vmem:[%s5576_s13 + $0x70] sm:$0xff]  ;;  %2864 = vmatpush.msra.mxu2 %v3337_v63  ;;  %v3316_v56 = vld [vmem:[%s5576_s13 + $0x58] sm:$0xff] }
 0x433   :  { %v2573_v8 = vadd.f32 %v2572_v58, %v2571_v26  ;;  %v2599_v14 = vsel %vm1609_vm5, %v2593_v5, 0.0  ;;  %v2576_v1 = vsel %vm1609_vm5, %v2567_v53, 0.0  ;;  %v2596_v3 = vmul.f32 %v5262_v31, %v5262_v31  ;;  %2760 = vmatpush.msrb.mxu0 %v3319_v4  ;;  %2936 = vmatpush.msra.mxu3 %v3319_v4  ;;  %v2709_v53 = vld [vmem:[%s5576_s13 + $0x10] sm:$0xff]  ;;  %v3336_v26 = vld [vmem:[%s5576_s13 + $0xa8] sm:$0xff]  ;;  %v3335_v5 = vld [vmem:[%s5576_s13 + $0xa0] sm:$0xff] }
 0x434   :  { %v2600_v15 = vadd.f32 %v2599_v14, %v2598_v13  ;;  %v2601_v49 = vsel %vm1609_vm5, %v2594_v25, 0.0  ;;  %v2578_v41 = vsel %vm2522_vm6, %v2568_v60, 0.0  ;;  %v2597_v47 = vmul.f32 %v5273_v30, %v5273_v30  ;;  %2805 = vmatpush.msrb.mxu1 %v2710_v32  ;;  %2865 = vmatpush.msra.mxu2 %v3336_v26  ;;  %v2708_v25 = vld [vmem:[%s5576_s13 + $0x8] sm:$0xff]  ;;  %v3333_v14 = vld [vmem:[%s5576_s13 + $0x90] sm:$0xff] }
 0x435   :  { %v2575_v0 = vadd.f32 %v2574_v36, %v2573_v8  ;;  %v2603_v18 = vsel %vm1609_vm5, %v2595_v44, 0.0  ;;  %v2605_v51 = vsel %vm1609_vm5, %v2596_v3, 0.0  ;;  %2761 = vmatpush.msrb.mxu0 %v3318_v38  ;;  %2937 = vmatpush.msra.mxu3 %v3318_v38  ;;  %v3315_v8 = vld [vmem:[%s5576_s13 + $0x50] sm:$0xff]  ;;  %v3334_v36 = vld [vmem:[%s5576_s13 + $0x98] sm:$0xff]  ;;  %v2707_v44 = vld [vmem:[%s5576_s13] sm:$0xff] }
 0x436   :  { %v2602_v9 = vadd.f32 %v2601_v49, %v2600_v15  ;;  %v2607_v43 = vsel %vm2522_vm6, %v2597_v47, 0.0  ;;  %2806 = vmatpush.msrb.mxu1 %v2709_v53  ;;  %2866 = vmatpush.msra.mxu2 %v3335_v5  ;;  %v3332_v15 = vld [vmem:[%s5576_s13 + $0x88] sm:$0xff] }
 0x437   :  { %v2577_v10 = vadd.f32 %v2576_v1, %v2575_v0  ;;  %2762 = vmatpush.msrb.mxu0 %v3317_v59  ;;  %2938 = vmatpush.msra.mxu3 %v3317_v59  ;;  %v3313_v0 = vld [vmem:[%s5576_s13 + $0x40] sm:$0xff] }
 0x438   :  { %v2604_v40 = vadd.f32 %v2603_v18, %v2602_v9  ;;  %2807 = vmatpush.msrb.mxu1 %v2708_v25  ;;  %2867 = vmatpush.msra.mxu2 %v3334_v36  ;;  %v3331_v1 = vld [vmem:[%s5576_s13 + $0x80] sm:$0xff] }
 0x439   :  { %v2579_v61 = vadd.f32 %v2578_v41, %v2577_v10  ;;  %2763 = vmatpush.msrb.mxu0 %v3316_v56  ;;  %2939 = vmatpush.msra.mxu3 %v3316_v56  ;;  %v5373_v18 = vld [vmem:[%s5574_s11] ss:$0 sm:$0xff] }
 0x43a   :  { %v2606_v29 = vadd.f32 %v2605_v51, %v2604_v40  ;;  %2808 = vmatpush.msrb.mxu1 %v2707_v44  ;;  %2868 = vmatpush.msra.mxu2 %v3333_v14  ;;  %v5380_v40 = vld [vmem:[%s5575_s12] ss:$0 sm:$0xff] }
 0x43b   :  { %v2580_v50 = vrot.slane %v2579_v61, 4  ;;  %2764 = vmatpush.msrb.mxu0 %v3315_v8  ;;  %2940 = vmatpush.msra.mxu3 %v3315_v8 }
 0x43c   :  { %v2608_v45 = vadd.f32 %v2607_v43, %v2606_v29  ;;  %3030 = vmatpush.msra.mxu1 %v3338_v19  ;;  %2869 = vmatpush.msra.mxu2 %v3332_v15 }
 0x43d   :  { %v2581_v55 = vadd.f32 %v2580_v50, %v2579_v61 }
 0x43e   :  { %v2609_v46 = vrot.slane %v2608_v45, 4  ;;  %2870 = vmatpush.msra.mxu2 %v3331_v1  ;;  %3031 = vmatpush.msra.mxu1 %v3337_v63 }
 0x43f   :  { %v2582_v22 = vrot.slane %v2581_v55, 2 }
 0x440   :  { %v2610_v54 = vadd.f32 %v2609_v46, %v2608_v45  ;;  %3032 = vmatpush.msra.mxu1 %v3336_v26 }
 0x441   :  { %v2583_v23 = vadd.f32 %v2582_v22, %v2581_v55 }
 0x442   :  { %v2611_v17 = vrot.slane %v2610_v54, 2  ;;  %3033 = vmatpush.msra.mxu1 %v3335_v5 }
 0x443   :  { %v2584_v48 = vrot.slane %v2583_v23, 1 }
 0x444   :  { %v2612_v57 = vadd.f32 %v2611_v17, %v2610_v54  ;;  %3034 = vmatpush.msra.mxu1 %v3334_v36 }
 0x445   :  { %v2585_v20 = vadd.f32 %v2584_v48, %v2583_v23 }
 0x446   :  { %v2613_v21 = vrot.slane %v2612_v57, 1  ;;  %3035 = vmatpush.msra.mxu1 %v3333_v14 }
 0x448   :  { %v2614_v28 = vadd.f32 %v2613_v21, %v2612_v57  ;;  %3036 = vmatpush.msra.mxu1 %v3332_v15 }
 0x44a   :  { %v2615_v58 = vadd.f32 %v2614_v28, %v2585_v20  ;;  %3037 = vmatpush.msra.mxu1 %v3331_v1 }
 0x44c   :  { %v2616_v60 = vmul.f32 %v2615_v58, %v5220_v42  ;;  %v3314_v42 = vld [vmem:[%s5576_s13 + $0x48] sm:$0xff] }
 0x44d   :  { %2765 = vmatpush.msrb.mxu0 %v3314_v42  ;;  %2941 = vmatpush.msra.mxu3 %v3314_v42 }
 0x44e   :  { %v2617_v13 = vadd.f32 1e-05, %v2616_v60 }
 0x44f   :  { %2766 = vmatpush.msrb.mxu0 %v3313_v0  ;;  %2942 = vmatpush.msra.mxu3 %v3313_v0 }
 0x450   :  { %3391 = vrsqrt.f32 %v2617_v13  ;;  %vm2624_vm13 = vweird.f32 %v2617_v13 }
 0x451   :  { %2977 = vmatpush.msra.mxu0 %v5292_v34 }
 0x453   :  { %2978 = vmatpush.msra.mxu0 %v5298_v16 }
 0x455   :  { %2979 = vmatpush.msra.mxu0 %v2712_v7 }
 0x456   :  { %v3392_v3 = vpop.eup %3391 }
 0x457   :  { %v2619_v49 = vmul.f32 %v3392_v3, %v2617_v13  ;;  %2980 = vmatpush.msra.mxu0 %v2711_v37  ;;  %vm2625_vm12 = vweird.f32 %v3392_v3 }
 0x458   :  { %vm2626_vm14 = vmor %vm2624_vm13, %vm2625_vm12 }
 0x459   :  { %v2620_v10 = vmul.f32 %v3392_v3, %v2619_v49  ;;  %2981 = vmatpush.msra.mxu0 %v2710_v32 }
 0x45b   :  { %v2621_v9 = vmul.f32 0.5, %v2620_v10  ;;  %2982 = vmatpush.msra.mxu0 %v2709_v53 }
 0x45d   :  { %v2622_v41 = vsub.f32 1.5, %v2621_v9  ;;  %2983 = vmatpush.msra.mxu0 %v2708_v25 }
 0x45f   :  { %v2623_v47 = vmul.f32 %v3392_v3, %v2622_v41  ;;  %2984 = vmatpush.msra.mxu0 %v2707_v44 }
 0x461   :  { %v5375_v61 = vsel %vm2626_vm14, %v3392_v3, %v2623_v47 }
 0x462   :  { %v2656_v51 = vmul.f32 %v5375_v61, %v5262_v31  ;;  %v2657_v50 = vmul.f32 %v5375_v61, %v5273_v30  ;;  %v2628_v29 = vmul.f32 %v5375_v61, %v5224_v39  ;;  %v2629_v43 = vmul.f32 %v5375_v61, %v5227_v27 }
 0x463   :  { %v2652_v55 = vmul.f32 %v5375_v61, %v5238_v35  ;;  %v2653_v45 = vmul.f32 %v5375_v61, %v5246_v52  ;;  %v2630_v22 = vmul.f32 %v5375_v61, %v5230_v12  ;;  %v2654_v31 = vmul.f32 %v5375_v61, %v5253_v33 }
 0x464   :  { %v2663_v30 = vmul.f32 %v5373_v18, %v2657_v50  ;;  %v2637_v39 = vmul.f32 %v5373_v18, %v2628_v29  ;;  %v2638_v46 = vmul.f32 %v5373_v18, %v2629_v43  ;;  %v2631_v27 = vmul.f32 %v5375_v61, %v5233_v6 }
 0x465   :  { %v2658_v35 = vmul.f32 %v5373_v18, %v2652_v55  ;;  %v2659_v23 = vmul.f32 %v5373_v18, %v2653_v45  ;;  %v2639_v52 = vmul.f32 %v5373_v18, %v2630_v22  ;;  %v2660_v12 = vmul.f32 %v5373_v18, %v2654_v31 }
 0x466   :  { %v5408_v54 = vadd.f32 %v5380_v40, %v2663_v30  ;;  %v2646_v33 = vadd.f32 %v5380_v40, %v2637_v39  ;;  %v2647_v34 = vadd.f32 %v5380_v40, %v2638_v46  ;;  %v2640_v48 = vmul.f32 %v5373_v18, %v2631_v27 }
 0x467   :  { %v2664_v17 = vadd.f32 %v5380_v40, %v2658_v35  ;;  %v2665_v6 = vadd.f32 %v5380_v40, %v2659_v23  ;;  %v2648_v16 = vadd.f32 %v5380_v40, %v2639_v52  ;;  %v2666_v57 = vadd.f32 %v5380_v40, %v2660_v12 }
 0x468   :  { %vm2670_vm15 = vcmp.ge.f32.partialorder %v2646_v33, 0.0  ;;  %v2676_v2 = vmul.f32 0.2, %v2646_v33  ;;  %vm2671_vm0 = vcmp.ge.f32.partialorder %v2647_v34, 0.0  ;;  %v2677_v19 = vmul.f32 0.2, %v2647_v34 }
 0x469   :  { %vm2688_vm2 = vcmp.ge.f32.partialorder %v2664_v17, 0.0  ;;  %vm2689_vm7 = vcmp.ge.f32.partialorder %v2665_v6, 0.0  ;;  %v2694_v7 = vmul.f32 0.2, %v2664_v17  ;;  %v2695_v20 = vmul.f32 0.2, %v2665_v6 }
 0x46a   :  { %v2682_v21 = vsel %vm2670_vm15, %v2646_v33, %v2676_v2  ;;  %v2683_v4 = vsel %vm2671_vm0, %v2647_v34, %v2677_v19  ;;  %vm2672_vm8 = vcmp.ge.f32.partialorder %v2648_v16, 0.0  ;;  %v2678_v38 = vmul.f32 0.2, %v2648_v16 }
 0x46b   :  { %v2730_v37 = vrot.slane %v2682_v21, 1  ;;  %3326 = vmatmul.msk.f32.vlgmr.msrb.gmra.mxu1 %vm1609_vm5, %v2682_v21  ;;  %v2834_v32 = vrot.slane %v2682_v21, 2  ;;  %v2731_v28 = vrot.slane %v2683_v4, 1  ;;  %v2835_v59 = vrot.slane %v2683_v4, 2 }
 0x46c   :  { %v5418_v63 = vsel %vm2688_vm2, %v2664_v17, %v2694_v7  ;;  %v5420_v53 = vsel %vm2689_vm7, %v2665_v6, %v2695_v20  ;;  %v5422_v26 = vsel %vm2672_vm8, %v2648_v16, %v2678_v38  ;;  %vm2690_vm9 = vcmp.ge.f32.partialorder %v2666_v57, 0.0 }
 0x46d   :  { %v2732_v58 = vsel %vm93_vm1, %v2730_v37, %v2731_v28  ;;  %v2836_v56 = vsel %vm272_vm3, %v2834_v32, %v2835_v59  ;;  %v2906_v5 = vrot.slane %v5418_v63, 1  ;;  %v2907_v25 = vrot.slane %v5420_v53, 1 }
 0x46e   :  { %3321 = vmatmul.msk.f32.vlgmr.msrb.gmra.mxu0 %vm1609_vm5, %v2732_v58  ;;  %3339 = vmatmul.msk.f32.vlgmr.msra.gmra.mxu2 %vm1609_vm5, %v2836_v56  ;;  %v2733_v60 = vrot.slane %v5422_v26, 1  ;;  %v2837_v8 = vrot.slane %v5422_v26, 2  ;;  %v2696_v36 = vmul.f32 0.2, %v2666_v57  ;;  %v2649_v44 = vadd.f32 %v5380_v40, %v2640_v48 }
 0x46f   :  { %v2908_v13 = vsel %vm93_vm1, %v2906_v5, %v2907_v25  ;;  %v2655_v42 = vmul.f32 %v5375_v61, %v5257_v62  ;;  %v2632_v14 = vmul.f32 %v5375_v61, %v5236_v11  ;;  %v2662_v0 = vmul.f32 %v5373_v18, %v2656_v51 }
 0x470   :  { %3344 = vmatmul.msk.f32.vlgmr.msra.gmra.mxu3 %vm1609_vm5, %v2908_v13  ;;  %v2734_v15 = vsel %vm93_vm1, %v2731_v28, %v2733_v60  ;;  %v2838_v1 = vsel %vm272_vm3, %v2835_v59, %v2837_v8  ;;  %v5443_v3 = vsel %vm2690_vm9, %v2666_v57, %v2696_v36  ;;  %vm2673_vm10 = vcmp.ge.f32.partialorder %v2649_v44, 0.0 }
 0x471   :  { %v2909_v49 = vrot.slane %v5443_v3, 1  ;;  %v2679_v10 = vmul.f32 0.2, %v2649_v44  ;;  %v2661_v62 = vmul.f32 %v5373_v18, %v2655_v42  ;;  %v2641_v9 = vmul.f32 %v5373_v18, %v2632_v14 }
 0x472   :  { %v2668_v11 = vadd.f32 %v5380_v40, %v2662_v0  ;;  %v2633_v41 = vmul.f32 %v5375_v61, %v5249_v24  ;;  %vm2693_vm6 = vcmp.ge.f32.partialorder %v5408_v54, 0.0  ;;  %v2699_v47 = vmul.f32 0.2, %v5408_v54 }
 0x473   :  { %3327 = vmatmul.msk.f32.gmra.mxu1 %vm1609_vm5, %v2683_v4  ;;  %v2910_v51 = vsel %vm93_vm1, %v2907_v25, %v2909_v49  ;;  %v2685_v50 = vsel %vm2673_vm10, %v2649_v44, %v2679_v10  ;;  %v2667_v29 = vadd.f32 %v5380_v40, %v2661_v62  ;;  %v2650_v43 = vadd.f32 %v5380_v40, %v2641_v9 }
 0x474   :  { %v2735_v55 = vrot.slane %v2685_v50, 1  ;;  %v2839_v45 = vrot.slane %v2685_v50, 2  ;;  %vm2692_vm11 = vcmp.ge.f32.partialorder %v2668_v11, 0.0  ;;  %v2698_v22 = vmul.f32 0.2, %v2668_v11 }
 0x475   :  { %vm2691_vm12 = vcmp.ge.f32.partialorder %v2667_v29, 0.0  ;;  %v2697_v31 = vmul.f32 0.2, %v2667_v29  ;;  %vm2674_vm13 = vcmp.ge.f32.partialorder %v2650_v43, 0.0  ;;  %v2680_v24 = vmul.f32 0.2, %v2650_v43 }
 0x476   :  { %3322 = vmatmul.msk.f32.gmra.mxu0 %vm1609_vm5, %v2734_v15  ;;  %3340 = vmatmul.msk.f32.gmra.mxu2 %vm1609_vm5, %v2838_v1  ;;  %v2736_v61 = vsel %vm93_vm1, %v2733_v60, %v2735_v55  ;;  %v2840_v30 = vsel %vm272_vm3, %v2837_v8, %v2839_v45  ;;  %v2704_v39 = vsel %vm2692_vm11, %v2668_v11, %v2698_v22  ;;  %v3001_v23 = vrot.slane %v5418_v63, 2 }
 0x477   :  { %v2703_v46 = vsel %vm2691_vm12, %v2667_v29, %v2697_v31  ;;  %v2686_v27 = vsel %vm2674_vm13, %v2650_v43, %v2680_v24  ;;  %v2913_v35 = vrot.slane %v2704_v39, 1  ;;  %v2705_v34 = vsel %vm2693_vm6, %v5408_v54, %v2699_v47 }
 0x478   :  { %3345 = vmatmul.msk.f32.gmra.mxu3 %vm1609_vm5, %v2910_v51  ;;  %v2911_v52 = vrot.slane %v2703_v46, 1  ;;  %v2737_v12 = vrot.slane %v2686_v27, 1  ;;  %v2841_v33 = vrot.slane %v2686_v27, 2  ;;  %v2642_v48 = vmul.f32 %v5373_v18, %v2633_v41 }
 0x479   :  { %v2915_v17 = vrot.slane %v2705_v34, 1  ;;  %v3002_v6 = vrot.slane %v5420_v53, 2  ;;  %v3004_v16 = vrot.slane %v5443_v3, 2  ;;  %v3006_v21 = vrot.slane %v2703_v46, 2 }
 0x47a   :  { %v2912_v57 = vsel %vm93_vm1, %v2909_v49, %v2911_v52  ;;  %v2738_v2 = vsel %vm93_vm1, %v2735_v55, %v2737_v12  ;;  %v2842_v19 = vsel %vm272_vm3, %v2839_v45, %v2841_v33  ;;  %v2914_v7 = vsel %vm93_vm1, %v2911_v52, %v2913_v35 }
 0x47b   :  { %3328 = vmatmul.msk.f32.gmra.mxu1 %vm1609_vm5, %v5422_v26  ;;  %v2916_v54 = vsel %vm93_vm1, %v2913_v35, %v2915_v17  ;;  %v3003_v18 = vsel %vm272_vm3, %v3001_v23, %v3002_v6  ;;  %v3005_v20 = vsel %vm272_vm3, %v3002_v6, %v3004_v16  ;;  %v3008_v4 = vrot.slane %v2704_v39, 2 }
 0x47c   :  { %v3010_v38 = vrot.slane %v2705_v34, 2  ;;  %v2651_v37 = vadd.f32 %v5380_v40, %v2642_v48  ;;  %v3007_v32 = vsel %vm272_vm3, %v3004_v16, %v3006_v21 }
 0x47d   :  { %v3009_v28 = vsel %vm272_vm3, %v3006_v21, %v3008_v4 }
 0x47e   :  { %3323 = vmatmul.msk.f32.gmra.mxu0 %vm1609_vm5, %v2736_v61  ;;  %3341 = vmatmul.msk.f32.gmra.mxu2 %vm1609_vm5, %v2840_v30  ;;  %v3011_v59 = vsel %vm272_vm3, %v3008_v4, %v3010_v38  ;;  %v2681_v26 = vmul.f32 0.2, %v2651_v37  ;;  %vm2675_vm14 = vcmp.ge.f32.partialorder %v2651_v37, 0.0 }
 0x480   :  { %3346 = vmatmul.msk.f32.gmra.mxu3 %vm1609_vm5, %v2912_v57  ;;  %v2687_v58 = vsel %vm2675_vm14, %v2651_v37, %v2681_v26 }
 0x481   :  { %v2739_v40 = vrot.slane %v2687_v58, 1  ;;  %v2843_v56 = vrot.slane %v2687_v58, 2 }
 0x483   :  { %3329 = vmatmul.msk.f32.gmra.mxu1 %vm1609_vm5, %v2685_v50  ;;  %v2740_v5 = vsel %vm93_vm1, %v2737_v12, %v2739_v40  ;;  %v2844_v25 = vsel %vm272_vm3, %v2841_v33, %v2843_v56 }
 0x486   :  { %3324 = vmatmul.msk.f32.gmra.mxu0 %vm1609_vm5, %v2738_v2  ;;  %3342 = vmatmul.msk.f32.gmra.mxu2 %vm1609_vm5, %v2842_v19 }
 0x488   :  { %3347 = vmatmul.msk.f32.gmra.mxu3 %vm1609_vm5, %v2914_v7 }
 0x48b   :  { %3330 = vmatmul.msk.f32.gmra.mxu1 %vm1609_vm5, %v2686_v27 }
 0x48e   :  { %3325 = vmatmul.msk.f32.gmra.mxu0 %vm1609_vm5, %v2740_v5  ;;  %3343 = vmatmul.msk.f32.gmra.mxu2 %vm1609_vm5, %v2844_v25 }
 0x490   :  { %3348 = vmatmul.msk.f32.gmra.mxu3 %vm1609_vm5, %v2916_v54 }
 0x493   :  { %3354 = vmatmul.msk.f32.vlgmr.msra.gmra.mxu1 %vm1609_vm5, %v3003_v18 }
 0x496   :  { %3349 = vmatmul.msk.f32.vlgmr.msra.gmra.mxu0 %vm1609_vm5, %v5418_v63 }
 0x49b   :  { %3355 = vmatmul.msk.f32.gmra.mxu1 %vm1609_vm5, %v3005_v20 }
 0x49e   :  { %3350 = vmatmul.msk.f32.gmra.mxu0 %vm1609_vm5, %v5420_v53  ;;  %v5511_v53 = vld [vmem:[%s5577_s14] ss:$0 sm:$0xff] }
 0x4a3   :  { %3356 = vmatmul.msk.f32.gmra.mxu1 %vm1609_vm5, %v3007_v32 }
 0x4a6   :  { %3351 = vmatmul.msk.f32.gmra.mxu0 %vm1609_vm5, %v5443_v3 }
 0x4ab   :  { %3357 = vmatmul.msk.f32.gmra.mxu1 %vm1609_vm5, %v3009_v28 }
 0x4ae   :  { %3352 = vmatmul.msk.f32.gmra.mxu0 %vm1609_vm5, %v2703_v46 }
 0x4b3   :  { %3358 = vmatmul.msk.f32.gmra.mxu1 %vm1609_vm5, %v3011_v59 }
 0x4b6   :  { %3353 = vmatmul.msk.f32.gmra.mxu0 %vm1609_vm5, %v2704_v39 }
 0x4e8   :  { %v2810_v60 = vpop.f32.mrf.mxu1 }
 0x4eb   :  { %v2768_v63 = vpop.f32.mrf.mxu0 }
 0x4ec   :  { %v2811_v8 = vadd.f32 %v2810_v60, %v2768_v63 }
 0x4f0   :  { %v2813_v36 = vpop.f32.mrf.mxu1 }
 0x4f1   :  { %v2872_v44 = vpop.f32.mrf.mxu2 }
 0x4f2   :  { %v2887_v13 = vadd.f32 %v2872_v44, %v2811_v8 }
 0x4f3   :  { %v2771_v42 = vpop.f32.mrf.mxu0  ;;  %v2944_v45 = vpop.f32.mrf.mxu3 }
 0x4f4   :  { %v2895_v14 = vadd.f32 %v5511_v53, %v2887_v13  ;;  %v2814_v0 = vadd.f32 %v2813_v36, %v2771_v42 }
 0x4f6   :  { %3064 = vst.msk [vmem:[%s5578_s15] sm:$0xff] %vm694_vm4, %v2895_v14 }
 0x4f8   :  { %v2816_v15 = vpop.f32.mrf.mxu1 }
 0x4f9   :  { %v2875_v1 = vpop.f32.mrf.mxu2 }
 0x4fa   :  { %v2888_v3 = vadd.f32 %v2875_v1, %v2814_v0 }
 0x4fb   :  { %v2774_v49 = vpop.f32.mrf.mxu0  ;;  %v2947_v23 = vpop.f32.mrf.mxu3 }
 0x4fc   :  { %v2896_v10 = vadd.f32 %v5511_v53, %v2888_v3  ;;  %v2817_v62 = vadd.f32 %v2816_v15, %v2774_v49 }
 0x4fe   :  { %3065 = vst.msk [vmem:[%s5578_s15 + $0x8] sm:$0xff] %vm694_vm4, %v2896_v10 }
 0x500   :  { %v2819_v9 = vpop.f32.mrf.mxu1 }
 0x501   :  { %v2878_v11 = vpop.f32.mrf.mxu2 }
 0x502   :  { %v2889_v41 = vadd.f32 %v2878_v11, %v2817_v62 }
 0x503   :  { %v2777_v47 = vpop.f32.mrf.mxu0  ;;  %v2950_v6 = vpop.f32.mrf.mxu3 }
 0x504   :  { %v2897_v51 = vadd.f32 %v5511_v53, %v2889_v41  ;;  %v2820_v50 = vadd.f32 %v2819_v9, %v2777_v47 }
 0x506   :  { %3066 = vst.msk [vmem:[%s5578_s15 + $0x10] sm:$0xff] %vm694_vm4, %v2897_v51 }
 0x508   :  { %v2822_v29 = vpop.f32.mrf.mxu1 }
 0x509   :  { %v2881_v43 = vpop.f32.mrf.mxu2 }
 0x50a   :  { %v2890_v55 = vadd.f32 %v2881_v43, %v2820_v50 }
 0x50b   :  { %v2780_v22 = vpop.f32.mrf.mxu0  ;;  %v2953_v18 = vpop.f32.mrf.mxu3 }
 0x50c   :  { %v2898_v31 = vadd.f32 %v5511_v53, %v2890_v55  ;;  %v2823_v24 = vadd.f32 %v2822_v29, %v2780_v22 }
 0x50e   :  { %3067 = vst.msk [vmem:[%s5578_s15 + $0x18] sm:$0xff] %vm694_vm4, %v2898_v31 }
 0x510   :  { %v3039_v61 = vpop.f32.mrf.mxu1 }
 0x511   :  { %v2884_v30 = vpop.f32.mrf.mxu2 }
 0x512   :  { %v2891_v39 = vadd.f32 %v2884_v30, %v2823_v24 }
 0x513   :  { %v2986_v46 = vpop.f32.mrf.mxu0  ;;  %v2956_v32 = vpop.f32.mrf.mxu3 }
 0x514   :  { %v2899_v27 = vadd.f32 %v5511_v53, %v2891_v39  ;;  %v2987_v35 = vadd.f32 %v2986_v46, %v2944_v45 }
 0x516   :  { %3068 = vst.msk [vmem:[%s5578_s15 + $0x20] sm:$0xff] %vm694_vm4, %v2899_v27  ;;  %v3054_v52 = vadd.f32 %v3039_v61, %v2987_v35 }
 0x518   :  { %v3059_v12 = vadd.f32 %v5511_v53, %v3054_v52  ;;  %v3042_v33 = vpop.f32.mrf.mxu1 }
 0x51a   :  { %3359 = vst.msk [vmem:[%s5578_s15 + $0x28] sm:$0xff] %vm694_vm4, %v3059_v12 }
 0x51b   :  { %v2989_v34 = vpop.f32.mrf.mxu0 }
 0x51c   :  { %v2990_v48 = vadd.f32 %v2989_v34, %v2947_v23 }
 0x51e   :  { %v3055_v17 = vadd.f32 %v3042_v33, %v2990_v48 }
 0x520   :  { %v3060_v16 = vadd.f32 %v5511_v53, %v3055_v17  ;;  %v3045_v57 = vpop.f32.mrf.mxu1 }
 0x522   :  { %3360 = vst.msk [vmem:[%s5578_s15 + $0x30] sm:$0xff] %vm694_vm4, %v3060_v16 }
 0x523   :  { %v2992_v2 = vpop.f32.mrf.mxu0 }
 0x524   :  { %v2993_v19 = vadd.f32 %v2992_v2, %v2950_v6 }
 0x526   :  { %v3056_v7 = vadd.f32 %v3045_v57, %v2993_v19 }
 0x528   :  { %v3061_v54 = vadd.f32 %v5511_v53, %v3056_v7  ;;  %v3048_v20 = vpop.f32.mrf.mxu1 }
 0x52a   :  { %3361 = vst.msk [vmem:[%s5578_s15 + $0x38] sm:$0xff] %vm694_vm4, %v3061_v54 }
 0x52b   :  { %v2995_v21 = vpop.f32.mrf.mxu0 }
 0x52c   :  { %v2996_v4 = vadd.f32 %v2995_v21, %v2953_v18 }
 0x52e   :  { %v3057_v38 = vadd.f32 %v3048_v20, %v2996_v4 }
 0x530   :  { %v3062_v37 = vadd.f32 %v5511_v53, %v3057_v38  ;;  %v3051_v26 = vpop.f32.mrf.mxu1 }
 0x532   :  { %3362 = vst.msk [vmem:[%s5578_s15 + $0x40] sm:$0xff] %vm694_vm4, %v3062_v37 }
 0x533   :  { %v2998_v28 = vpop.f32.mrf.mxu0 }
 0x534   :  { %v2999_v59 = vadd.f32 %v2998_v28, %v2956_v32 }
 0x536   :  { %v3058_v58 = vadd.f32 %v3051_v26, %v2999_v59 }
 0x538   :  { %v3063_v40 = vadd.f32 %v5511_v53, %v3058_v58 }
 0x53a   :  { %3363 = vst.msk [vmem:[%s5578_s15 + $0x48] sm:$0xff] %vm694_vm4, %v3063_v40 }

</bundles_post_ra>
